<compile_context>
chip_gen: v6e
topology: v6e:2x2x1
jax: 0.10.0
libtpu: 0.0.40
codegen_flags: <defaults>
</compile_context>

<pallas_src>
import functools
import jax
import jax.numpy as jnp
from jax.experimental import pallas as pl
from jax.experimental.pallas import tpu as pltpu


def _round_up(n, m):
    return -(-n // m) * m


def _dot(a, b):
    return jnp.dot(a, b, preferred_element_type=jnp.float32)


# ----------------------------------------------------------------------------
# Kernel
# ----------------------------------------------------------------------------
def bitcoin_hybrid_kernel(B, L, H, offs,
                          x_lstm_ref, x_cnn_ref, wpack_ref,
                          out_ref,
                          h_seq_scratch):
    """B is the sublane-padded batch.  All weights live in one packed
    (R, 128) f32 buffer; `offs[name] = (row0, rows, cols)` are static."""
    P = L // 2

    def blk(name):                      # whole packed block (static ref slice)
        r0, r, c = offs[name]
        return wpack_ref[r0:r0 + r, :c]

    def rows(name, start, length):      # static sub-rows of a packed block
        r0, _, c = offs[name]
        return wpack_ref[r0 + start:r0 + start + length, :c]

    # ------------------------- LSTM (2 layers) -------------------------
    def lstm_layer(x_rows, prefix, h_store=None):
        # Hoisted per-gate input projections: four independent matmuls, each
        # producing a (L*B, H) gate pre-activation directly (no lane slicing
        # of a (., 4H) tensor, no reshape).  Gate order: i, f, g, o (PyTorch).
        xg = [_dot(x_rows, blk(f'{prefix}_wih{g}')) + rows(f'{prefix}_b', g, 1)
              for g in range(4)]
        # Static per-timestep row windows (B is a multiple of 8 -> aligned).
        xg_t = [[xg[g][t * B:(t + 1) * B, :] for g in range(4)]
                for t in range(L)]
        w_rec = [blk(f'{prefix}_whh{g}') for g in range(4)]

        h = jnp.zeros((B, H), jnp.float32)
        c = jnp.zeros((B, H), jnp.float32)
        for t in range(L):              # unrolled; L is small and static
            # Issue all four recurrent matmuls before any nonlinearity so the
            # MXU pushes/drains pipeline and EUP pops overlap MXU latency.
            z0 = _dot(h, w_rec[0])
            z1 = _dot(h, w_rec[1])
            z2 = _dot(h, w_rec[2])
            z3 = _dot(h, w_rec[3])
            i_t = jax.nn.sigmoid(xg_t[t][0] + z0)
            f_t = jax.nn.sigmoid(xg_t[t][1] + z1)
            g_t = jnp.tanh(xg_t[t][2] + z2)
            o_t = jax.nn.sigmoid(xg_t[t][3] + z3)
            c = f_t * c + i_t * g_t
            h = o_t * jnp.tanh(c)
            if h_store is not None:
                # aligned (B multiple of 8) off-chain store to VMEM scratch
                h_store[t * B:(t + 1) * B, :] = h
        return h                         # last hidden state (B, H)

    lstm_layer(x_lstm_ref[...], 'l0', h_store=h_seq_scratch)
    # inter-layer dropout: identity in eval mode
    lstm_features = lstm_layer(h_seq_scratch[...], 'l1')           # (B, H)

    # ------------------------- CNN branch -------------------------
    def conv1d_same(x_rows, wname, bname, period):
        """kernel=3 / padding=1 conv over time on (rows, Cin) where rows are
        contiguous segments of length `period` (row = b*period + l).
        +/-1 taps = XLU roll + O(n) boundary mask (no O(n^2) band matrices)."""
        n = x_rows.shape[0]
        pos = jax.lax.broadcasted_iota(jnp.int32, (n, 1), 0) % period
        prev = jnp.where(pos > 0,
                         pltpu.roll(x_rows, 1, axis=0), 0.0)        # x[l-1]
        nxt = jnp.where(pos < period - 1,
                        pltpu.roll(x_rows, n - 1, axis=0), 0.0)     # x[l+1]
        acc = (_dot(prev, blk(wname + '_0'))
               + _dot(x_rows, blk(wname + '_1'))
               + _dot(nxt, blk(wname + '_2')))
        return acc + rows(bname, 0, 1)

    x_cnn = x_cnn_ref[...]                                          # (B*L, Fp), row = b*L + l
    c1 = jnp.maximum(conv1d_same(x_cnn, 'cw1', 'cb1', L), 0.0)      # (B*L, 64)
    # MaxPool1d(2): adjacent-row pair max (stride-2 selection), O(n)
    c1_pairs = c1.reshape(B * P, 2, c1.shape[-1])
    p1 = jnp.maximum(c1_pairs[:, 0, :], c1_pairs[:, 1, :])          # (B*P, 64), row = b*P + p
    c2 = jnp.maximum(conv1d_same(p1, 'cw2', 'cb2', P), 0.0)         # (B*P, C2)
    C2 = c2.shape[-1]                                               # 128
    c2_3d = c2.reshape(B, P, C2)

    # ------------------------- head -------------------------
    # fc1 split: lstm part + P per-position matmuls as independent partial
    # sums, tree-added (no flatten/concat, no serial add chain).
    # first dropout (on 'combined'): identity in eval mode.
    parts = [_dot(lstm_features, blk('fc1w_lstm'))]
    for p in range(P):
        parts.append(_dot(c2_3d[:, p, :], rows('fc1w_cnn', p * C2, C2)))
    while len(parts) > 1:
        nxt_parts = [parts[i] + parts[i + 1] for i in range(0, len(parts) - 1, 2)]
        if len(parts) % 2:
            nxt_parts.append(parts[-1])
        parts = nxt_parts
    y = jnp.maximum(parts[0] + rows('fc1b', 0, 1), 0.0)             # relu(fc1), (B, 128)
    y = y * rows('bn_scale', 0, 1) + rows('bn_shift', 0, 1)         # BatchNorm1d (eval, folded)
    # dropout: identity in eval mode
    y = jnp.maximum(_dot(y, blk('fc2w')) + rows('fc2b', 0, 1), 0.0)  # relu(fc2), (B, 64)
    # fc3 (64 -> 1): broadcast-multiply + lane reduction (no N=1 MXU matmul)
    out = jnp.sum(y * rows('fc3w', 0, 1), axis=-1, keepdims=True) + rows('fc3b', 0, 1)
    out_ref[...] = jnp.broadcast_to(out, (B, 128))                  # full-tile lane-dense store


# ----------------------------------------------------------------------------
# Wrapper
# ----------------------------------------------------------------------------
def bitcoin_hybrid_forward(x, wpack, offsets, hidden):
    B, L, F = x.shape
    assert L % 2 == 0, "kernel assumes an even sequence length (MaxPool1d(2))"
    H = hidden
    B_pad = _round_up(max(B, 8), 8)          # sublane-aligned batch
    F_pad = _round_up(F, 8)                  # must match packing layout

    # Layout plumbing (outside the kernel): LSTM consumes time-major rows
    # (row = t*B_pad + b); CNN consumes batch-major rows (row = b*L + l).
    xp = jnp.zeros((B_pad, L, F_pad), jnp.float32).at[:B, :, :F].set(
        x.astype(jnp.float32))
    x_lstm = jnp.transpose(xp, (1, 0, 2)).reshape(L * B_pad, F_pad)
    x_cnn = xp.reshape(B_pad * L, F_pad)

    def full_spec(a):
        nd = a.ndim
        return pl.BlockSpec(a.shape, lambda i, _nd=nd: (0,) * _nd)

    out_padded = pl.pallas_call(
        functools.partial(bitcoin_hybrid_kernel, B_pad, L, H, offsets),
        # Single program: ~0.7 MiB packed weights + tiny activations << VMEM.
        # For production batch sizes, grid over B_pad blocks with
        # dimension_semantics=("parallel",) (2nd TensorCore on v7x) and keep
        # the weight index_map constant in the batch index so the packed
        # buffer stays resident; re-derive VMEM budget for v7x's 64 MiB.
        grid=(1,),
        in_specs=[full_spec(x_lstm), full_spec(x_cnn), full_spec(wpack)],
        out_specs=pl.BlockSpec((B_pad, 128), lambda i: (0, 0)),
        out_shape=jax.ShapeDtypeStruct((B_pad, 128), jnp.float32),
        scratch_shapes=[pltpu.VMEM((L * B_pad, H), jnp.float32)],
    )(x_lstm, x_cnn, wpack)
    return out_padded[:B, :1]                                        # (B, 1)


# ----------------------------------------------------------------------------
# Parameter construction / packing (wrapper-side layout plumbing)
# ----------------------------------------------------------------------------
def init_params(key, F, L, H):
    """Deterministic synthetic parameters in native PyTorch shapes."""
    P = L // 2
    ks = jax.random.split(key, 16)

    def w(k, shape, scale=0.1):
        return jax.random.normal(k, shape, jnp.float32) * scale

    return {
        # nn.LSTM (gate order i, f, g, o)
        'weight_ih_l0': w(ks[0], (4 * H, F)), 'weight_hh_l0': w(ks[1], (4 * H, H)),
        'bias_ih_l0': w(ks[2], (4 * H,)),     'bias_hh_l0': w(ks[3], (4 * H,)),
        'weight_ih_l1': w(ks[4], (4 * H, H)), 'weight_hh_l1': w(ks[5], (4 * H, H)),
        'bias_ih_l1': w(ks[6], (4 * H,)),     'bias_hh_l1': w(ks[7], (4 * H,)),
        # nn.Conv1d: (Cout, Cin, K)
        'conv1_w': w(ks[8], (64, F, 3)),      'conv1_b': w(ks[9], (64,)),
        'conv2_w': w(ks[10], (128, 64, 3)),   'conv2_b': w(ks[11], (128,)),
        # nn.Linear: (out, in)
        'fc1_w': w(ks[12], (128, H + 128 * P)), 'fc1_b': jnp.zeros((128,), jnp.float32),
        'fc2_w': w(ks[13], (64, 128)),          'fc2_b': jnp.zeros((64,), jnp.float32),
        'fc3_w': w(ks[14], (1, 64)),            'fc3_b': jnp.zeros((1,), jnp.float32),
        # nn.BatchNorm1d(128): default init + fresh running stats (eval mode)
        'bn_gamma': jnp.ones((128,), jnp.float32), 'bn_beta': jnp.zeros((128,), jnp.float32),
        'bn_mean': jnp.zeros((128,), jnp.float32), 'bn_var': jnp.ones((128,), jnp.float32),
    }


def _pack_blocks(named_blocks):
    """Pack 2-D blocks (cols <= 128) into one (R, 128) f32 buffer; rows of
    each block start at an 8-aligned offset.  Returns (packed, offsets)."""
    blocks, offs, row0 = [], {}, 0
    for name, a in named_blocks:
        a = jnp.asarray(a, jnp.float32)
        r, c = a.shape
        rp = _round_up(r, 8)
        buf = jnp.zeros((rp, 128), jnp.float32).at[:r, :c].set(a)
        blocks.append(buf)
        offs[name] = (row0, r, c)
        row0 += rp
    return jnp.concatenate(blocks, axis=0), offs


def pack_params(pt, F, L, H):
    """Convert PyTorch-shaped params to the kernel layout and pack them into a
    single (8,128)-aligned buffer (one prologue DMA)."""
    P = L // 2
    F_pad = _round_up(F, 8)
    eps = 1e-5

    def pad_rows(a, rows):
        return jnp.zeros((rows, a.shape[1]), jnp.float32).at[:a.shape[0], :].set(a)

    named = []
    # LSTM: per-gate input / recurrent weights (right-multiplication form) and
    # per-gate fused biases.
    layers = [('l0', pt['weight_ih_l0'], pt['weight_hh_l0'],
               pt['bias_ih_l0'] + pt['bias_hh_l0'], F, F_pad),
              ('l1', pt['weight_ih_l1'], pt['weight_hh_l1'],
               pt['bias_ih_l1'] + pt['bias_hh_l1'], H, H)]
    for name, wih, whh, b, in_dim, in_pad in layers:
        for g in range(4):
            w_in = wih[g * H:(g + 1) * H, :].T                     # (in_dim, H)
            if in_pad != in_dim:
                w_in = pad_rows(w_in, in_pad)
            named.append((f'{name}_wih{g}', w_in))
            named.append((f'{name}_whh{g}', whh[g * H:(g + 1) * H, :].T))
        named.append((f'{name}_b', b.reshape(4, H)))
    # Conv taps: tap k maps x[l + k - 1]  (PyTorch cross-correlation, pad=1)
    for k in range(3):
        named.append((f'cw1_{k}', pad_rows(pt['conv1_w'][:, :, k].T, F_pad)))
    named.append(('cb1', pt['conv1_b'].reshape(1, -1)))
    for k in range(3):
        named.append((f'cw2_{k}', pt['conv2_w'][:, :, k].T))        # (64, 128)
    named.append(('cb2', pt['conv2_b'].reshape(1, -1)))
    # fc1 split: lstm part (H,128) + per-position CNN part stacked (P*128,128).
    # PyTorch flattens conv output (B,128,P) channel-major: column = H + c*P + p.
    fc1w = pt['fc1_w']
    named.append(('fc1w_lstm', fc1w[:, :H].T))
    wcnn = fc1w[:, H:].reshape(128, 128, P)                          # [out, c, p]
    named.append(('fc1w_cnn', jnp.transpose(wcnn, (2, 1, 0)).reshape(P * 128, 128)))
    named.append(('fc1b', pt['fc1_b'].reshape(1, -1)))
    # BatchNorm1d folded from running stats (eval mode)
    scale = pt['bn_gamma'] / jnp.sqrt(pt['bn_var'] + eps)
    named.append(('bn_scale', scale.reshape(1, -1)))
    named.append(('bn_shift', (pt['bn_beta'] - pt['bn_mean'] * scale).reshape(1, -1)))
    named.append(('fc2w', pt['fc2_w'].T))
    named.append(('fc2b', pt['fc2_b'].reshape(1, -1)))
    named.append(('fc3w', pt['fc3_w'].reshape(1, -1)))               # broadcast row
    named.append(('fc3b', pt['fc3_b'].reshape(1, 1)))
    return _pack_blocks(named)


if __name__ == "__main__":
    # small shapes: batch=2, seq=8, input_size=4, hidden=32, num_layers=2
    B, L, F, H = 2, 8, 4, 32
    key = jax.random.PRNGKey(0)
    kx, kp = jax.random.split(key)
    x = jax.random.normal(kx, (B, L, F), jnp.float32)

    pt_params = init_params(kp, F, L, H)
    wpack, offsets = pack_params(pt_params, F, L, H)

    out = bitcoin_hybrid_forward(x, wpack, offsets, H)
    out = jax.block_until_ready(out)
    assert out.shape == (B, 1) and out.dtype == jnp.float32
    print("KERNEL_OK")
</pallas_src>

<mosaic_0001>
module attributes {stable_mosaic.version = 11 : i64} {
  func.func @bitcoin_hybrid_kernel(%arg0: i32, %arg1: memref<64x8xf32, #tpu.memory_space<vmem>>, %arg2: memref<64x8xf32, #tpu.memory_space<vmem>>, %arg3: memref<1384x128xf32, #tpu.memory_space<vmem>>, %arg4: memref<8x128xf32, #tpu.memory_space<vmem>>, %arg5: memref<64x32xf32, #tpu.memory_space<vmem>>) attributes {dimension_semantics = [#tpu.dimension_semantics<arbitrary>], iteration_bounds = array<i64: 1>, scalar_prefetch = 0 : i64, scratch_operands = 1 : i64, tpu.core_type = #tpu.core_type<tc>, window_params = [{pipeline_mode = #tpu.pipeline_mode<synchronous>, transform_indices = @transform_0, window_bounds = array<i64: 64, 8>}, {pipeline_mode = #tpu.pipeline_mode<synchronous>, transform_indices = @transform_1, window_bounds = array<i64: 64, 8>}, {pipeline_mode = #tpu.pipeline_mode<synchronous>, transform_indices = @transform_2, window_bounds = array<i64: 1384, 128>}, {pipeline_mode = #tpu.pipeline_mode<synchronous>, transform_indices = @transform_3, window_bounds = array<i64: 8, 128>}]} {
    %c0 = arith.constant 0 : index
    %c0_0 = arith.constant 0 : index
    %0 = vector.load %arg1[%c0, %c0_0] : memref<64x8xf32, #tpu.memory_space<vmem>>, vector<64x8xf32>
    %c0_1 = arith.constant 0 : index
    %c0_2 = arith.constant 0 : index
    %1 = vector.load %arg3[%c0_1, %c0_2] : memref<1384x128xf32, #tpu.memory_space<vmem>>, vector<8x32xf32>
    %cst = arith.constant dense<0.000000e+00> : vector<64x32xf32>
    %2 = tpu.matmul %0, %1, %cst {dimension_numbers = #tpu.dot_dimension_numbers<[1], [0], [0], [1], [0, 0, 1, 1], [], []>} : vector<64x8xf32>, vector<8x32xf32>, vector<64x32xf32> -> vector<64x32xf32>
    %c160 = arith.constant 160 : index
    %c0_3 = arith.constant 0 : index
    %3 = vector.load %arg3[%c160, %c0_3] : memref<1384x128xf32, #tpu.memory_space<vmem>>, vector<1x32xf32>
    %4 = vector.broadcast %3 : vector<1x32xf32> to vector<64x32xf32>
    %5 = arith.addf %2, %4 : vector<64x32xf32>
    %c40 = arith.constant 40 : index
    %c0_4 = arith.constant 0 : index
    %6 = vector.load %arg3[%c40, %c0_4] : memref<1384x128xf32, #tpu.memory_space<vmem>>, vector<8x32xf32>
    %cst_5 = arith.constant dense<0.000000e+00> : vector<64x32xf32>
    %7 = tpu.matmul %0, %6, %cst_5 {dimension_numbers = #tpu.dot_dimension_numbers<[1], [0], [0], [1], [0, 0, 1, 1], [], []>} : vector<64x8xf32>, vector<8x32xf32>, vector<64x32xf32> -> vector<64x32xf32>
    %c161 = arith.constant 161 : index
    %c0_6 = arith.constant 0 : index
    %8 = vector.load %arg3[%c161, %c0_6] : memref<1384x128xf32, #tpu.memory_space<vmem>>, vector<1x32xf32>
    %9 = vector.broadcast %8 : vector<1x32xf32> to vector<64x32xf32>
    %10 = arith.addf %7, %9 : vector<64x32xf32>
    %c80 = arith.constant 80 : index
    %c0_7 = arith.constant 0 : index
    %11 = vector.load %arg3[%c80, %c0_7] : memref<1384x128xf32, #tpu.memory_space<vmem>>, vector<8x32xf32>
    %cst_8 = arith.constant dense<0.000000e+00> : vector<64x32xf32>
    %12 = tpu.matmul %0, %11, %cst_8 {dimension_numbers = #tpu.dot_dimension_numbers<[1], [0], [0], [1], [0, 0, 1, 1], [], []>} : vector<64x8xf32>, vector<8x32xf32>, vector<64x32xf32> -> vector<64x32xf32>
    %c162 = arith.constant 162 : index
    %c0_9 = arith.constant 0 : index
    %13 = vector.load %arg3[%c162, %c0_9] : memref<1384x128xf32, #tpu.memory_space<vmem>>, vector<1x32xf32>
    %14 = vector.broadcast %13 : vector<1x32xf32> to vector<64x32xf32>
    %15 = arith.addf %12, %14 : vector<64x32xf32>
    %c120 = arith.constant 120 : index
    %c0_10 = arith.constant 0 : index
    %16 = vector.load %arg3[%c120, %c0_10] : memref<1384x128xf32, #tpu.memory_space<vmem>>, vector<8x32xf32>
    %cst_11 = arith.constant dense<0.000000e+00> : vector<64x32xf32>
    %17 = tpu.matmul %0, %16, %cst_11 {dimension_numbers = #tpu.dot_dimension_numbers<[1], [0], [0], [1], [0, 0, 1, 1], [], []>} : vector<64x8xf32>, vector<8x32xf32>, vector<64x32xf32> -> vector<64x32xf32>
    %c163 = arith.constant 163 : index
    %c0_12 = arith.constant 0 : index
    %18 = vector.load %arg3[%c163, %c0_12] : memref<1384x128xf32, #tpu.memory_space<vmem>>, vector<1x32xf32>
    %19 = vector.broadcast %18 : vector<1x32xf32> to vector<64x32xf32>
    %20 = arith.addf %17, %19 : vector<64x32xf32>
    %21 = vector.extract_strided_slice %5 {offsets = [0, 0], sizes = [8, 32], strides = [1, 1]} : vector<64x32xf32> to vector<8x32xf32>
    %22 = vector.extract_strided_slice %10 {offsets = [0, 0], sizes = [8, 32], strides = [1, 1]} : vector<64x32xf32> to vector<8x32xf32>
    %23 = vector.extract_strided_slice %15 {offsets = [0, 0], sizes = [8, 32], strides = [1, 1]} : vector<64x32xf32> to vector<8x32xf32>
    %24 = vector.extract_strided_slice %20 {offsets = [0, 0], sizes = [8, 32], strides = [1, 1]} : vector<64x32xf32> to vector<8x32xf32>
    %25 = vector.extract_strided_slice %5 {offsets = [8, 0], sizes = [8, 32], strides = [1, 1]} : vector<64x32xf32> to vector<8x32xf32>
    %26 = vector.extract_strided_slice %10 {offsets = [8, 0], sizes = [8, 32], strides = [1, 1]} : vector<64x32xf32> to vector<8x32xf32>
    %27 = vector.extract_strided_slice %15 {offsets = [8, 0], sizes = [8, 32], strides = [1, 1]} : vector<64x32xf32> to vector<8x32xf32>
    %28 = vector.extract_strided_slice %20 {offsets = [8, 0], sizes = [8, 32], strides = [1, 1]} : vector<64x32xf32> to vector<8x32xf32>
    %29 = vector.extract_strided_slice %5 {offsets = [16, 0], sizes = [8, 32], strides = [1, 1]} : vector<64x32xf32> to vector<8x32xf32>
    %30 = vector.extract_strided_slice %10 {offsets = [16, 0], sizes = [8, 32], strides = [1, 1]} : vector<64x32xf32> to vector<8x32xf32>
    %31 = vector.extract_strided_slice %15 {offsets = [16, 0], sizes = [8, 32], strides = [1, 1]} : vector<64x32xf32> to vector<8x32xf32>
    %32 = vector.extract_strided_slice %20 {offsets = [16, 0], sizes = [8, 32], strides = [1, 1]} : vector<64x32xf32> to vector<8x32xf32>
    %33 = vector.extract_strided_slice %5 {offsets = [24, 0], sizes = [8, 32], strides = [1, 1]} : vector<64x32xf32> to vector<8x32xf32>
    %34 = vector.extract_strided_slice %10 {offsets = [24, 0], sizes = [8, 32], strides = [1, 1]} : vector<64x32xf32> to vector<8x32xf32>
    %35 = vector.extract_strided_slice %15 {offsets = [24, 0], sizes = [8, 32], strides = [1, 1]} : vector<64x32xf32> to vector<8x32xf32>
    %36 = vector.extract_strided_slice %20 {offsets = [24, 0], sizes = [8, 32], strides = [1, 1]} : vector<64x32xf32> to vector<8x32xf32>
    %37 = vector.extract_strided_slice %5 {offsets = [32, 0], sizes = [8, 32], strides = [1, 1]} : vector<64x32xf32> to vector<8x32xf32>
    %38 = vector.extract_strided_slice %10 {offsets = [32, 0], sizes = [8, 32], strides = [1, 1]} : vector<64x32xf32> to vector<8x32xf32>
    %39 = vector.extract_strided_slice %15 {offsets = [32, 0], sizes = [8, 32], strides = [1, 1]} : vector<64x32xf32> to vector<8x32xf32>
    %40 = vector.extract_strided_slice %20 {offsets = [32, 0], sizes = [8, 32], strides = [1, 1]} : vector<64x32xf32> to vector<8x32xf32>
    %41 = vector.extract_strided_slice %5 {offsets = [40, 0], sizes = [8, 32], strides = [1, 1]} : vector<64x32xf32> to vector<8x32xf32>
    %42 = vector.extract_strided_slice %10 {offsets = [40, 0], sizes = [8, 32], strides = [1, 1]} : vector<64x32xf32> to vector<8x32xf32>
    %43 = vector.extract_strided_slice %15 {offsets = [40, 0], sizes = [8, 32], strides = [1, 1]} : vector<64x32xf32> to vector<8x32xf32>
    %44 = vector.extract_strided_slice %20 {offsets = [40, 0], sizes = [8, 32], strides = [1, 1]} : vector<64x32xf32> to vector<8x32xf32>
    %45 = vector.extract_strided_slice %5 {offsets = [48, 0], sizes = [8, 32], strides = [1, 1]} : vector<64x32xf32> to vector<8x32xf32>
    %46 = vector.extract_strided_slice %10 {offsets = [48, 0], sizes = [8, 32], strides = [1, 1]} : vector<64x32xf32> to vector<8x32xf32>
    %47 = vector.extract_strided_slice %15 {offsets = [48, 0], sizes = [8, 32], strides = [1, 1]} : vector<64x32xf32> to vector<8x32xf32>
    %48 = vector.extract_strided_slice %20 {offsets = [48, 0], sizes = [8, 32], strides = [1, 1]} : vector<64x32xf32> to vector<8x32xf32>
    %49 = vector.extract_strided_slice %5 {offsets = [56, 0], sizes = [8, 32], strides = [1, 1]} : vector<64x32xf32> to vector<8x32xf32>
    %50 = vector.extract_strided_slice %10 {offsets = [56, 0], sizes = [8, 32], strides = [1, 1]} : vector<64x32xf32> to vector<8x32xf32>
    %51 = vector.extract_strided_slice %15 {offsets = [56, 0], sizes = [8, 32], strides = [1, 1]} : vector<64x32xf32> to vector<8x32xf32>
    %52 = vector.extract_strided_slice %20 {offsets = [56, 0], sizes = [8, 32], strides = [1, 1]} : vector<64x32xf32> to vector<8x32xf32>
    %c8 = arith.constant 8 : index
    %c0_13 = arith.constant 0 : index
    %53 = vector.load %arg3[%c8, %c0_13] : memref<1384x128xf32, #tpu.memory_space<vmem>>, vector<32x32xf32>
    %c48 = arith.constant 48 : index
    %c0_14 = arith.constant 0 : index
    %54 = vector.load %arg3[%c48, %c0_14] : memref<1384x128xf32, #tpu.memory_space<vmem>>, vector<32x32xf32>
    %c88 = arith.constant 88 : index
    %c0_15 = arith.constant 0 : index
    %55 = vector.load %arg3[%c88, %c0_15] : memref<1384x128xf32, #tpu.memory_space<vmem>>, vector<32x32xf32>
    %c128 = arith.constant 128 : index
    %c0_16 = arith.constant 0 : index
    %56 = vector.load %arg3[%c128, %c0_16] : memref<1384x128xf32, #tpu.memory_space<vmem>>, vector<32x32xf32>
    %cst_17 = arith.constant 0.000000e+00 : f32
    %57 = vector.broadcast %cst_17 : f32 to vector<8x32xf32>
    %cst_18 = arith.constant 0.000000e+00 : f32
    %58 = vector.broadcast %cst_18 : f32 to vector<8x32xf32>
    %cst_19 = arith.constant dense<0.000000e+00> : vector<8x32xf32>
    %59 = tpu.matmul %57, %53, %cst_19 {dimension_numbers = #tpu.dot_dimension_numbers<[1], [0], [0], [1], [0, 0, 1, 1], [], []>} : vector<8x32xf32>, vector<32x32xf32>, vector<8x32xf32> -> vector<8x32xf32>
    %cst_20 = arith.constant dense<0.000000e+00> : vector<8x32xf32>
    %60 = tpu.matmul %57, %54, %cst_20 {dimension_numbers = #tpu.dot_dimension_numbers<[1], [0], [0], [1], [0, 0, 1, 1], [], []>} : vector<8x32xf32>, vector<32x32xf32>, vector<8x32xf32> -> vector<8x32xf32>
    %cst_21 = arith.constant dense<0.000000e+00> : vector<8x32xf32>
    %61 = tpu.matmul %57, %55, %cst_21 {dimension_numbers = #tpu.dot_dimension_numbers<[1], [0], [0], [1], [0, 0, 1, 1], [], []>} : vector<8x32xf32>, vector<32x32xf32>, vector<8x32xf32> -> vector<8x32xf32>
    %cst_22 = arith.constant dense<0.000000e+00> : vector<8x32xf32>
    %62 = tpu.matmul %57, %56, %cst_22 {dimension_numbers = #tpu.dot_dimension_numbers<[1], [0], [0], [1], [0, 0, 1, 1], [], []>} : vector<8x32xf32>, vector<32x32xf32>, vector<8x32xf32> -> vector<8x32xf32>
    %63 = arith.addf %21, %59 : vector<8x32xf32>
    %64 = arith.negf %63 : vector<8x32xf32>
    %65 = math.exp %64 : vector<8x32xf32>
    %cst_23 = arith.constant 1.000000e+00 : f32
    %66 = vector.broadcast %cst_23 : f32 to vector<8x32xf32>
    %67 = arith.addf %66, %65 : vector<8x32xf32>
    %68 = arith.divf %66, %67 : vector<8x32xf32>
    %69 = arith.addf %22, %60 : vector<8x32xf32>
    %70 = arith.negf %69 : vector<8x32xf32>
    %71 = math.exp %70 : vector<8x32xf32>
    %cst_24 = arith.constant 1.000000e+00 : f32
    %72 = vector.broadcast %cst_24 : f32 to vector<8x32xf32>
    %73 = arith.addf %72, %71 : vector<8x32xf32>
    %74 = arith.divf %72, %73 : vector<8x32xf32>
    %75 = arith.addf %23, %61 : vector<8x32xf32>
    %76 = math.tanh %75 : vector<8x32xf32>
    %77 = arith.addf %24, %62 : vector<8x32xf32>
    %78 = arith.negf %77 : vector<8x32xf32>
    %79 = math.exp %78 : vector<8x32xf32>
    %cst_25 = arith.constant 1.000000e+00 : f32
    %80 = vector.broadcast %cst_25 : f32 to vector<8x32xf32>
    %81 = arith.addf %80, %79 : vector<8x32xf32>
    %82 = arith.divf %80, %81 : vector<8x32xf32>
    %83 = arith.mulf %74, %58 : vector<8x32xf32>
    %84 = arith.mulf %68, %76 : vector<8x32xf32>
    %85 = arith.addf %83, %84 : vector<8x32xf32>
    %86 = math.tanh %85 : vector<8x32xf32>
    %87 = arith.mulf %82, %86 : vector<8x32xf32>
    %c0_26 = arith.constant 0 : index
    %c0_27 = arith.constant 0 : index
    %88 = vector.load %arg5[%c0_26, %c0_27] : memref<64x32xf32, #tpu.memory_space<vmem>>, vector<8x32xf32>
    tpu.vector_store %arg5[%c0_26, %c0_27], %87 {strides = array<i32>} : memref<64x32xf32, #tpu.memory_space<vmem>>, vector<8x32xf32>,
    %cst_28 = arith.constant dense<0.000000e+00> : vector<8x32xf32>
    %89 = tpu.matmul %87, %53, %cst_28 {dimension_numbers = #tpu.dot_dimension_numbers<[1], [0], [0], [1], [0, 0, 1, 1], [], []>} : vector<8x32xf32>, vector<32x32xf32>, vector<8x32xf32> -> vector<8x32xf32>
    %cst_29 = arith.constant dense<0.000000e+00> : vector<8x32xf32>
    %90 = tpu.matmul %87, %54, %cst_29 {dimension_numbers = #tpu.dot_dimension_numbers<[1], [0], [0], [1], [0, 0, 1, 1], [], []>} : vector<8x32xf32>, vector<32x32xf32>, vector<8x32xf32> -> vector<8x32xf32>
    %cst_30 = arith.constant dense<0.000000e+00> : vector<8x32xf32>
    %91 = tpu.matmul %87, %55, %cst_30 {dimension_numbers = #tpu.dot_dimension_numbers<[1], [0], [0], [1], [0, 0, 1, 1], [], []>} : vector<8x32xf32>, vector<32x32xf32>, vector<8x32xf32> -> vector<8x32xf32>
    %cst_31 = arith.constant dense<0.000000e+00> : vector<8x32xf32>
    %92 = tpu.matmul %87, %56, %cst_31 {dimension_numbers = #tpu.dot_dimension_numbers<[1], [0], [0], [1], [0, 0, 1, 1], [], []>} : vector<8x32xf32>, vector<32x32xf32>, vector<8x32xf32> -> vector<8x32xf32>
    %93 = arith.addf %25, %89 : vector<8x32xf32>
    %94 = arith.negf %93 : vector<8x32xf32>
    %95 = math.exp %94 : vector<8x32xf32>
    %cst_32 = arith.constant 1.000000e+00 : f32
    %96 = vector.broadcast %cst_32 : f32 to vector<8x32xf32>
    %97 = arith.addf %96, %95 : vector<8x32xf32>
    %98 = arith.divf %96, %97 : vector<8x32xf32>
    %99 = arith.addf %26, %90 : vector<8x32xf32>
    %100 = arith.negf %99 : vector<8x32xf32>
    %101 = math.exp %100 : vector<8x32xf32>
    %cst_33 = arith.constant 1.000000e+00 : f32
    %102 = vector.broadcast %cst_33 : f32 to vector<8x32xf32>
    %103 = arith.addf %102, %101 : vector<8x32xf32>
    %104 = arith.divf %102, %103 : vector<8x32xf32>
    %105 = arith.addf %27, %91 : vector<8x32xf32>
    %106 = math.tanh %105 : vector<8x32xf32>
    %107 = arith.addf %28, %92 : vector<8x32xf32>
    %108 = arith.negf %107 : vector<8x32xf32>
    %109 = math.exp %108 : vector<8x32xf32>
    %cst_34 = arith.constant 1.000000e+00 : f32
    %110 = vector.broadcast %cst_34 : f32 to vector<8x32xf32>
    %111 = arith.addf %110, %109 : vector<8x32xf32>
    %112 = arith.divf %110, %111 : vector<8x32xf32>
    %113 = arith.mulf %104, %85 : vector<8x32xf32>
    %114 = arith.mulf %98, %106 : vector<8x32xf32>
    %115 = arith.addf %113, %114 : vector<8x32xf32>
    %116 = math.tanh %115 : vector<8x32xf32>
    %117 = arith.mulf %112, %116 : vector<8x32xf32>
    %c8_35 = arith.constant 8 : index
    %c0_36 = arith.constant 0 : index
    %118 = vector.load %arg5[%c8_35, %c0_36] : memref<64x32xf32, #tpu.memory_space<vmem>>, vector<8x32xf32>
    tpu.vector_store %arg5[%c8_35, %c0_36], %117 {strides = array<i32>} : memref<64x32xf32, #tpu.memory_space<vmem>>, vector<8x32xf32>,
    %cst_37 = arith.constant dense<0.000000e+00> : vector<8x32xf32>
    %119 = tpu.matmul %117, %53, %cst_37 {dimension_numbers = #tpu.dot_dimension_numbers<[1], [0], [0], [1], [0, 0, 1, 1], [], []>} : vector<8x32xf32>, vector<32x32xf32>, vector<8x32xf32> -> vector<8x32xf32>
    %cst_38 = arith.constant dense<0.000000e+00> : vector<8x32xf32>
    %120 = tpu.matmul %117, %54, %cst_38 {dimension_numbers = #tpu.dot_dimension_numbers<[1], [0], [0], [1], [0, 0, 1, 1], [], []>} : vector<8x32xf32>, vector<32x32xf32>, vector<8x32xf32> -> vector<8x32xf32>
    %cst_39 = arith.constant dense<0.000000e+00> : vector<8x32xf32>
    %121 = tpu.matmul %117, %55, %cst_39 {dimension_numbers = #tpu.dot_dimension_numbers<[1], [0], [0], [1], [0, 0, 1, 1], [], []>} : vector<8x32xf32>, vector<32x32xf32>, vector<8x32xf32> -> vector<8x32xf32>
    %cst_40 = arith.constant dense<0.000000e+00> : vector<8x32xf32>
    %122 = tpu.matmul %117, %56, %cst_40 {dimension_numbers = #tpu.dot_dimension_numbers<[1], [0], [0], [1], [0, 0, 1, 1], [], []>} : vector<8x32xf32>, vector<32x32xf32>, vector<8x32xf32> -> vector<8x32xf32>
    %123 = arith.addf %29, %119 : vector<8x32xf32>
    %124 = arith.negf %123 : vector<8x32xf32>
    %125 = math.exp %124 : vector<8x32xf32>
    %cst_41 = arith.constant 1.000000e+00 : f32
    %126 = vector.broadcast %cst_41 : f32 to vector<8x32xf32>
    %127 = arith.addf %126, %125 : vector<8x32xf32>
    %128 = arith.divf %126, %127 : vector<8x32xf32>
    %129 = arith.addf %30, %120 : vector<8x32xf32>
    %130 = arith.negf %129 : vector<8x32xf32>
    %131 = math.exp %130 : vector<8x32xf32>
    %cst_42 = arith.constant 1.000000e+00 : f32
    %132 = vector.broadcast %cst_42 : f32 to vector<8x32xf32>
    %133 = arith.addf %132, %131 : vector<8x32xf32>
    %134 = arith.divf %132, %133 : vector<8x32xf32>
    %135 = arith.addf %31, %121 : vector<8x32xf32>
    %136 = math.tanh %135 : vector<8x32xf32>
    %137 = arith.addf %32, %122 : vector<8x32xf32>
    %138 = arith.negf %137 : vector<8x32xf32>
    %139 = math.exp %138 : vector<8x32xf32>
    %cst_43 = arith.constant 1.000000e+00 : f32
    %140 = vector.broadcast %cst_43 : f32 to vector<8x32xf32>
    %141 = arith.addf %140, %139 : vector<8x32xf32>
    %142 = arith.divf %140, %141 : vector<8x32xf32>
    %143 = arith.mulf %134, %115 : vector<8x32xf32>
    %144 = arith.mulf %128, %136 : vector<8x32xf32>
    %145 = arith.addf %143, %144 : vector<8x32xf32>
    %146 = math.tanh %145 : vector<8x32xf32>
    %147 = arith.mulf %142, %146 : vector<8x32xf32>
    %c16 = arith.constant 16 : index
    %c0_44 = arith.constant 0 : index
    %148 = vector.load %arg5[%c16, %c0_44] : memref<64x32xf32, #tpu.memory_space<vmem>>, vector<8x32xf32>
    tpu.vector_store %arg5[%c16, %c0_44], %147 {strides = array<i32>} : memref<64x32xf32, #tpu.memory_space<vmem>>, vector<8x32xf32>,
    %cst_45 = arith.constant dense<0.000000e+00> : vector<8x32xf32>
    %149 = tpu.matmul %147, %53, %cst_45 {dimension_numbers = #tpu.dot_dimension_numbers<[1], [0], [0], [1], [0, 0, 1, 1], [], []>} : vector<8x32xf32>, vector<32x32xf32>, vector<8x32xf32> -> vector<8x32xf32>
    %cst_46 = arith.constant dense<0.000000e+00> : vector<8x32xf32>
    %150 = tpu.matmul %147, %54, %cst_46 {dimension_numbers = #tpu.dot_dimension_numbers<[1], [0], [0], [1], [0, 0, 1, 1], [], []>} : vector<8x32xf32>, vector<32x32xf32>, vector<8x32xf32> -> vector<8x32xf32>
    %cst_47 = arith.constant dense<0.000000e+00> : vector<8x32xf32>
    %151 = tpu.matmul %147, %55, %cst_47 {dimension_numbers = #tpu.dot_dimension_numbers<[1], [0], [0], [1], [0, 0, 1, 1], [], []>} : vector<8x32xf32>, vector<32x32xf32>, vector<8x32xf32> -> vector<8x32xf32>
    %cst_48 = arith.constant dense<0.000000e+00> : vector<8x32xf32>
    %152 = tpu.matmul %147, %56, %cst_48 {dimension_numbers = #tpu.dot_dimension_numbers<[1], [0], [0], [1], [0, 0, 1, 1], [], []>} : vector<8x32xf32>, vector<32x32xf32>, vector<8x32xf32> -> vector<8x32xf32>
    %153 = arith.addf %33, %149 : vector<8x32xf32>
    %154 = arith.negf %153 : vector<8x32xf32>
    %155 = math.exp %154 : vector<8x32xf32>
    %cst_49 = arith.constant 1.000000e+00 : f32
    %156 = vector.broadcast %cst_49 : f32 to vector<8x32xf32>
    %157 = arith.addf %156, %155 : vector<8x32xf32>
    %158 = arith.divf %156, %157 : vector<8x32xf32>
    %159 = arith.addf %34, %150 : vector<8x32xf32>
    %160 = arith.negf %159 : vector<8x32xf32>
    %161 = math.exp %160 : vector<8x32xf32>
    %cst_50 = arith.constant 1.000000e+00 : f32
    %162 = vector.broadcast %cst_50 : f32 to vector<8x32xf32>
    %163 = arith.addf %162, %161 : vector<8x32xf32>
    %164 = arith.divf %162, %163 : vector<8x32xf32>
    %165 = arith.addf %35, %151 : vector<8x32xf32>
    %166 = math.tanh %165 : vector<8x32xf32>
    %167 = arith.addf %36, %152 : vector<8x32xf32>
    %168 = arith.negf %167 : vector<8x32xf32>
    %169 = math.exp %168 : vector<8x32xf32>
    %cst_51 = arith.constant 1.000000e+00 : f32
    %170 = vector.broadcast %cst_51 : f32 to vector<8x32xf32>
    %171 = arith.addf %170, %169 : vector<8x32xf32>
    %172 = arith.divf %170, %171 : vector<8x32xf32>
    %173 = arith.mulf %164, %145 : vector<8x32xf32>
    %174 = arith.mulf %158, %166 : vector<8x32xf32>
    %175 = arith.addf %173, %174 : vector<8x32xf32>
    %176 = math.tanh %175 : vector<8x32xf32>
    %177 = arith.mulf %172, %176 : vector<8x32xf32>
    %c24 = arith.constant 24 : index
    %c0_52 = arith.constant 0 : index
    %178 = vector.load %arg5[%c24, %c0_52] : memref<64x32xf32, #tpu.memory_space<vmem>>, vector<8x32xf32>
    tpu.vector_store %arg5[%c24, %c0_52], %177 {strides = array<i32>} : memref<64x32xf32, #tpu.memory_space<vmem>>, vector<8x32xf32>,
    %cst_53 = arith.constant dense<0.000000e+00> : vector<8x32xf32>
    %179 = tpu.matmul %177, %53, %cst_53 {dimension_numbers = #tpu.dot_dimension_numbers<[1], [0], [0], [1], [0, 0, 1, 1], [], []>} : vector<8x32xf32>, vector<32x32xf32>, vector<8x32xf32> -> vector<8x32xf32>
    %cst_54 = arith.constant dense<0.000000e+00> : vector<8x32xf32>
    %180 = tpu.matmul %177, %54, %cst_54 {dimension_numbers = #tpu.dot_dimension_numbers<[1], [0], [0], [1], [0, 0, 1, 1], [], []>} : vector<8x32xf32>, vector<32x32xf32>, vector<8x32xf32> -> vector<8x32xf32>
    %cst_55 = arith.constant dense<0.000000e+00> : vector<8x32xf32>
    %181 = tpu.matmul %177, %55, %cst_55 {dimension_numbers = #tpu.dot_dimension_numbers<[1], [0], [0], [1], [0, 0, 1, 1], [], []>} : vector<8x32xf32>, vector<32x32xf32>, vector<8x32xf32> -> vector<8x32xf32>
    %cst_56 = arith.constant dense<0.000000e+00> : vector<8x32xf32>
    %182 = tpu.matmul %177, %56, %cst_56 {dimension_numbers = #tpu.dot_dimension_numbers<[1], [0], [0], [1], [0, 0, 1, 1], [], []>} : vector<8x32xf32>, vector<32x32xf32>, vector<8x32xf32> -> vector<8x32xf32>
    %183 = arith.addf %37, %179 : vector<8x32xf32>
    %184 = arith.negf %183 : vector<8x32xf32>
    %185 = math.exp %184 : vector<8x32xf32>
    %cst_57 = arith.constant 1.000000e+00 : f32
    %186 = vector.broadcast %cst_57 : f32 to vector<8x32xf32>
    %187 = arith.addf %186, %185 : vector<8x32xf32>
    %188 = arith.divf %186, %187 : vector<8x32xf32>
    %189 = arith.addf %38, %180 : vector<8x32xf32>
    %190 = arith.negf %189 : vector<8x32xf32>
    %191 = math.exp %190 : vector<8x32xf32>
    %cst_58 = arith.constant 1.000000e+00 : f32
    %192 = vector.broadcast %cst_58 : f32 to vector<8x32xf32>
    %193 = arith.addf %192, %191 : vector<8x32xf32>
    %194 = arith.divf %192, %193 : vector<8x32xf32>
    %195 = arith.addf %39, %181 : vector<8x32xf32>
    %196 = math.tanh %195 : vector<8x32xf32>
    %197 = arith.addf %40, %182 : vector<8x32xf32>
    %198 = arith.negf %197 : vector<8x32xf32>
    %199 = math.exp %198 : vector<8x32xf32>
    %cst_59 = arith.constant 1.000000e+00 : f32
    %200 = vector.broadcast %cst_59 : f32 to vector<8x32xf32>
    %201 = arith.addf %200, %199 : vector<8x32xf32>
    %202 = arith.divf %200, %201 : vector<8x32xf32>
    %203 = arith.mulf %194, %175 : vector<8x32xf32>
    %204 = arith.mulf %188, %196 : vector<8x32xf32>
    %205 = arith.addf %203, %204 : vector<8x32xf32>
    %206 = math.tanh %205 : vector<8x32xf32>
    %207 = arith.mulf %202, %206 : vector<8x32xf32>
    %c32 = arith.constant 32 : index
    %c0_60 = arith.constant 0 : index
    %208 = vector.load %arg5[%c32, %c0_60] : memref<64x32xf32, #tpu.memory_space<vmem>>, vector<8x32xf32>
    tpu.vector_store %arg5[%c32, %c0_60], %207 {strides = array<i32>} : memref<64x32xf32, #tpu.memory_space<vmem>>, vector<8x32xf32>,
    %cst_61 = arith.constant dense<0.000000e+00> : vector<8x32xf32>
    %209 = tpu.matmul %207, %53, %cst_61 {dimension_numbers = #tpu.dot_dimension_numbers<[1], [0], [0], [1], [0, 0, 1, 1], [], []>} : vector<8x32xf32>, vector<32x32xf32>, vector<8x32xf32> -> vector<8x32xf32>
    %cst_62 = arith.constant dense<0.000000e+00> : vector<8x32xf32>
    %210 = tpu.matmul %207, %54, %cst_62 {dimension_numbers = #tpu.dot_dimension_numbers<[1], [0], [0], [1], [0, 0, 1, 1], [], []>} : vector<8x32xf32>, vector<32x32xf32>, vector<8x32xf32> -> vector<8x32xf32>
    %cst_63 = arith.constant dense<0.000000e+00> : vector<8x32xf32>
    %211 = tpu.matmul %207, %55, %cst_63 {dimension_numbers = #tpu.dot_dimension_numbers<[1], [0], [0], [1], [0, 0, 1, 1], [], []>} : vector<8x32xf32>, vector<32x32xf32>, vector<8x32xf32> -> vector<8x32xf32>
    %cst_64 = arith.constant dense<0.000000e+00> : vector<8x32xf32>
    %212 = tpu.matmul %207, %56, %cst_64 {dimension_numbers = #tpu.dot_dimension_numbers<[1], [0], [0], [1], [0, 0, 1, 1], [], []>} : vector<8x32xf32>, vector<32x32xf32>, vector<8x32xf32> -> vector<8x32xf32>
    %213 = arith.addf %41, %209 : vector<8x32xf32>
    %214 = arith.negf %213 : vector<8x32xf32>
    %215 = math.exp %214 : vector<8x32xf32>
    %cst_65 = arith.constant 1.000000e+00 : f32
    %216 = vector.broadcast %cst_65 : f32 to vector<8x32xf32>
    %217 = arith.addf %216, %215 : vector<8x32xf32>
    %218 = arith.divf %216, %217 : vector<8x32xf32>
    %219 = arith.addf %42, %210 : vector<8x32xf32>
    %220 = arith.negf %219 : vector<8x32xf32>
    %221 = math.exp %220 : vector<8x32xf32>
    %cst_66 = arith.constant 1.000000e+00 : f32
    %222 = vector.broadcast %cst_66 : f32 to vector<8x32xf32>
    %223 = arith.addf %222, %221 : vector<8x32xf32>
    %224 = arith.divf %222, %223 : vector<8x32xf32>
    %225 = arith.addf %43, %211 : vector<8x32xf32>
    %226 = math.tanh %225 : vector<8x32xf32>
    %227 = arith.addf %44, %212 : vector<8x32xf32>
    %228 = arith.negf %227 : vector<8x32xf32>
    %229 = math.exp %228 : vector<8x32xf32>
    %cst_67 = arith.constant 1.000000e+00 : f32
    %230 = vector.broadcast %cst_67 : f32 to vector<8x32xf32>
    %231 = arith.addf %230, %229 : vector<8x32xf32>
    %232 = arith.divf %230, %231 : vector<8x32xf32>
    %233 = arith.mulf %224, %205 : vector<8x32xf32>
    %234 = arith.mulf %218, %226 : vector<8x32xf32>
    %235 = arith.addf %233, %234 : vector<8x32xf32>
    %236 = math.tanh %235 : vector<8x32xf32>
    %237 = arith.mulf %232, %236 : vector<8x32xf32>
    %c40_68 = arith.constant 40 : index
    %c0_69 = arith.constant 0 : index
    %238 = vector.load %arg5[%c40_68, %c0_69] : memref<64x32xf32, #tpu.memory_space<vmem>>, vector<8x32xf32>
    tpu.vector_store %arg5[%c40_68, %c0_69], %237 {strides = array<i32>} : memref<64x32xf32, #tpu.memory_space<vmem>>, vector<8x32xf32>,
    %cst_70 = arith.constant dense<0.000000e+00> : vector<8x32xf32>
    %239 = tpu.matmul %237, %53, %cst_70 {dimension_numbers = #tpu.dot_dimension_numbers<[1], [0], [0], [1], [0, 0, 1, 1], [], []>} : vector<8x32xf32>, vector<32x32xf32>, vector<8x32xf32> -> vector<8x32xf32>
    %cst_71 = arith.constant dense<0.000000e+00> : vector<8x32xf32>
    %240 = tpu.matmul %237, %54, %cst_71 {dimension_numbers = #tpu.dot_dimension_numbers<[1], [0], [0], [1], [0, 0, 1, 1], [], []>} : vector<8x32xf32>, vector<32x32xf32>, vector<8x32xf32> -> vector<8x32xf32>
    %cst_72 = arith.constant dense<0.000000e+00> : vector<8x32xf32>
    %241 = tpu.matmul %237, %55, %cst_72 {dimension_numbers = #tpu.dot_dimension_numbers<[1], [0], [0], [1], [0, 0, 1, 1], [], []>} : vector<8x32xf32>, vector<32x32xf32>, vector<8x32xf32> -> vector<8x32xf32>
    %cst_73 = arith.constant dense<0.000000e+00> : vector<8x32xf32>
    %242 = tpu.matmul %237, %56, %cst_73 {dimension_numbers = #tpu.dot_dimension_numbers<[1], [0], [0], [1], [0, 0, 1, 1], [], []>} : vector<8x32xf32>, vector<32x32xf32>, vector<8x32xf32> -> vector<8x32xf32>
    %243 = arith.addf %45, %239 : vector<8x32xf32>
    %244 = arith.negf %243 : vector<8x32xf32>
    %245 = math.exp %244 : vector<8x32xf32>
    %cst_74 = arith.constant 1.000000e+00 : f32
    %246 = vector.broadcast %cst_74 : f32 to vector<8x32xf32>
    %247 = arith.addf %246, %245 : vector<8x32xf32>
    %248 = arith.divf %246, %247 : vector<8x32xf32>
    %249 = arith.addf %46, %240 : vector<8x32xf32>
    %250 = arith.negf %249 : vector<8x32xf32>
    %251 = math.exp %250 : vector<8x32xf32>
    %cst_75 = arith.constant 1.000000e+00 : f32
    %252 = vector.broadcast %cst_75 : f32 to vector<8x32xf32>
    %253 = arith.addf %252, %251 : vector<8x32xf32>
    %254 = arith.divf %252, %253 : vector<8x32xf32>
    %255 = arith.addf %47, %241 : vector<8x32xf32>
    %256 = math.tanh %255 : vector<8x32xf32>
    %257 = arith.addf %48, %242 : vector<8x32xf32>
    %258 = arith.negf %257 : vector<8x32xf32>
    %259 = math.exp %258 : vector<8x32xf32>
    %cst_76 = arith.constant 1.000000e+00 : f32
    %260 = vector.broadcast %cst_76 : f32 to vector<8x32xf32>
    %261 = arith.addf %260, %259 : vector<8x32xf32>
    %262 = arith.divf %260, %261 : vector<8x32xf32>
    %263 = arith.mulf %254, %235 : vector<8x32xf32>
    %264 = arith.mulf %248, %256 : vector<8x32xf32>
    %265 = arith.addf %263, %264 : vector<8x32xf32>
    %266 = math.tanh %265 : vector<8x32xf32>
    %267 = arith.mulf %262, %266 : vector<8x32xf32>
    %c48_77 = arith.constant 48 : index
    %c0_78 = arith.constant 0 : index
    %268 = vector.load %arg5[%c48_77, %c0_78] : memref<64x32xf32, #tpu.memory_space<vmem>>, vector<8x32xf32>
    tpu.vector_store %arg5[%c48_77, %c0_78], %267 {strides = array<i32>} : memref<64x32xf32, #tpu.memory_space<vmem>>, vector<8x32xf32>,
    %cst_79 = arith.constant dense<0.000000e+00> : vector<8x32xf32>
    %269 = tpu.matmul %267, %53, %cst_79 {dimension_numbers = #tpu.dot_dimension_numbers<[1], [0], [0], [1], [0, 0, 1, 1], [], []>} : vector<8x32xf32>, vector<32x32xf32>, vector<8x32xf32> -> vector<8x32xf32>
    %cst_80 = arith.constant dense<0.000000e+00> : vector<8x32xf32>
    %270 = tpu.matmul %267, %54, %cst_80 {dimension_numbers = #tpu.dot_dimension_numbers<[1], [0], [0], [1], [0, 0, 1, 1], [], []>} : vector<8x32xf32>, vector<32x32xf32>, vector<8x32xf32> -> vector<8x32xf32>
    %cst_81 = arith.constant dense<0.000000e+00> : vector<8x32xf32>
    %271 = tpu.matmul %267, %55, %cst_81 {dimension_numbers = #tpu.dot_dimension_numbers<[1], [0], [0], [1], [0, 0, 1, 1], [], []>} : vector<8x32xf32>, vector<32x32xf32>, vector<8x32xf32> -> vector<8x32xf32>
    %cst_82 = arith.constant dense<0.000000e+00> : vector<8x32xf32>
    %272 = tpu.matmul %267, %56, %cst_82 {dimension_numbers = #tpu.dot_dimension_numbers<[1], [0], [0], [1], [0, 0, 1, 1], [], []>} : vector<8x32xf32>, vector<32x32xf32>, vector<8x32xf32> -> vector<8x32xf32>
    %273 = arith.addf %49, %269 : vector<8x32xf32>
    %274 = arith.negf %273 : vector<8x32xf32>
    %275 = math.exp %274 : vector<8x32xf32>
    %cst_83 = arith.constant 1.000000e+00 : f32
    %276 = vector.broadcast %cst_83 : f32 to vector<8x32xf32>
    %277 = arith.addf %276, %275 : vector<8x32xf32>
    %278 = arith.divf %276, %277 : vector<8x32xf32>
    %279 = arith.addf %50, %270 : vector<8x32xf32>
    %280 = arith.negf %279 : vector<8x32xf32>
    %281 = math.exp %280 : vector<8x32xf32>
    %cst_84 = arith.constant 1.000000e+00 : f32
    %282 = vector.broadcast %cst_84 : f32 to vector<8x32xf32>
    %283 = arith.addf %282, %281 : vector<8x32xf32>
    %284 = arith.divf %282, %283 : vector<8x32xf32>
    %285 = arith.addf %51, %271 : vector<8x32xf32>
    %286 = math.tanh %285 : vector<8x32xf32>
    %287 = arith.addf %52, %272 : vector<8x32xf32>
    %288 = arith.negf %287 : vector<8x32xf32>
    %289 = math.exp %288 : vector<8x32xf32>
    %cst_85 = arith.constant 1.000000e+00 : f32
    %290 = vector.broadcast %cst_85 : f32 to vector<8x32xf32>
    %291 = arith.addf %290, %289 : vector<8x32xf32>
    %292 = arith.divf %290, %291 : vector<8x32xf32>
    %293 = arith.mulf %284, %265 : vector<8x32xf32>
    %294 = arith.mulf %278, %286 : vector<8x32xf32>
    %295 = arith.addf %293, %294 : vector<8x32xf32>
    %296 = math.tanh %295 : vector<8x32xf32>
    %297 = arith.mulf %292, %296 : vector<8x32xf32>
    %c56 = arith.constant 56 : index
    %c0_86 = arith.constant 0 : index
    %298 = vector.load %arg5[%c56, %c0_86] : memref<64x32xf32, #tpu.memory_space<vmem>>, vector<8x32xf32>
    tpu.vector_store %arg5[%c56, %c0_86], %297 {strides = array<i32>} : memref<64x32xf32, #tpu.memory_space<vmem>>, vector<8x32xf32>,
    %c0_87 = arith.constant 0 : index
    %c0_88 = arith.constant 0 : index
    %299 = vector.load %arg5[%c0_87, %c0_88] : memref<64x32xf32, #tpu.memory_space<vmem>>, vector<64x32xf32>
    %c168 = arith.constant 168 : index
    %c0_89 = arith.constant 0 : index
    %300 = vector.load %arg3[%c168, %c0_89] : memref<1384x128xf32, #tpu.memory_space<vmem>>, vector<32x32xf32>
    %cst_90 = arith.constant dense<0.000000e+00> : vector<64x32xf32>
    %301 = tpu.matmul %299, %300, %cst_90 {dimension_numbers = #tpu.dot_dimension_numbers<[1], [0], [0], [1], [0, 0, 1, 1], [], []>} : vector<64x32xf32>, vector<32x32xf32>, vector<64x32xf32> -> vector<64x32xf32>
    %c424 = arith.constant 424 : index
    %c0_91 = arith.constant 0 : index
    %302 = vector.load %arg3[%c424, %c0_91] : memref<1384x128xf32, #tpu.memory_space<vmem>>, vector<1x32xf32>
    %303 = vector.broadcast %302 : vector<1x32xf32> to vector<64x32xf32>
    %304 = arith.addf %301, %303 : vector<64x32xf32>
    %c232 = arith.constant 232 : index
    %c0_92 = arith.constant 0 : index
    %305 = vector.load %arg3[%c232, %c0_92] : memref<1384x128xf32, #tpu.memory_space<vmem>>, vector<32x32xf32>
    %cst_93 = arith.constant dense<0.000000e+00> : vector<64x32xf32>
    %306 = tpu.matmul %299, %305, %cst_93 {dimension_numbers = #tpu.dot_dimension_numbers<[1], [0], [0], [1], [0, 0, 1, 1], [], []>} : vector<64x32xf32>, vector<32x32xf32>, vector<64x32xf32> -> vector<64x32xf32>
    %c425 = arith.constant 425 : index
    %c0_94 = arith.constant 0 : index
    %307 = vector.load %arg3[%c425, %c0_94] : memref<1384x128xf32, #tpu.memory_space<vmem>>, vector<1x32xf32>
    %308 = vector.broadcast %307 : vector<1x32xf32> to vector<64x32xf32>
    %309 = arith.addf %306, %308 : vector<64x32xf32>
    %c296 = arith.constant 296 : index
    %c0_95 = arith.constant 0 : index
    %310 = vector.load %arg3[%c296, %c0_95] : memref<1384x128xf32, #tpu.memory_space<vmem>>, vector<32x32xf32>
    %cst_96 = arith.constant dense<0.000000e+00> : vector<64x32xf32>
    %311 = tpu.matmul %299, %310, %cst_96 {dimension_numbers = #tpu.dot_dimension_numbers<[1], [0], [0], [1], [0, 0, 1, 1], [], []>} : vector<64x32xf32>, vector<32x32xf32>, vector<64x32xf32> -> vector<64x32xf32>
    %c426 = arith.constant 426 : index
    %c0_97 = arith.constant 0 : index
    %312 = vector.load %arg3[%c426, %c0_97] : memref<1384x128xf32, #tpu.memory_space<vmem>>, vector<1x32xf32>
    %313 = vector.broadcast %312 : vector<1x32xf32> to vector<64x32xf32>
    %314 = arith.addf %311, %313 : vector<64x32xf32>
    %c360 = arith.constant 360 : index
    %c0_98 = arith.constant 0 : index
    %315 = vector.load %arg3[%c360, %c0_98] : memref<1384x128xf32, #tpu.memory_space<vmem>>, vector<32x32xf32>
    %cst_99 = arith.constant dense<0.000000e+00> : vector<64x32xf32>
    %316 = tpu.matmul %299, %315, %cst_99 {dimension_numbers = #tpu.dot_dimension_numbers<[1], [0], [0], [1], [0, 0, 1, 1], [], []>} : vector<64x32xf32>, vector<32x32xf32>, vector<64x32xf32> -> vector<64x32xf32>
    %c427 = arith.constant 427 : index
    %c0_100 = arith.constant 0 : index
    %317 = vector.load %arg3[%c427, %c0_100] : memref<1384x128xf32, #tpu.memory_space<vmem>>, vector<1x32xf32>
    %318 = vector.broadcast %317 : vector<1x32xf32> to vector<64x32xf32>
    %319 = arith.addf %316, %318 : vector<64x32xf32>
    %320 = vector.extract_strided_slice %304 {offsets = [0, 0], sizes = [8, 32], strides = [1, 1]} : vector<64x32xf32> to vector<8x32xf32>
    %321 = vector.extract_strided_slice %309 {offsets = [0, 0], sizes = [8, 32], strides = [1, 1]} : vector<64x32xf32> to vector<8x32xf32>
    %322 = vector.extract_strided_slice %314 {offsets = [0, 0], sizes = [8, 32], strides = [1, 1]} : vector<64x32xf32> to vector<8x32xf32>
    %323 = vector.extract_strided_slice %319 {offsets = [0, 0], sizes = [8, 32], strides = [1, 1]} : vector<64x32xf32> to vector<8x32xf32>
    %324 = vector.extract_strided_slice %304 {offsets = [8, 0], sizes = [8, 32], strides = [1, 1]} : vector<64x32xf32> to vector<8x32xf32>
    %325 = vector.extract_strided_slice %309 {offsets = [8, 0], sizes = [8, 32], strides = [1, 1]} : vector<64x32xf32> to vector<8x32xf32>
    %326 = vector.extract_strided_slice %314 {offsets = [8, 0], sizes = [8, 32], strides = [1, 1]} : vector<64x32xf32> to vector<8x32xf32>
    %327 = vector.extract_strided_slice %319 {offsets = [8, 0], sizes = [8, 32], strides = [1, 1]} : vector<64x32xf32> to vector<8x32xf32>
    %328 = vector.extract_strided_slice %304 {offsets = [16, 0], sizes = [8, 32], strides = [1, 1]} : vector<64x32xf32> to vector<8x32xf32>
    %329 = vector.extract_strided_slice %309 {offsets = [16, 0], sizes = [8, 32], strides = [1, 1]} : vector<64x32xf32> to vector<8x32xf32>
    %330 = vector.extract_strided_slice %314 {offsets = [16, 0], sizes = [8, 32], strides = [1, 1]} : vector<64x32xf32> to vector<8x32xf32>
    %331 = vector.extract_strided_slice %319 {offsets = [16, 0], sizes = [8, 32], strides = [1, 1]} : vector<64x32xf32> to vector<8x32xf32>
    %332 = vector.extract_strided_slice %304 {offsets = [24, 0], sizes = [8, 32], strides = [1, 1]} : vector<64x32xf32> to vector<8x32xf32>
    %333 = vector.extract_strided_slice %309 {offsets = [24, 0], sizes = [8, 32], strides = [1, 1]} : vector<64x32xf32> to vector<8x32xf32>
    %334 = vector.extract_strided_slice %314 {offsets = [24, 0], sizes = [8, 32], strides = [1, 1]} : vector<64x32xf32> to vector<8x32xf32>
    %335 = vector.extract_strided_slice %319 {offsets = [24, 0], sizes = [8, 32], strides = [1, 1]} : vector<64x32xf32> to vector<8x32xf32>
    %336 = vector.extract_strided_slice %304 {offsets = [32, 0], sizes = [8, 32], strides = [1, 1]} : vector<64x32xf32> to vector<8x32xf32>
    %337 = vector.extract_strided_slice %309 {offsets = [32, 0], sizes = [8, 32], strides = [1, 1]} : vector<64x32xf32> to vector<8x32xf32>
    %338 = vector.extract_strided_slice %314 {offsets = [32, 0], sizes = [8, 32], strides = [1, 1]} : vector<64x32xf32> to vector<8x32xf32>
    %339 = vector.extract_strided_slice %319 {offsets = [32, 0], sizes = [8, 32], strides = [1, 1]} : vector<64x32xf32> to vector<8x32xf32>
    %340 = vector.extract_strided_slice %304 {offsets = [40, 0], sizes = [8, 32], strides = [1, 1]} : vector<64x32xf32> to vector<8x32xf32>
    %341 = vector.extract_strided_slice %309 {offsets = [40, 0], sizes = [8, 32], strides = [1, 1]} : vector<64x32xf32> to vector<8x32xf32>
    %342 = vector.extract_strided_slice %314 {offsets = [40, 0], sizes = [8, 32], strides = [1, 1]} : vector<64x32xf32> to vector<8x32xf32>
    %343 = vector.extract_strided_slice %319 {offsets = [40, 0], sizes = [8, 32], strides = [1, 1]} : vector<64x32xf32> to vector<8x32xf32>
    %344 = vector.extract_strided_slice %304 {offsets = [48, 0], sizes = [8, 32], strides = [1, 1]} : vector<64x32xf32> to vector<8x32xf32>
    %345 = vector.extract_strided_slice %309 {offsets = [48, 0], sizes = [8, 32], strides = [1, 1]} : vector<64x32xf32> to vector<8x32xf32>
    %346 = vector.extract_strided_slice %314 {offsets = [48, 0], sizes = [8, 32], strides = [1, 1]} : vector<64x32xf32> to vector<8x32xf32>
    %347 = vector.extract_strided_slice %319 {offsets = [48, 0], sizes = [8, 32], strides = [1, 1]} : vector<64x32xf32> to vector<8x32xf32>
    %348 = vector.extract_strided_slice %304 {offsets = [56, 0], sizes = [8, 32], strides = [1, 1]} : vector<64x32xf32> to vector<8x32xf32>
    %349 = vector.extract_strided_slice %309 {offsets = [56, 0], sizes = [8, 32], strides = [1, 1]} : vector<64x32xf32> to vector<8x32xf32>
    %350 = vector.extract_strided_slice %314 {offsets = [56, 0], sizes = [8, 32], strides = [1, 1]} : vector<64x32xf32> to vector<8x32xf32>
    %351 = vector.extract_strided_slice %319 {offsets = [56, 0], sizes = [8, 32], strides = [1, 1]} : vector<64x32xf32> to vector<8x32xf32>
    %c200 = arith.constant 200 : index
    %c0_101 = arith.constant 0 : index
    %352 = vector.load %arg3[%c200, %c0_101] : memref<1384x128xf32, #tpu.memory_space<vmem>>, vector<32x32xf32>
    %c264 = arith.constant 264 : index
    %c0_102 = arith.constant 0 : index
    %353 = vector.load %arg3[%c264, %c0_102] : memref<1384x128xf32, #tpu.memory_space<vmem>>, vector<32x32xf32>
    %c328 = arith.constant 328 : index
    %c0_103 = arith.constant 0 : index
    %354 = vector.load %arg3[%c328, %c0_103] : memref<1384x128xf32, #tpu.memory_space<vmem>>, vector<32x32xf32>
    %c392 = arith.constant 392 : index
    %c0_104 = arith.constant 0 : index
    %355 = vector.load %arg3[%c392, %c0_104] : memref<1384x128xf32, #tpu.memory_space<vmem>>, vector<32x32xf32>
    %cst_105 = arith.constant 0.000000e+00 : f32
    %356 = vector.broadcast %cst_105 : f32 to vector<8x32xf32>
    %cst_106 = arith.constant 0.000000e+00 : f32
    %357 = vector.broadcast %cst_106 : f32 to vector<8x32xf32>
    %cst_107 = arith.constant dense<0.000000e+00> : vector<8x32xf32>
    %358 = tpu.matmul %356, %352, %cst_107 {dimension_numbers = #tpu.dot_dimension_numbers<[1], [0], [0], [1], [0, 0, 1, 1], [], []>} : vector<8x32xf32>, vector<32x32xf32>, vector<8x32xf32> -> vector<8x32xf32>
    %cst_108 = arith.constant dense<0.000000e+00> : vector<8x32xf32>
    %359 = tpu.matmul %356, %353, %cst_108 {dimension_numbers = #tpu.dot_dimension_numbers<[1], [0], [0], [1], [0, 0, 1, 1], [], []>} : vector<8x32xf32>, vector<32x32xf32>, vector<8x32xf32> -> vector<8x32xf32>
    %cst_109 = arith.constant dense<0.000000e+00> : vector<8x32xf32>
    %360 = tpu.matmul %356, %354, %cst_109 {dimension_numbers = #tpu.dot_dimension_numbers<[1], [0], [0], [1], [0, 0, 1, 1], [], []>} : vector<8x32xf32>, vector<32x32xf32>, vector<8x32xf32> -> vector<8x32xf32>
    %cst_110 = arith.constant dense<0.000000e+00> : vector<8x32xf32>
    %361 = tpu.matmul %356, %355, %cst_110 {dimension_numbers = #tpu.dot_dimension_numbers<[1], [0], [0], [1], [0, 0, 1, 1], [], []>} : vector<8x32xf32>, vector<32x32xf32>, vector<8x32xf32> -> vector<8x32xf32>
    %362 = arith.addf %320, %358 : vector<8x32xf32>
    %363 = arith.negf %362 : vector<8x32xf32>
    %364 = math.exp %363 : vector<8x32xf32>
    %cst_111 = arith.constant 1.000000e+00 : f32
    %365 = vector.broadcast %cst_111 : f32 to vector<8x32xf32>
    %366 = arith.addf %365, %364 : vector<8x32xf32>
    %367 = arith.divf %365, %366 : vector<8x32xf32>
    %368 = arith.addf %321, %359 : vector<8x32xf32>
    %369 = arith.negf %368 : vector<8x32xf32>
    %370 = math.exp %369 : vector<8x32xf32>
    %cst_112 = arith.constant 1.000000e+00 : f32
    %371 = vector.broadcast %cst_112 : f32 to vector<8x32xf32>
    %372 = arith.addf %371, %370 : vector<8x32xf32>
    %373 = arith.divf %371, %372 : vector<8x32xf32>
    %374 = arith.addf %322, %360 : vector<8x32xf32>
    %375 = math.tanh %374 : vector<8x32xf32>
    %376 = arith.addf %323, %361 : vector<8x32xf32>
    %377 = arith.negf %376 : vector<8x32xf32>
    %378 = math.exp %377 : vector<8x32xf32>
    %cst_113 = arith.constant 1.000000e+00 : f32
    %379 = vector.broadcast %cst_113 : f32 to vector<8x32xf32>
    %380 = arith.addf %379, %378 : vector<8x32xf32>
    %381 = arith.divf %379, %380 : vector<8x32xf32>
    %382 = arith.mulf %373, %357 : vector<8x32xf32>
    %383 = arith.mulf %367, %375 : vector<8x32xf32>
    %384 = arith.addf %382, %383 : vector<8x32xf32>
    %385 = math.tanh %384 : vector<8x32xf32>
    %386 = arith.mulf %381, %385 : vector<8x32xf32>
    %cst_114 = arith.constant dense<0.000000e+00> : vector<8x32xf32>
    %387 = tpu.matmul %386, %352, %cst_114 {dimension_numbers = #tpu.dot_dimension_numbers<[1], [0], [0], [1], [0, 0, 1, 1], [], []>} : vector<8x32xf32>, vector<32x32xf32>, vector<8x32xf32> -> vector<8x32xf32>
    %cst_115 = arith.constant dense<0.000000e+00> : vector<8x32xf32>
    %388 = tpu.matmul %386, %353, %cst_115 {dimension_numbers = #tpu.dot_dimension_numbers<[1], [0], [0], [1], [0, 0, 1, 1], [], []>} : vector<8x32xf32>, vector<32x32xf32>, vector<8x32xf32> -> vector<8x32xf32>
    %cst_116 = arith.constant dense<0.000000e+00> : vector<8x32xf32>
    %389 = tpu.matmul %386, %354, %cst_116 {dimension_numbers = #tpu.dot_dimension_numbers<[1], [0], [0], [1], [0, 0, 1, 1], [], []>} : vector<8x32xf32>, vector<32x32xf32>, vector<8x32xf32> -> vector<8x32xf32>
    %cst_117 = arith.constant dense<0.000000e+00> : vector<8x32xf32>
    %390 = tpu.matmul %386, %355, %cst_117 {dimension_numbers = #tpu.dot_dimension_numbers<[1], [0], [0], [1], [0, 0, 1, 1], [], []>} : vector<8x32xf32>, vector<32x32xf32>, vector<8x32xf32> -> vector<8x32xf32>
    %391 = arith.addf %324, %387 : vector<8x32xf32>
    %392 = arith.negf %391 : vector<8x32xf32>
    %393 = math.exp %392 : vector<8x32xf32>
    %cst_118 = arith.constant 1.000000e+00 : f32
    %394 = vector.broadcast %cst_118 : f32 to vector<8x32xf32>
    %395 = arith.addf %394, %393 : vector<8x32xf32>
    %396 = arith.divf %394, %395 : vector<8x32xf32>
    %397 = arith.addf %325, %388 : vector<8x32xf32>
    %398 = arith.negf %397 : vector<8x32xf32>
    %399 = math.exp %398 : vector<8x32xf32>
    %cst_119 = arith.constant 1.000000e+00 : f32
    %400 = vector.broadcast %cst_119 : f32 to vector<8x32xf32>
    %401 = arith.addf %400, %399 : vector<8x32xf32>
    %402 = arith.divf %400, %401 : vector<8x32xf32>
    %403 = arith.addf %326, %389 : vector<8x32xf32>
    %404 = math.tanh %403 : vector<8x32xf32>
    %405 = arith.addf %327, %390 : vector<8x32xf32>
    %406 = arith.negf %405 : vector<8x32xf32>
    %407 = math.exp %406 : vector<8x32xf32>
    %cst_120 = arith.constant 1.000000e+00 : f32
    %408 = vector.broadcast %cst_120 : f32 to vector<8x32xf32>
    %409 = arith.addf %408, %407 : vector<8x32xf32>
    %410 = arith.divf %408, %409 : vector<8x32xf32>
    %411 = arith.mulf %402, %384 : vector<8x32xf32>
    %412 = arith.mulf %396, %404 : vector<8x32xf32>
    %413 = arith.addf %411, %412 : vector<8x32xf32>
    %414 = math.tanh %413 : vector<8x32xf32>
    %415 = arith.mulf %410, %414 : vector<8x32xf32>
    %cst_121 = arith.constant dense<0.000000e+00> : vector<8x32xf32>
    %416 = tpu.matmul %415, %352, %cst_121 {dimension_numbers = #tpu.dot_dimension_numbers<[1], [0], [0], [1], [0, 0, 1, 1], [], []>} : vector<8x32xf32>, vector<32x32xf32>, vector<8x32xf32> -> vector<8x32xf32>
    %cst_122 = arith.constant dense<0.000000e+00> : vector<8x32xf32>
    %417 = tpu.matmul %415, %353, %cst_122 {dimension_numbers = #tpu.dot_dimension_numbers<[1], [0], [0], [1], [0, 0, 1, 1], [], []>} : vector<8x32xf32>, vector<32x32xf32>, vector<8x32xf32> -> vector<8x32xf32>
    %cst_123 = arith.constant dense<0.000000e+00> : vector<8x32xf32>
    %418 = tpu.matmul %415, %354, %cst_123 {dimension_numbers = #tpu.dot_dimension_numbers<[1], [0], [0], [1], [0, 0, 1, 1], [], []>} : vector<8x32xf32>, vector<32x32xf32>, vector<8x32xf32> -> vector<8x32xf32>
    %cst_124 = arith.constant dense<0.000000e+00> : vector<8x32xf32>
    %419 = tpu.matmul %415, %355, %cst_124 {dimension_numbers = #tpu.dot_dimension_numbers<[1], [0], [0], [1], [0, 0, 1, 1], [], []>} : vector<8x32xf32>, vector<32x32xf32>, vector<8x32xf32> -> vector<8x32xf32>
    %420 = arith.addf %328, %416 : vector<8x32xf32>
    %421 = arith.negf %420 : vector<8x32xf32>
    %422 = math.exp %421 : vector<8x32xf32>
    %cst_125 = arith.constant 1.000000e+00 : f32
    %423 = vector.broadcast %cst_125 : f32 to vector<8x32xf32>
    %424 = arith.addf %423, %422 : vector<8x32xf32>
    %425 = arith.divf %423, %424 : vector<8x32xf32>
    %426 = arith.addf %329, %417 : vector<8x32xf32>
    %427 = arith.negf %426 : vector<8x32xf32>
    %428 = math.exp %427 : vector<8x32xf32>
    %cst_126 = arith.constant 1.000000e+00 : f32
    %429 = vector.broadcast %cst_126 : f32 to vector<8x32xf32>
    %430 = arith.addf %429, %428 : vector<8x32xf32>
    %431 = arith.divf %429, %430 : vector<8x32xf32>
    %432 = arith.addf %330, %418 : vector<8x32xf32>
    %433 = math.tanh %432 : vector<8x32xf32>
    %434 = arith.addf %331, %419 : vector<8x32xf32>
    %435 = arith.negf %434 : vector<8x32xf32>
    %436 = math.exp %435 : vector<8x32xf32>
    %cst_127 = arith.constant 1.000000e+00 : f32
    %437 = vector.broadcast %cst_127 : f32 to vector<8x32xf32>
    %438 = arith.addf %437, %436 : vector<8x32xf32>
    %439 = arith.divf %437, %438 : vector<8x32xf32>
    %440 = arith.mulf %431, %413 : vector<8x32xf32>
    %441 = arith.mulf %425, %433 : vector<8x32xf32>
    %442 = arith.addf %440, %441 : vector<8x32xf32>
    %443 = math.tanh %442 : vector<8x32xf32>
    %444 = arith.mulf %439, %443 : vector<8x32xf32>
    %cst_128 = arith.constant dense<0.000000e+00> : vector<8x32xf32>
    %445 = tpu.matmul %444, %352, %cst_128 {dimension_numbers = #tpu.dot_dimension_numbers<[1], [0], [0], [1], [0, 0, 1, 1], [], []>} : vector<8x32xf32>, vector<32x32xf32>, vector<8x32xf32> -> vector<8x32xf32>
    %cst_129 = arith.constant dense<0.000000e+00> : vector<8x32xf32>
    %446 = tpu.matmul %444, %353, %cst_129 {dimension_numbers = #tpu.dot_dimension_numbers<[1], [0], [0], [1], [0, 0, 1, 1], [], []>} : vector<8x32xf32>, vector<32x32xf32>, vector<8x32xf32> -> vector<8x32xf32>
    %cst_130 = arith.constant dense<0.000000e+00> : vector<8x32xf32>
    %447 = tpu.matmul %444, %354, %cst_130 {dimension_numbers = #tpu.dot_dimension_numbers<[1], [0], [0], [1], [0, 0, 1, 1], [], []>} : vector<8x32xf32>, vector<32x32xf32>, vector<8x32xf32> -> vector<8x32xf32>
    %cst_131 = arith.constant dense<0.000000e+00> : vector<8x32xf32>
    %448 = tpu.matmul %444, %355, %cst_131 {dimension_numbers = #tpu.dot_dimension_numbers<[1], [0], [0], [1], [0, 0, 1, 1], [], []>} : vector<8x32xf32>, vector<32x32xf32>, vector<8x32xf32> -> vector<8x32xf32>
    %449 = arith.addf %332, %445 : vector<8x32xf32>
    %450 = arith.negf %449 : vector<8x32xf32>
    %451 = math.exp %450 : vector<8x32xf32>
    %cst_132 = arith.constant 1.000000e+00 : f32
    %452 = vector.broadcast %cst_132 : f32 to vector<8x32xf32>
    %453 = arith.addf %452, %451 : vector<8x32xf32>
    %454 = arith.divf %452, %453 : vector<8x32xf32>
    %455 = arith.addf %333, %446 : vector<8x32xf32>
    %456 = arith.negf %455 : vector<8x32xf32>
    %457 = math.exp %456 : vector<8x32xf32>
    %cst_133 = arith.constant 1.000000e+00 : f32
    %458 = vector.broadcast %cst_133 : f32 to vector<8x32xf32>
    %459 = arith.addf %458, %457 : vector<8x32xf32>
    %460 = arith.divf %458, %459 : vector<8x32xf32>
    %461 = arith.addf %334, %447 : vector<8x32xf32>
    %462 = math.tanh %461 : vector<8x32xf32>
    %463 = arith.addf %335, %448 : vector<8x32xf32>
    %464 = arith.negf %463 : vector<8x32xf32>
    %465 = math.exp %464 : vector<8x32xf32>
    %cst_134 = arith.constant 1.000000e+00 : f32
    %466 = vector.broadcast %cst_134 : f32 to vector<8x32xf32>
    %467 = arith.addf %466, %465 : vector<8x32xf32>
    %468 = arith.divf %466, %467 : vector<8x32xf32>
    %469 = arith.mulf %460, %442 : vector<8x32xf32>
    %470 = arith.mulf %454, %462 : vector<8x32xf32>
    %471 = arith.addf %469, %470 : vector<8x32xf32>
    %472 = math.tanh %471 : vector<8x32xf32>
    %473 = arith.mulf %468, %472 : vector<8x32xf32>
    %cst_135 = arith.constant dense<0.000000e+00> : vector<8x32xf32>
    %474 = tpu.matmul %473, %352, %cst_135 {dimension_numbers = #tpu.dot_dimension_numbers<[1], [0], [0], [1], [0, 0, 1, 1], [], []>} : vector<8x32xf32>, vector<32x32xf32>, vector<8x32xf32> -> vector<8x32xf32>
    %cst_136 = arith.constant dense<0.000000e+00> : vector<8x32xf32>
    %475 = tpu.matmul %473, %353, %cst_136 {dimension_numbers = #tpu.dot_dimension_numbers<[1], [0], [0], [1], [0, 0, 1, 1], [], []>} : vector<8x32xf32>, vector<32x32xf32>, vector<8x32xf32> -> vector<8x32xf32>
    %cst_137 = arith.constant dense<0.000000e+00> : vector<8x32xf32>
    %476 = tpu.matmul %473, %354, %cst_137 {dimension_numbers = #tpu.dot_dimension_numbers<[1], [0], [0], [1], [0, 0, 1, 1], [], []>} : vector<8x32xf32>, vector<32x32xf32>, vector<8x32xf32> -> vector<8x32xf32>
    %cst_138 = arith.constant dense<0.000000e+00> : vector<8x32xf32>
    %477 = tpu.matmul %473, %355, %cst_138 {dimension_numbers = #tpu.dot_dimension_numbers<[1], [0], [0], [1], [0, 0, 1, 1], [], []>} : vector<8x32xf32>, vector<32x32xf32>, vector<8x32xf32> -> vector<8x32xf32>
    %478 = arith.addf %336, %474 : vector<8x32xf32>
    %479 = arith.negf %478 : vector<8x32xf32>
    %480 = math.exp %479 : vector<8x32xf32>
    %cst_139 = arith.constant 1.000000e+00 : f32
    %481 = vector.broadcast %cst_139 : f32 to vector<8x32xf32>
    %482 = arith.addf %481, %480 : vector<8x32xf32>
    %483 = arith.divf %481, %482 : vector<8x32xf32>
    %484 = arith.addf %337, %475 : vector<8x32xf32>
    %485 = arith.negf %484 : vector<8x32xf32>
    %486 = math.exp %485 : vector<8x32xf32>
    %cst_140 = arith.constant 1.000000e+00 : f32
    %487 = vector.broadcast %cst_140 : f32 to vector<8x32xf32>
    %488 = arith.addf %487, %486 : vector<8x32xf32>
    %489 = arith.divf %487, %488 : vector<8x32xf32>
    %490 = arith.addf %338, %476 : vector<8x32xf32>
    %491 = math.tanh %490 : vector<8x32xf32>
    %492 = arith.addf %339, %477 : vector<8x32xf32>
    %493 = arith.negf %492 : vector<8x32xf32>
    %494 = math.exp %493 : vector<8x32xf32>
    %cst_141 = arith.constant 1.000000e+00 : f32
    %495 = vector.broadcast %cst_141 : f32 to vector<8x32xf32>
    %496 = arith.addf %495, %494 : vector<8x32xf32>
    %497 = arith.divf %495, %496 : vector<8x32xf32>
    %498 = arith.mulf %489, %471 : vector<8x32xf32>
    %499 = arith.mulf %483, %491 : vector<8x32xf32>
    %500 = arith.addf %498, %499 : vector<8x32xf32>
    %501 = math.tanh %500 : vector<8x32xf32>
    %502 = arith.mulf %497, %501 : vector<8x32xf32>
    %cst_142 = arith.constant dense<0.000000e+00> : vector<8x32xf32>
    %503 = tpu.matmul %502, %352, %cst_142 {dimension_numbers = #tpu.dot_dimension_numbers<[1], [0], [0], [1], [0, 0, 1, 1], [], []>} : vector<8x32xf32>, vector<32x32xf32>, vector<8x32xf32> -> vector<8x32xf32>
    %cst_143 = arith.constant dense<0.000000e+00> : vector<8x32xf32>
    %504 = tpu.matmul %502, %353, %cst_143 {dimension_numbers = #tpu.dot_dimension_numbers<[1], [0], [0], [1], [0, 0, 1, 1], [], []>} : vector<8x32xf32>, vector<32x32xf32>, vector<8x32xf32> -> vector<8x32xf32>
    %cst_144 = arith.constant dense<0.000000e+00> : vector<8x32xf32>
    %505 = tpu.matmul %502, %354, %cst_144 {dimension_numbers = #tpu.dot_dimension_numbers<[1], [0], [0], [1], [0, 0, 1, 1], [], []>} : vector<8x32xf32>, vector<32x32xf32>, vector<8x32xf32> -> vector<8x32xf32>
    %cst_145 = arith.constant dense<0.000000e+00> : vector<8x32xf32>
    %506 = tpu.matmul %502, %355, %cst_145 {dimension_numbers = #tpu.dot_dimension_numbers<[1], [0], [0], [1], [0, 0, 1, 1], [], []>} : vector<8x32xf32>, vector<32x32xf32>, vector<8x32xf32> -> vector<8x32xf32>
    %507 = arith.addf %340, %503 : vector<8x32xf32>
    %508 = arith.negf %507 : vector<8x32xf32>
    %509 = math.exp %508 : vector<8x32xf32>
    %cst_146 = arith.constant 1.000000e+00 : f32
    %510 = vector.broadcast %cst_146 : f32 to vector<8x32xf32>
    %511 = arith.addf %510, %509 : vector<8x32xf32>
    %512 = arith.divf %510, %511 : vector<8x32xf32>
    %513 = arith.addf %341, %504 : vector<8x32xf32>
    %514 = arith.negf %513 : vector<8x32xf32>
    %515 = math.exp %514 : vector<8x32xf32>
    %cst_147 = arith.constant 1.000000e+00 : f32
    %516 = vector.broadcast %cst_147 : f32 to vector<8x32xf32>
    %517 = arith.addf %516, %515 : vector<8x32xf32>
    %518 = arith.divf %516, %517 : vector<8x32xf32>
    %519 = arith.addf %342, %505 : vector<8x32xf32>
    %520 = math.tanh %519 : vector<8x32xf32>
    %521 = arith.addf %343, %506 : vector<8x32xf32>
    %522 = arith.negf %521 : vector<8x32xf32>
    %523 = math.exp %522 : vector<8x32xf32>
    %cst_148 = arith.constant 1.000000e+00 : f32
    %524 = vector.broadcast %cst_148 : f32 to vector<8x32xf32>
    %525 = arith.addf %524, %523 : vector<8x32xf32>
    %526 = arith.divf %524, %525 : vector<8x32xf32>
    %527 = arith.mulf %518, %500 : vector<8x32xf32>
    %528 = arith.mulf %512, %520 : vector<8x32xf32>
    %529 = arith.addf %527, %528 : vector<8x32xf32>
    %530 = math.tanh %529 : vector<8x32xf32>
    %531 = arith.mulf %526, %530 : vector<8x32xf32>
    %cst_149 = arith.constant dense<0.000000e+00> : vector<8x32xf32>
    %532 = tpu.matmul %531, %352, %cst_149 {dimension_numbers = #tpu.dot_dimension_numbers<[1], [0], [0], [1], [0, 0, 1, 1], [], []>} : vector<8x32xf32>, vector<32x32xf32>, vector<8x32xf32> -> vector<8x32xf32>
    %cst_150 = arith.constant dense<0.000000e+00> : vector<8x32xf32>
    %533 = tpu.matmul %531, %353, %cst_150 {dimension_numbers = #tpu.dot_dimension_numbers<[1], [0], [0], [1], [0, 0, 1, 1], [], []>} : vector<8x32xf32>, vector<32x32xf32>, vector<8x32xf32> -> vector<8x32xf32>
    %cst_151 = arith.constant dense<0.000000e+00> : vector<8x32xf32>
    %534 = tpu.matmul %531, %354, %cst_151 {dimension_numbers = #tpu.dot_dimension_numbers<[1], [0], [0], [1], [0, 0, 1, 1], [], []>} : vector<8x32xf32>, vector<32x32xf32>, vector<8x32xf32> -> vector<8x32xf32>
    %cst_152 = arith.constant dense<0.000000e+00> : vector<8x32xf32>
    %535 = tpu.matmul %531, %355, %cst_152 {dimension_numbers = #tpu.dot_dimension_numbers<[1], [0], [0], [1], [0, 0, 1, 1], [], []>} : vector<8x32xf32>, vector<32x32xf32>, vector<8x32xf32> -> vector<8x32xf32>
    %536 = arith.addf %344, %532 : vector<8x32xf32>
    %537 = arith.negf %536 : vector<8x32xf32>
    %538 = math.exp %537 : vector<8x32xf32>
    %cst_153 = arith.constant 1.000000e+00 : f32
    %539 = vector.broadcast %cst_153 : f32 to vector<8x32xf32>
    %540 = arith.addf %539, %538 : vector<8x32xf32>
    %541 = arith.divf %539, %540 : vector<8x32xf32>
    %542 = arith.addf %345, %533 : vector<8x32xf32>
    %543 = arith.negf %542 : vector<8x32xf32>
    %544 = math.exp %543 : vector<8x32xf32>
    %cst_154 = arith.constant 1.000000e+00 : f32
    %545 = vector.broadcast %cst_154 : f32 to vector<8x32xf32>
    %546 = arith.addf %545, %544 : vector<8x32xf32>
    %547 = arith.divf %545, %546 : vector<8x32xf32>
    %548 = arith.addf %346, %534 : vector<8x32xf32>
    %549 = math.tanh %548 : vector<8x32xf32>
    %550 = arith.addf %347, %535 : vector<8x32xf32>
    %551 = arith.negf %550 : vector<8x32xf32>
    %552 = math.exp %551 : vector<8x32xf32>
    %cst_155 = arith.constant 1.000000e+00 : f32
    %553 = vector.broadcast %cst_155 : f32 to vector<8x32xf32>
    %554 = arith.addf %553, %552 : vector<8x32xf32>
    %555 = arith.divf %553, %554 : vector<8x32xf32>
    %556 = arith.mulf %547, %529 : vector<8x32xf32>
    %557 = arith.mulf %541, %549 : vector<8x32xf32>
    %558 = arith.addf %556, %557 : vector<8x32xf32>
    %559 = math.tanh %558 : vector<8x32xf32>
    %560 = arith.mulf %555, %559 : vector<8x32xf32>
    %cst_156 = arith.constant dense<0.000000e+00> : vector<8x32xf32>
    %561 = tpu.matmul %560, %352, %cst_156 {dimension_numbers = #tpu.dot_dimension_numbers<[1], [0], [0], [1], [0, 0, 1, 1], [], []>} : vector<8x32xf32>, vector<32x32xf32>, vector<8x32xf32> -> vector<8x32xf32>
    %cst_157 = arith.constant dense<0.000000e+00> : vector<8x32xf32>
    %562 = tpu.matmul %560, %353, %cst_157 {dimension_numbers = #tpu.dot_dimension_numbers<[1], [0], [0], [1], [0, 0, 1, 1], [], []>} : vector<8x32xf32>, vector<32x32xf32>, vector<8x32xf32> -> vector<8x32xf32>
    %cst_158 = arith.constant dense<0.000000e+00> : vector<8x32xf32>
    %563 = tpu.matmul %560, %354, %cst_158 {dimension_numbers = #tpu.dot_dimension_numbers<[1], [0], [0], [1], [0, 0, 1, 1], [], []>} : vector<8x32xf32>, vector<32x32xf32>, vector<8x32xf32> -> vector<8x32xf32>
    %cst_159 = arith.constant dense<0.000000e+00> : vector<8x32xf32>
    %564 = tpu.matmul %560, %355, %cst_159 {dimension_numbers = #tpu.dot_dimension_numbers<[1], [0], [0], [1], [0, 0, 1, 1], [], []>} : vector<8x32xf32>, vector<32x32xf32>, vector<8x32xf32> -> vector<8x32xf32>
    %565 = arith.addf %348, %561 : vector<8x32xf32>
    %566 = arith.negf %565 : vector<8x32xf32>
    %567 = math.exp %566 : vector<8x32xf32>
    %cst_160 = arith.constant 1.000000e+00 : f32
    %568 = vector.broadcast %cst_160 : f32 to vector<8x32xf32>
    %569 = arith.addf %568, %567 : vector<8x32xf32>
    %570 = arith.divf %568, %569 : vector<8x32xf32>
    %571 = arith.addf %349, %562 : vector<8x32xf32>
    %572 = arith.negf %571 : vector<8x32xf32>
    %573 = math.exp %572 : vector<8x32xf32>
    %cst_161 = arith.constant 1.000000e+00 : f32
    %574 = vector.broadcast %cst_161 : f32 to vector<8x32xf32>
    %575 = arith.addf %574, %573 : vector<8x32xf32>
    %576 = arith.divf %574, %575 : vector<8x32xf32>
    %577 = arith.addf %350, %563 : vector<8x32xf32>
    %578 = math.tanh %577 : vector<8x32xf32>
    %579 = arith.addf %351, %564 : vector<8x32xf32>
    %580 = arith.negf %579 : vector<8x32xf32>
    %581 = math.exp %580 : vector<8x32xf32>
    %cst_162 = arith.constant 1.000000e+00 : f32
    %582 = vector.broadcast %cst_162 : f32 to vector<8x32xf32>
    %583 = arith.addf %582, %581 : vector<8x32xf32>
    %584 = arith.divf %582, %583 : vector<8x32xf32>
    %585 = arith.mulf %576, %558 : vector<8x32xf32>
    %586 = arith.mulf %570, %578 : vector<8x32xf32>
    %587 = arith.addf %585, %586 : vector<8x32xf32>
    %588 = math.tanh %587 : vector<8x32xf32>
    %589 = arith.mulf %584, %588 : vector<8x32xf32>
    %c0_163 = arith.constant 0 : index
    %c0_164 = arith.constant 0 : index
    %590 = vector.load %arg2[%c0_163, %c0_164] : memref<64x8xf32, #tpu.memory_space<vmem>>, vector<64x8xf32>
    %591 = tpu.iota {dimensions = array<i32: 0>} : vector<64x1xi32>
    %c8_i32 = arith.constant 8 : i32
    %c0_i32 = arith.constant 0 : i32
    %592 = arith.cmpi eq, %c8_i32, %c0_i32 : i32
    %c1_i32 = arith.constant 1 : i32
    %593 = arith.select %592, %c1_i32, %c8_i32 : i32
    %594 = vector.broadcast %593 : i32 to vector<64x1xi32>
    %595 = arith.remsi %591, %594 : vector<64x1xi32>
    %c0_i32_165 = arith.constant 0 : i32
    %596 = vector.broadcast %c0_i32_165 : i32 to vector<64x1xi32>
    %597 = arith.cmpi ne, %595, %596 : vector<64x1xi32>
    %c0_i32_166 = arith.constant 0 : i32
    %598 = vector.broadcast %c0_i32_166 : i32 to vector<64x1xi32>
    %599 = arith.cmpi slt, %595, %598 : vector<64x1xi32>
    %c0_i32_167 = arith.constant 0 : i32
    %600 = arith.cmpi slt, %593, %c0_i32_167 : i32
    %601 = vector.broadcast %600 : i1 to vector<64x1xi1>
    %602 = vector.broadcast %601 : vector<64x1xi1> to vector<64x1xi1>
    %603 = arith.xori %599, %602 : vector<64x1xi1>
    %604 = arith.andi %603, %597 : vector<64x1xi1>
    %605 = vector.broadcast %593 : i32 to vector<64x1xi32>
    %606 = arith.addi %595, %605 : vector<64x1xi32>
    %607 = arith.select %604, %606, %595 : vector<64x1xi1>, vector<64x1xi32>
    %c0_i32_168 = arith.constant 0 : i32
    %608 = vector.broadcast %c0_i32_168 : i32 to vector<64x1xi32>
    %609 = arith.cmpi sgt, %607, %608 : vector<64x1xi32>
    %c1_i32_169 = arith.constant 1 : i32
    %610 = tpu.dynamic_rotate %590 by %c1_i32_169 dim 0 : vector<64x8xf32>, i32 -> vector<64x8xf32>
    %cst_170 = arith.constant 0.000000e+00 : f32
    %611 = vector.shape_cast %609 : vector<64x1xi1> to vector<64x1xi1>
    %612 = vector.broadcast %611 : vector<64x1xi1> to vector<64x8xi1>
    %613 = vector.broadcast %cst_170 : f32 to vector<64x8xf32>
    %614 = arith.select %612, %610, %613 : vector<64x8xi1>, vector<64x8xf32>
    %c7_i32 = arith.constant 7 : i32
    %615 = vector.broadcast %c7_i32 : i32 to vector<64x1xi32>
    %616 = arith.cmpi slt, %607, %615 : vector<64x1xi32>
    %c63_i32 = arith.constant 63 : i32
    %617 = tpu.dynamic_rotate %590 by %c63_i32 dim 0 : vector<64x8xf32>, i32 -> vector<64x8xf32>
    %cst_171 = arith.constant 0.000000e+00 : f32
    %618 = vector.shape_cast %616 : vector<64x1xi1> to vector<64x1xi1>
    %619 = vector.broadcast %618 : vector<64x1xi1> to vector<64x8xi1>
    %620 = vector.broadcast %cst_171 : f32 to vector<64x8xf32>
    %621 = arith.select %619, %617, %620 : vector<64x8xi1>, vector<64x8xf32>
    %c432 = arith.constant 432 : index
    %c0_172 = arith.constant 0 : index
    %622 = vector.load %arg3[%c432, %c0_172] : memref<1384x128xf32, #tpu.memory_space<vmem>>, vector<8x64xf32>
    %cst_173 = arith.constant dense<0.000000e+00> : vector<64x64xf32>
    %623 = tpu.matmul %614, %622, %cst_173 {dimension_numbers = #tpu.dot_dimension_numbers<[1], [0], [0], [1], [0, 0, 1, 1], [], []>} : vector<64x8xf32>, vector<8x64xf32>, vector<64x64xf32> -> vector<64x64xf32>
    %c440 = arith.constant 440 : index
    %c0_174 = arith.constant 0 : index
    %624 = vector.load %arg3[%c440, %c0_174] : memref<1384x128xf32, #tpu.memory_space<vmem>>, vector<8x64xf32>
    %cst_175 = arith.constant dense<0.000000e+00> : vector<64x64xf32>
    %625 = tpu.matmul %590, %624, %cst_175 {dimension_numbers = #tpu.dot_dimension_numbers<[1], [0], [0], [1], [0, 0, 1, 1], [], []>} : vector<64x8xf32>, vector<8x64xf32>, vector<64x64xf32> -> vector<64x64xf32>
    %626 = arith.addf %623, %625 : vector<64x64xf32>
    %c448 = arith.constant 448 : index
    %c0_176 = arith.constant 0 : index
    %627 = vector.load %arg3[%c448, %c0_176] : memref<1384x128xf32, #tpu.memory_space<vmem>>, vector<8x64xf32>
    %cst_177 = arith.constant dense<0.000000e+00> : vector<64x64xf32>
    %628 = tpu.matmul %621, %627, %cst_177 {dimension_numbers = #tpu.dot_dimension_numbers<[1], [0], [0], [1], [0, 0, 1, 1], [], []>} : vector<64x8xf32>, vector<8x64xf32>, vector<64x64xf32> -> vector<64x64xf32>
    %629 = arith.addf %626, %628 : vector<64x64xf32>
    %c456 = arith.constant 456 : index
    %c0_178 = arith.constant 0 : index
    %630 = vector.load %arg3[%c456, %c0_178] : memref<1384x128xf32, #tpu.memory_space<vmem>>, vector<1x64xf32>
    %631 = vector.broadcast %630 : vector<1x64xf32> to vector<64x64xf32>
    %632 = arith.addf %629, %631 : vector<64x64xf32>
    %cst_179 = arith.constant 0.000000e+00 : f32
    %633 = vector.broadcast %cst_179 : f32 to vector<64x64xf32>
    %634 = arith.maximumf %632, %633 : vector<64x64xf32>
    %635 = vector.shape_cast %634 : vector<64x64xf32> to vector<32x2x64xf32>
    %636 = vector.extract_strided_slice %635 {offsets = [0, 0, 0], sizes = [32, 1, 64], strides = [1, 1, 1]} : vector<32x2x64xf32> to vector<32x1x64xf32>
    %637 = vector.shape_cast %636 : vector<32x1x64xf32> to vector<32x64xf32>
    %638 = vector.extract_strided_slice %635 {offsets = [0, 1, 0], sizes = [32, 1, 64], strides = [1, 1, 1]} : vector<32x2x64xf32> to vector<32x1x64xf32>
    %639 = vector.shape_cast %638 : vector<32x1x64xf32> to vector<32x64xf32>
    %640 = arith.maximumf %637, %639 : vector<32x64xf32>
    %641 = tpu.iota {dimensions = array<i32: 0>} : vector<32x1xi32>
    %c4_i32 = arith.constant 4 : i32
    %c0_i32_180 = arith.constant 0 : i32
    %642 = arith.cmpi eq, %c4_i32, %c0_i32_180 : i32
    %c1_i32_181 = arith.constant 1 : i32
    %643 = arith.select %642, %c1_i32_181, %c4_i32 : i32
    %644 = vector.broadcast %643 : i32 to vector<32x1xi32>
    %645 = arith.remsi %641, %644 : vector<32x1xi32>
    %c0_i32_182 = arith.constant 0 : i32
    %646 = vector.broadcast %c0_i32_182 : i32 to vector<32x1xi32>
    %647 = arith.cmpi ne, %645, %646 : vector<32x1xi32>
    %c0_i32_183 = arith.constant 0 : i32
    %648 = vector.broadcast %c0_i32_183 : i32 to vector<32x1xi32>
    %649 = arith.cmpi slt, %645, %648 : vector<32x1xi32>
    %c0_i32_184 = arith.constant 0 : i32
    %650 = arith.cmpi slt, %643, %c0_i32_184 : i32
    %651 = vector.broadcast %650 : i1 to vector<32x1xi1>
    %652 = vector.broadcast %651 : vector<32x1xi1> to vector<32x1xi1>
    %653 = arith.xori %649, %652 : vector<32x1xi1>
    %654 = arith.andi %653, %647 : vector<32x1xi1>
    %655 = vector.broadcast %643 : i32 to vector<32x1xi32>
    %656 = arith.addi %645, %655 : vector<32x1xi32>
    %657 = arith.select %654, %656, %645 : vector<32x1xi1>, vector<32x1xi32>
    %c0_i32_185 = arith.constant 0 : i32
    %658 = vector.broadcast %c0_i32_185 : i32 to vector<32x1xi32>
    %659 = arith.cmpi sgt, %657, %658 : vector<32x1xi32>
    %c1_i32_186 = arith.constant 1 : i32
    %660 = tpu.dynamic_rotate %640 by %c1_i32_186 dim 0 : vector<32x64xf32>, i32 -> vector<32x64xf32>
    %cst_187 = arith.constant 0.000000e+00 : f32
    %661 = vector.shape_cast %659 : vector<32x1xi1> to vector<32x1xi1>
    %662 = vector.broadcast %661 : vector<32x1xi1> to vector<32x64xi1>
    %663 = vector.broadcast %cst_187 : f32 to vector<32x64xf32>
    %664 = arith.select %662, %660, %663 : vector<32x64xi1>, vector<32x64xf32>
    %c3_i32 = arith.constant 3 : i32
    %665 = vector.broadcast %c3_i32 : i32 to vector<32x1xi32>
    %666 = arith.cmpi slt, %657, %665 : vector<32x1xi32>
    %c31_i32 = arith.constant 31 : i32
    %667 = tpu.dynamic_rotate %640 by %c31_i32 dim 0 : vector<32x64xf32>, i32 -> vector<32x64xf32>
    %cst_188 = arith.constant 0.000000e+00 : f32
    %668 = vector.shape_cast %666 : vector<32x1xi1> to vector<32x1xi1>
    %669 = vector.broadcast %668 : vector<32x1xi1> to vector<32x64xi1>
    %670 = vector.broadcast %cst_188 : f32 to vector<32x64xf32>
    %671 = arith.select %669, %667, %670 : vector<32x64xi1>, vector<32x64xf32>
    %c464 = arith.constant 464 : index
    %c0_189 = arith.constant 0 : index
    %672 = vector.load %arg3[%c464, %c0_189] : memref<1384x128xf32, #tpu.memory_space<vmem>>, vector<64x128xf32>
    %cst_190 = arith.constant dense<0.000000e+00> : vector<32x128xf32>
    %673 = tpu.matmul %664, %672, %cst_190 {dimension_numbers = #tpu.dot_dimension_numbers<[1], [0], [0], [1], [0, 0, 1, 1], [], []>} : vector<32x64xf32>, vector<64x128xf32>, vector<32x128xf32> -> vector<32x128xf32>
    %c528 = arith.constant 528 : index
    %c0_191 = arith.constant 0 : index
    %674 = vector.load %arg3[%c528, %c0_191] : memref<1384x128xf32, #tpu.memory_space<vmem>>, vector<64x128xf32>
    %cst_192 = arith.constant dense<0.000000e+00> : vector<32x128xf32>
    %675 = tpu.matmul %640, %674, %cst_192 {dimension_numbers = #tpu.dot_dimension_numbers<[1], [0], [0], [1], [0, 0, 1, 1], [], []>} : vector<32x64xf32>, vector<64x128xf32>, vector<32x128xf32> -> vector<32x128xf32>
    %676 = arith.addf %673, %675 : vector<32x128xf32>
    %c592 = arith.constant 592 : index
    %c0_193 = arith.constant 0 : index
    %677 = vector.load %arg3[%c592, %c0_193] : memref<1384x128xf32, #tpu.memory_space<vmem>>, vector<64x128xf32>
    %cst_194 = arith.constant dense<0.000000e+00> : vector<32x128xf32>
    %678 = tpu.matmul %671, %677, %cst_194 {dimension_numbers = #tpu.dot_dimension_numbers<[1], [0], [0], [1], [0, 0, 1, 1], [], []>} : vector<32x64xf32>, vector<64x128xf32>, vector<32x128xf32> -> vector<32x128xf32>
    %679 = arith.addf %676, %678 : vector<32x128xf32>
    %c656 = arith.constant 656 : index
    %c0_195 = arith.constant 0 : index
    %680 = vector.load %arg3[%c656, %c0_195] : memref<1384x128xf32, #tpu.memory_space<vmem>>, vector<1x128xf32>
    %681 = vector.broadcast %680 : vector<1x128xf32> to vector<32x128xf32>
    %682 = arith.addf %679, %681 : vector<32x128xf32>
    %cst_196 = arith.constant 0.000000e+00 : f32
    %683 = vector.broadcast %cst_196 : f32 to vector<32x128xf32>
    %684 = arith.maximumf %682, %683 : vector<32x128xf32>
    %685 = vector.shape_cast %684 : vector<32x128xf32> to vector<8x4x128xf32>
    %c664 = arith.constant 664 : index
    %c0_197 = arith.constant 0 : index
    %686 = vector.load %arg3[%c664, %c0_197] : memref<1384x128xf32, #tpu.memory_space<vmem>>, vector<32x128xf32>
    %cst_198 = arith.constant dense<0.000000e+00> : vector<8x128xf32>
    %687 = tpu.matmul %589, %686, %cst_198 {dimension_numbers = #tpu.dot_dimension_numbers<[1], [0], [0], [1], [0, 0, 1, 1], [], []>} : vector<8x32xf32>, vector<32x128xf32>, vector<8x128xf32> -> vector<8x128xf32>
    %688 = vector.extract_strided_slice %685 {offsets = [0, 0, 0], sizes = [8, 1, 128], strides = [1, 1, 1]} : vector<8x4x128xf32> to vector<8x1x128xf32>
    %689 = vector.shape_cast %688 : vector<8x1x128xf32> to vector<8x128xf32>
    %c696 = arith.constant 696 : index
    %c0_199 = arith.constant 0 : index
    %690 = vector.load %arg3[%c696, %c0_199] : memref<1384x128xf32, #tpu.memory_space<vmem>>, vector<128x128xf32>
    %cst_200 = arith.constant dense<0.000000e+00> : vector<8x128xf32>
    %691 = tpu.matmul %689, %690, %cst_200 {dimension_numbers = #tpu.dot_dimension_numbers<[1], [0], [0], [1], [0, 0, 1, 1], [], []>} : vector<8x128xf32>, vector<128x128xf32>, vector<8x128xf32> -> vector<8x128xf32>
    %692 = vector.extract_strided_slice %685 {offsets = [0, 1, 0], sizes = [8, 1, 128], strides = [1, 1, 1]} : vector<8x4x128xf32> to vector<8x1x128xf32>
    %693 = vector.shape_cast %692 : vector<8x1x128xf32> to vector<8x128xf32>
    %c824 = arith.constant 824 : index
    %c0_201 = arith.constant 0 : index
    %694 = vector.load %arg3[%c824, %c0_201] : memref<1384x128xf32, #tpu.memory_space<vmem>>, vector<128x128xf32>
    %cst_202 = arith.constant dense<0.000000e+00> : vector<8x128xf32>
    %695 = tpu.matmul %693, %694, %cst_202 {dimension_numbers = #tpu.dot_dimension_numbers<[1], [0], [0], [1], [0, 0, 1, 1], [], []>} : vector<8x128xf32>, vector<128x128xf32>, vector<8x128xf32> -> vector<8x128xf32>
    %696 = vector.extract_strided_slice %685 {offsets = [0, 2, 0], sizes = [8, 1, 128], strides = [1, 1, 1]} : vector<8x4x128xf32> to vector<8x1x128xf32>
    %697 = vector.shape_cast %696 : vector<8x1x128xf32> to vector<8x128xf32>
    %c952 = arith.constant 952 : index
    %c0_203 = arith.constant 0 : index
    %698 = vector.load %arg3[%c952, %c0_203] : memref<1384x128xf32, #tpu.memory_space<vmem>>, vector<128x128xf32>
    %cst_204 = arith.constant dense<0.000000e+00> : vector<8x128xf32>
    %699 = tpu.matmul %697, %698, %cst_204 {dimension_numbers = #tpu.dot_dimension_numbers<[1], [0], [0], [1], [0, 0, 1, 1], [], []>} : vector<8x128xf32>, vector<128x128xf32>, vector<8x128xf32> -> vector<8x128xf32>
    %700 = vector.extract_strided_slice %685 {offsets = [0, 3, 0], sizes = [8, 1, 128], strides = [1, 1, 1]} : vector<8x4x128xf32> to vector<8x1x128xf32>
    %701 = vector.shape_cast %700 : vector<8x1x128xf32> to vector<8x128xf32>
    %c1080 = arith.constant 1080 : index
    %c0_205 = arith.constant 0 : index
    %702 = vector.load %arg3[%c1080, %c0_205] : memref<1384x128xf32, #tpu.memory_space<vmem>>, vector<128x128xf32>
    %cst_206 = arith.constant dense<0.000000e+00> : vector<8x128xf32>
    %703 = tpu.matmul %701, %702, %cst_206 {dimension_numbers = #tpu.dot_dimension_numbers<[1], [0], [0], [1], [0, 0, 1, 1], [], []>} : vector<8x128xf32>, vector<128x128xf32>, vector<8x128xf32> -> vector<8x128xf32>
    %704 = arith.addf %687, %691 : vector<8x128xf32>
    %705 = arith.addf %695, %699 : vector<8x128xf32>
    %706 = arith.addf %704, %705 : vector<8x128xf32>
    %707 = arith.addf %706, %703 : vector<8x128xf32>
    %c1208 = arith.constant 1208 : index
    %c0_207 = arith.constant 0 : index
    %708 = vector.load %arg3[%c1208, %c0_207] : memref<1384x128xf32, #tpu.memory_space<vmem>>, vector<1x128xf32>
    %709 = vector.broadcast %708 : vector<1x128xf32> to vector<8x128xf32>
    %710 = arith.addf %707, %709 : vector<8x128xf32>
    %cst_208 = arith.constant 0.000000e+00 : f32
    %711 = vector.broadcast %cst_208 : f32 to vector<8x128xf32>
    %712 = arith.maximumf %710, %711 : vector<8x128xf32>
    %c1216 = arith.constant 1216 : index
    %c0_209 = arith.constant 0 : index
    %713 = vector.load %arg3[%c1216, %c0_209] : memref<1384x128xf32, #tpu.memory_space<vmem>>, vector<1x128xf32>
    %714 = vector.broadcast %713 : vector<1x128xf32> to vector<8x128xf32>
    %715 = arith.mulf %712, %714 : vector<8x128xf32>
    %c1224 = arith.constant 1224 : index
    %c0_210 = arith.constant 0 : index
    %716 = vector.load %arg3[%c1224, %c0_210] : memref<1384x128xf32, #tpu.memory_space<vmem>>, vector<1x128xf32>
    %717 = vector.broadcast %716 : vector<1x128xf32> to vector<8x128xf32>
    %718 = arith.addf %715, %717 : vector<8x128xf32>
    %c1232 = arith.constant 1232 : index
    %c0_211 = arith.constant 0 : index
    %719 = vector.load %arg3[%c1232, %c0_211] : memref<1384x128xf32, #tpu.memory_space<vmem>>, vector<128x64xf32>
    %cst_212 = arith.constant dense<0.000000e+00> : vector<8x64xf32>
    %720 = tpu.matmul %718, %719, %cst_212 {dimension_numbers = #tpu.dot_dimension_numbers<[1], [0], [0], [1], [0, 0, 1, 1], [], []>} : vector<8x128xf32>, vector<128x64xf32>, vector<8x64xf32> -> vector<8x64xf32>
    %c1360 = arith.constant 1360 : index
    %c0_213 = arith.constant 0 : index
    %721 = vector.load %arg3[%c1360, %c0_213] : memref<1384x128xf32, #tpu.memory_space<vmem>>, vector<1x64xf32>
    %722 = vector.broadcast %721 : vector<1x64xf32> to vector<8x64xf32>
    %723 = arith.addf %720, %722 : vector<8x64xf32>
    %cst_214 = arith.constant 0.000000e+00 : f32
    %724 = vector.broadcast %cst_214 : f32 to vector<8x64xf32>
    %725 = arith.maximumf %723, %724 : vector<8x64xf32>
    %c1368 = arith.constant 1368 : index
    %c0_215 = arith.constant 0 : index
    %726 = vector.load %arg3[%c1368, %c0_215] : memref<1384x128xf32, #tpu.memory_space<vmem>>, vector<1x64xf32>
    %727 = vector.broadcast %726 : vector<1x64xf32> to vector<8x64xf32>
    %728 = arith.mulf %725, %727 : vector<8x64xf32>
    %cst_216 = arith.constant dense<0.000000e+00> : vector<8xf32>
    %729 = vector.multi_reduction <add>, %728, %cst_216 [1] : vector<8x64xf32> to vector<8xf32>
    %730 = vector.shape_cast %729 : vector<8xf32> to vector<8x1xf32>
    %c1376 = arith.constant 1376 : index
    %c0_217 = arith.constant 0 : index
    %731 = vector.load %arg3[%c1376, %c0_217] : memref<1384x128xf32, #tpu.memory_space<vmem>>, vector<1x1xf32>
    %732 = vector.broadcast %731 : vector<1x1xf32> to vector<8x1xf32>
    %733 = arith.addf %730, %732 : vector<8x1xf32>
    %734 = vector.shape_cast %733 : vector<8x1xf32> to vector<8x1xf32>
    %735 = vector.broadcast %734 : vector<8x1xf32> to vector<8x128xf32>
    %c0_218 = arith.constant 0 : index
    %c0_219 = arith.constant 0 : index
    %736 = vector.load %arg4[%c0_218, %c0_219] : memref<8x128xf32, #tpu.memory_space<vmem>>, vector<8x128xf32>
    tpu.vector_store %arg4[%c0_218, %c0_219], %735 {strides = array<i32>} : memref<8x128xf32, #tpu.memory_space<vmem>>, vector<8x128xf32>,
    return
  }
  func.func @transform_0(%arg0: i32) -> (i32, i32) {
    %c0_i32 = arith.constant 0 : i32
    %c0_i32_0 = arith.constant 0 : i32
    %c0_i32_1 = arith.constant 0 : i32
    return %c0_i32, %c0_i32_0 : i32, i32
  }
  func.func @transform_1(%arg0: i32) -> (i32, i32) {
    %c0_i32 = arith.constant 0 : i32
    %c0_i32_0 = arith.constant 0 : i32
    %c0_i32_1 = arith.constant 0 : i32
    return %c0_i32, %c0_i32_0 : i32, i32
  }
  func.func @transform_2(%arg0: i32) -> (i32, i32) {
    %c0_i32 = arith.constant 0 : i32
    %c0_i32_0 = arith.constant 0 : i32
    %c0_i32_1 = arith.constant 0 : i32
    return %c0_i32, %c0_i32_0 : i32, i32
  }
  func.func @transform_3(%arg0: i32) -> (i32, i32) {
    %c0_i32 = arith.constant 0 : i32
    %c0_i32_0 = arith.constant 0 : i32
    %c0_i32_1 = arith.constant 0 : i32
    return %c0_i32, %c0_i32_0 : i32, i32
  }
}

</mosaic_0001>

<bundles_post_ra>
// kernel: tpu_custom_call.1
= control target key start
LH: loop header
LB: loop body
LE: loop exit
PB: predicated region body
PF: predicated region fallthrough
CT: control target
= control target key end

     0   :  { %8 = vsyncpa [#allocation4], 0  ;;  %s12626_s0 = inlined_call_operand.vmem [shape: f32[64,8], index: 0, kind: input, shape index: {}]   ;;  %s12627_s1 = inlined_call_operand.vmem [shape: f32[64,8], index: 1, kind: input, shape index: {}]   ;;  %s12628_s2 = inlined_call_operand.hbm [shape: f32[1384,128], index: 2, kind: input, shape index: {}]   ;;  %s12629_s3 = inlined_call_operand.hbm [shape: f32[8,128], index: 3, kind: output, shape index: {}]  }
   0x1   :  { %9 = vsyncpa [#allocation5], 0  ;;  %s10594_s12 = smov [#allocation3]  }
   0x2   :  { %s19_s13 = sshll.u32 %s10594_s12, 4  ;;  %s20_s13 = int_to_ptr.vmem [resolvable:$true] %s19_s13 }
   0x3   :  { %s10558_s14 = scalar_lea.vmem %s20_s13, 22144  ;;  %p10563_p1 = scmp.lt.s32.totalorder %s20_s13, %s20_s13 }
   0x4   :  { %p10559_p0 = scmp.ne.s32.totalorder %s20_s13, %s10558_s14  ;;  %p10564_p2 = scmp.lt.s32.totalorder %s10558_s14, %s10558_s14 }
   0x6   :  { %p10565_p3 = por %p10564_p2, %p10563_p1 }
   0x8   :  { %p10566_p4 = pnand %p10565_p3, %p10559_p0 }
   0xa   :  { %10569 = shalt.err (!%p10566_p4)
}
   0xb   :  { %s10595_s15 = smov 128   ;;  %s10596_s16 = smov 8  }
   0xc   :  { %25 = dma.hbm_to_vmem [thread:$0]  %s12628_s2, 22144, %s20_s13, [#allocation4], %s10595_s15, %s10595_s15, %s10596_s16  }
   0xd   :  { %10590 = dma.done.wait [#allocation4], 22144  }
   0xe   :  { %10591 = vsyncadd [#allocation4], 4294945152  ;;  %v37_v0 = vld [vmem:[#allocation3] sm:$0xff]  ;;  %vm43_vm0 = vcmask 64512   ;;  %v10633_v2 = vld [vmem:[%s12626_s0 + $0x10] sm:$0xff]  ;;  %v12630_v13 = vmov 0.0  }
   0xf   :  { %v10628_v1 = vld [vmem:[%s12626_s0] sm:$0xff]  ;;  %9114 = vmatprep.subr.mxu0 %v37_v0  ;;  %10248 = vmatprep.subr.mxu1 %v37_v0  ;;  %v10638_v3 = vld [vmem:[%s12626_s0 + $0x8] sm:$0xff]  ;;  %v10643_v4 = vld [vmem:[%s12626_s0 + $0x18] sm:$0xff]  ;;  %vm10598_vm1 = vmmov 0   ;;  %vm522_vm2 = vcmask 261120  }
  0x10   :  { %9115 = vmatpush3.msra.mxu0 %v37_v0  ;;  %10249 = vmatpush3.msra.mxu1 %v37_v0  ;;  %v173_v5 = vld [vmem:[#allocation3 + $0x28] sm:$0xff]  ;;  %v284_v6 = vld [vmem:[#allocation3 + $0x50] sm:$0xff]  ;;  %v10652_v7 = vld [vmem:[%s12626_s0 + $0x20] sm:$0xff] }
  0x11   :  { %9116 = vmatprep.mubr.msk.f32.mxu0 %vm43_vm0, %v10628_v1  ;;  %9119 = vmatprep.mubr.msk.f32.mxu1 %vm43_vm0, %v10633_v2  ;;  %v10661_v8 = vld [vmem:[%s12626_s0 + $0x28] sm:$0xff]  ;;  %v10668_v9 = vld [vmem:[%s12626_s0 + $0x30] sm:$0xff]  ;;  %v395_v10 = vld [vmem:[#allocation3 + $0x78] sm:$0xff] }
  0x12   :  { %9117 = vmatmul.mubr.msk.f32.vlgmr.msra.gmra.mxu0 %vm43_vm0, %v10638_v3  ;;  %9120 = vmatmul.mubr.msk.f32.vlgmr.msra.gmra.mxu1 %vm43_vm0, %v10643_v4  ;;  %v10676_v11 = vld [vmem:[#allocation3 + $0x20] sm:$0xff]  ;;  %v10685_v12 = vld [vmem:[%s12626_s0 + $0x38] sm:$0xff]  ;;  %v10705_v15 = vld [vmem:[#allocation3 + $0x10] sm:$0xff] }
  0x13   :  { %9128 = vmatprep.subr.mxu1 %v173_v5  ;;  %9142 = vmatprep.subr.mxu0 %v284_v6  ;;  %v10693_v14 = vld [vmem:[#allocation3 + $0x18] sm:$0xff]  ;;  %v10713_v16 = vld [vmem:[#allocation3 + $0x8] sm:$0xff]  ;;  %v10726_v17 = vld [vmem:[#allocation3 + $0x70] sm:$0xff] }
  0x14   :  { %9129 = vmatpush3.msra.mxu1 %v173_v5  ;;  %9122 = vmatprep.mubr.msk.f32.mxu1 %vm43_vm0, %v10652_v7  ;;  %v10732_v18 = vld [vmem:[#allocation3 + $0x68] sm:$0xff]  ;;  %v10738_v19 = vld [vmem:[#allocation3 + $0x60] sm:$0xff]  ;;  %v10746_v20 = vld [vmem:[#allocation3 + $0x58] sm:$0xff] }
  0x15   :  { %9143 = vmatpush3.msra.mxu0 %v284_v6  ;;  %9144 = vmatprep.mubr.msk.f32.mxu0 %vm43_vm0, %v10628_v1  ;;  %v10752_v21 = vld [vmem:[#allocation3 + $0x48] sm:$0xff]  ;;  %v10758_v22 = vld [vmem:[#allocation3 + $0x40] sm:$0xff]  ;;  %v10764_v23 = vld [vmem:[#allocation3 + $0x38] sm:$0xff] }
  0x16   :  { %9123 = vmatmul.mubr.msk.f32.gmra.mxu1 %vm43_vm0, %v10661_v8  ;;  %9145 = vmatmul.mubr.msk.f32.vlgmr.msra.gmra.mxu0 %vm43_vm0, %v10638_v3  ;;  %v10772_v24 = vld [vmem:[#allocation3 + $0x30] sm:$0xff]  ;;  %v10797_v25 = vld [vmem:[#allocation3 + $0x98] sm:$0xff]  ;;  %v10806_v27 = vld [vmem:[#allocation3 + $0x88] sm:$0xff] }
  0x17   :  { %9125 = vmatprep.mubr.msk.f32.mxu1 %vm43_vm0, %v10668_v9  ;;  %9147 = vmatprep.mubr.msk.f32.mxu0 %vm43_vm0, %v10633_v2  ;;  %v10800_v26 = vld [vmem:[#allocation3 + $0x90] sm:$0xff]  ;;  %v10810_v28 = vld [vmem:[#allocation3 + $0x80] sm:$0xff] }
  0x18   :  { %9156 = vmatprep.subr.mxu1 %v395_v10  ;;  %9170 = vmatprep.subr.mxu0 %v12630_v13  ;;  %v10827_v29 = vld [vmem:[#allocation3 + $0xa0] ss:$0 sm:$0xff]  ;;  %v10837_v36 = vld [vmem:[#allocation3 + $0xa2] ss:$0 sm:$0xff]  ;;  %v10857_v49 = vld [vmem:[#allocation3 + $0xa1] ss:$0 sm:$0xff] }
  0x19   :  { %9171 = vmatpush3.msra.mxu0 %v10676_v11 }
  0x1a   :  { %9126 = vmatmul.mubr.msk.f32.gmra.mxu1 %vm43_vm0, %v10685_v12  ;;  %9148 = vmatmul.mubr.msk.f32.gmra.mxu0 %vm43_vm0, %v10643_v4 }
  0x1b   :  { %9130 = vmatprep.mubr.msk.f32.mxu1 %vm43_vm0, %v10628_v1  ;;  %9150 = vmatprep.mubr.msk.f32.mxu0 %vm43_vm0, %v10652_v7 }
  0x1c   :  { %9172 = vmatprep.subr.mxu0 %v12630_v13 }
  0x1d   :  { %9173 = vmatpush3.msra.mxu0 %v10693_v14 }
  0x1e   :  { %9131 = vmatmul.mubr.msk.f32.vlgmr.msra.gmra.mxu1 %vm43_vm0, %v10638_v3  ;;  %9151 = vmatmul.mubr.msk.f32.gmra.mxu0 %vm43_vm0, %v10661_v8 }
  0x1f   :  { %9157 = vmatpush3.msra.mxu1 %v395_v10  ;;  %9133 = vmatprep.mubr.msk.f32.mxu1 %vm43_vm0, %v10633_v2 }
  0x20   :  { %9153 = vmatprep.mubr.msk.f32.mxu0 %vm43_vm0, %v10668_v9  ;;  %9174 = vmatprep.subr.mxu0 %v12630_v13 }
  0x21   :  { %9175 = vmatpush3.msra.mxu0 %v10705_v15  ;;  %9181 = vmatprep.subr.mxu1 %v12630_v13 }
  0x22   :  { %9134 = vmatmul.mubr.msk.f32.gmra.mxu1 %vm43_vm0, %v10643_v4  ;;  %9154 = vmatmul.mubr.msk.f32.gmra.mxu0 %vm43_vm0, %v10685_v12 }
  0x23   :  { %9176 = vmatprep.subr.mxu0 %v12630_v13  ;;  %9136 = vmatprep.mubr.msk.f32.mxu1 %vm43_vm0, %v10652_v7 }
  0x24   :  { %9177 = vmatpush3.msra.mxu0 %v10713_v16  ;;  %9178 = vmatprep.mubr.msk.f32.mxu0 %vm10598_vm1, %v12630_v13 }
  0x25   :  { %9192 = vmatprep.subr.mxu0 %v12630_v13 }
  0x26   :  { %9137 = vmatmul.mubr.msk.f32.gmra.mxu1 %vm43_vm0, %v10661_v8  ;;  %9179 = vmatmul.mubr.f32.vlgmr.msra.gmra.mxu0 %v12630_v13 }
  0x27   :  { %9139 = vmatprep.mubr.msk.f32.mxu1 %vm43_vm0, %v10668_v9  ;;  %9193 = vmatpush3.msra.mxu0 %v10726_v17 }
  0x28   :  { %9194 = vmatprep.subr.mxu0 %v12630_v13  ;;  %9200 = vmatprep.mubr.msk.f32.mxu0 %vm10598_vm1, %v12630_v13 }
  0x29   :  { %9195 = vmatpush3.msra.mxu0 %v10732_v18 }
  0x2a   :  { %9140 = vmatmul.mubr.msk.f32.gmra.mxu1 %vm43_vm0, %v10685_v12  ;;  %9196 = vmatprep.subr.mxu0 %v12630_v13 }
  0x2b   :  { %9158 = vmatprep.mubr.msk.f32.mxu1 %vm43_vm0, %v10628_v1  ;;  %9197 = vmatpush3.msra.mxu0 %v10738_v19 }
  0x2c   :  { %9198 = vmatprep.subr.mxu0 %v12630_v13 }
  0x2d   :  { %9199 = vmatpush3.msra.mxu0 %v10746_v20 }
  0x2e   :  { %9159 = vmatmul.mubr.msk.f32.vlgmr.msra.gmra.mxu1 %vm43_vm0, %v10638_v3  ;;  %9201 = vmatmul.mubr.f32.vlgmr.msra.gmra.mxu0 %v12630_v13 }
  0x2f   :  { %9182 = vmatpush3.msra.mxu1 %v10752_v21  ;;  %9161 = vmatprep.mubr.msk.f32.mxu1 %vm43_vm0, %v10633_v2 }
  0x30   :  { %9183 = vmatprep.subr.mxu1 %v12630_v13  ;;  %9214 = vmatprep.subr.mxu0 %v12630_v13 }
  0x31   :  { %9184 = vmatpush3.msra.mxu1 %v10758_v22  ;;  %9215 = vmatpush3.msra.mxu0 %v10676_v11 }
  0x32   :  { %9162 = vmatmul.mubr.msk.f32.gmra.mxu1 %vm43_vm0, %v10643_v4  ;;  %9185 = vmatprep.subr.mxu1 %v12630_v13 }
  0x33   :  { %9164 = vmatprep.mubr.msk.f32.mxu1 %vm43_vm0, %v10652_v7  ;;  %9186 = vmatpush3.msra.mxu1 %v10764_v23 }
  0x34   :  { %9187 = vmatprep.subr.mxu1 %v12630_v13  ;;  %9216 = vmatprep.subr.mxu0 %v12630_v13 }
  0x35   :  { %9188 = vmatpush3.msra.mxu1 %v10772_v24  ;;  %9217 = vmatpush3.msra.mxu0 %v10693_v14 }
  0x36   :  { %9165 = vmatmul.mubr.msk.f32.gmra.mxu1 %vm43_vm0, %v10661_v8  ;;  %9203 = vmatprep.subr.mxu1 %v12630_v13 }
  0x37   :  { %9167 = vmatprep.mubr.msk.f32.mxu1 %vm43_vm0, %v10668_v9  ;;  %9218 = vmatprep.subr.mxu0 %v12630_v13  ;;  %v8331_v9 = vld [vmem:[#allocation3 + $0xa3] ss:$0 sm:$0xff] }
  0x38   :  { %9219 = vmatpush3.msra.mxu0 %v10705_v15  ;;  %9222 = vmatprep.mubr.msk.f32.mxu0 %vm10598_vm1, %v12630_v13 }
  0x39   :  { %9220 = vmatprep.subr.mxu0 %v12630_v13 }
  0x3a   :  { %9168 = vmatmul.mubr.msk.f32.gmra.mxu1 %vm43_vm0, %v10685_v12  ;;  %9221 = vmatpush3.msra.mxu0 %v10713_v16 }
  0x3b   :  { %9189 = vmatprep.mubr.msk.f32.mxu1 %vm10598_vm1, %v12630_v13  ;;  %9236 = vmatprep.subr.mxu0 %v12630_v13 }
  0x3e   :  { %9190 = vmatmul.mubr.f32.vlgmr.msra.gmra.mxu1 %v12630_v13 }
  0x3f   :  { %9204 = vmatpush3.msra.mxu1 %v10797_v25  ;;  %9211 = vmatprep.mubr.msk.f32.mxu1 %vm10598_vm1, %v12630_v13 }
  0x40   :  { %9205 = vmatprep.subr.mxu1 %v12630_v13 }
  0x41   :  { %9206 = vmatpush3.msra.mxu1 %v10800_v26 }
  0x42   :  { %9207 = vmatprep.subr.mxu1 %v12630_v13 }
  0x43   :  { %9208 = vmatpush3.msra.mxu1 %v10806_v27 }
  0x44   :  { %9209 = vmatprep.subr.mxu1 %v12630_v13 }
  0x45   :  { %9210 = vmatpush3.msra.mxu1 %v10810_v28 }
  0x46   :  { %9212 = vmatmul.mubr.f32.vlgmr.msra.gmra.mxu1 %v12630_v13  ;;  %9225 = vmatprep.subr.mxu1 %v12630_v13 }
  0x47   :  { %9226 = vmatpush3.msra.mxu1 %v10752_v21  ;;  %9233 = vmatprep.mubr.msk.f32.mxu1 %vm10598_vm1, %v12630_v13 }
  0x48   :  { %9227 = vmatprep.subr.mxu1 %v12630_v13 }
  0x49   :  { %9228 = vmatpush3.msra.mxu1 %v10758_v22 }
  0x4a   :  { %9229 = vmatprep.subr.mxu1 %v12630_v13 }
  0x4b   :  { %9230 = vmatpush3.msra.mxu1 %v10764_v23 }
  0x4c   :  { %9231 = vmatprep.subr.mxu1 %v12630_v13 }
  0x4d   :  { %9232 = vmatpush3.msra.mxu1 %v10772_v24 }
  0x4e   :  { %9247 = vmatprep.subr.mxu1 %v12630_v13 }
  0xd2   :  { %v9118_v30 = vpop.f32.mrf.mxu0  ;;  %v9121_v31 = vpop.f32.mrf.mxu1 }
  0xd3   :  { %v10830_v32 = vadd.f32 %v9118_v30, %v10827_v29  ;;  %v10833_v33 = vadd.f32 %v9121_v31, %v10827_v29 }
  0xd4   :  { %v134_v34 = vpop.f32.mrf.mxu0  ;;  %v10835_v35 = vpop.f32.mrf.mxu1 }
  0xd6   :  { %v9124_v37 = vpop.f32.mrf.mxu1  ;;  %v9146_v38 = vpop.f32.mrf.mxu0 }
  0xd7   :  { %v10840_v39 = vadd.f32 %v9124_v37, %v10827_v29  ;;  %v10843_v40 = vadd.f32 %v9146_v38, %v10837_v36 }
  0xd8   :  { %v10845_v41 = vpop.f32.mrf.mxu1  ;;  %v10847_v42 = vpop.f32.mrf.mxu0 }
  0xda   :  { %v9127_v43 = vpop.f32.mrf.mxu1  ;;  %v9149_v44 = vpop.f32.mrf.mxu0 }
  0xdb   :  { %v10850_v45 = vadd.f32 %v9127_v43, %v10827_v29  ;;  %v10853_v46 = vadd.f32 %v9149_v44, %v10837_v36  ;;  %v135_v43 = vadd.f32 %v10827_v29, %v134_v34 }
  0xdc   :  { %v10855_v47 = vpop.f32.mrf.mxu1  ;;  %v366_v48 = vpop.f32.mrf.mxu0 }
  0xdd   :  { %12632 = vst [vmem:[#allocation9_spill] sm:$0xff] %v10850_v45  ;;  %v10860_v50 = vadd.f32 %v10837_v36, %v366_v48 }
  0xde   :  { %v9132_v51 = vpop.f32.mrf.mxu1  ;;  %v9152_v52 = vpop.f32.mrf.mxu0 }
  0xdf   :  { %v10863_v53 = vadd.f32 %v9132_v51, %v10857_v49  ;;  %v10866_v54 = vadd.f32 %v9152_v52, %v10837_v36 }
  0xe0   :  { %v245_v55 = vpop.f32.mrf.mxu1  ;;  %v376_v56 = vpop.f32.mrf.mxu0 }
  0xe1   :  { %v10869_v57 = vadd.f32 %v10837_v36, %v376_v56  ;;  %v246_v34 = vadd.f32 %v10857_v49, %v245_v55 }
  0xe2   :  { %v9135_v58 = vpop.f32.mrf.mxu1  ;;  %v9155_v59 = vpop.f32.mrf.mxu0 }
  0xe3   :  { %v10872_v60 = vadd.f32 %v9135_v58, %v10857_v49  ;;  %v10875_v61 = vadd.f32 %v9155_v59, %v10837_v36 }
  0xe4   :  { %v10877_v62 = vpop.f32.mrf.mxu1  ;;  %v386_v63 = vpop.f32.mrf.mxu0 }
  0xe5   :  { %12633 = vst [vmem:[#allocation10_spill] sm:$0xff] %v10875_v61  ;;  %v10880_v0 = vadd.f32 %v10837_v36, %v386_v63 }
  0xe6   :  { %v9138_v1 = vpop.f32.mrf.mxu1  ;;  %v592_v2 = vpop.f32.mrf.mxu0 }
  0xe7   :  { %v10883_v3 = vadd.f32 %v9138_v1, %v10857_v49  ;;  %v806_v52 = vadd.f32 %v592_v2, %v135_v43 }
  0xe8   :  { %v10885_v4 = vpop.f32.mrf.mxu1  ;;  %v9180_v5 = vpop.f32.mrf.mxu0 }
  0xe9   :  { %v8340_v1 = vmul.f32 -1.442695, %v806_v52 }
  0xea   :  { %v9141_v6 = vpop.f32.mrf.mxu1 }
  0xeb   :  { %v10888_v7 = vadd.f32 %v9141_v6, %v10857_v49  ;;  %10259 = vpow2.f32 %v8340_v1 }
  0xec   :  { %v275_v8 = vpop.f32.mrf.mxu1 }
  0xed   :  { %12634 = vst [vmem:[#allocation11_spill] sm:$0xff] %v10888_v7  ;;  %v10891_v10 = vadd.f32 %v10857_v49, %v275_v8 }
  0xee   :  { %v9160_v12 = vpop.f32.mrf.mxu1  ;;  %v732_v30 = vpop.f32.mrf.mxu0 }
  0xef   :  { %v10893_v31 = vadd.f32 %v9160_v12, %v8331_v9 }
  0xf0   :  { %v467_v37 = vpop.f32.mrf.mxu1  ;;  %v9202_v38 = vpop.f32.mrf.mxu0 }
  0xf2   :  { %v9163_v44 = vpop.f32.mrf.mxu1 }
  0xf3   :  { %v10896_v48 = vadd.f32 %v9163_v44, %v8331_v9 }
  0xf4   :  { %v477_v51 = vpop.f32.mrf.mxu1 }
  0xf5   :  { %v10898_v56 = vadd.f32 %v8331_v9, %v477_v51 }
  0xf6   :  { %v9166_v58 = vpop.f32.mrf.mxu1 }
  0xf7   :  { %v10900_v59 = vadd.f32 %v9166_v58, %v8331_v9  ;;  %v468_v58 = vadd.f32 %v8331_v9, %v467_v37 }
  0xf8   :  { %v487_v63 = vpop.f32.mrf.mxu1 }
  0xf9   :  { %v10902_v5 = vadd.f32 %v8331_v9, %v487_v63  ;;  %v10260_v63 = vpop.eup %10259 }
  0xfa   :  { %v9169_v6 = vpop.f32.mrf.mxu1  ;;  %v810_v7 = vadd.f32 1.0, %v10260_v63 }
  0xfb   :  { %v10904_v8 = vadd.f32 %v9169_v6, %v8331_v9  ;;  %v357_v6 = vadd.f32 %v10837_v36, %v10847_v42 }
  0xfc   :  { %v497_v12 = vpop.f32.mrf.mxu1 }
  0xfd   :  { %12635 = vst [vmem:[#allocation12_spill] sm:$0xff] %v10904_v8  ;;  %v10907_v38 = vadd.f32 %v8331_v9, %v497_v12  ;;  %v820_v45 = vadd.f32 %v732_v30, %v357_v6 }
  0xfe   :  { %v662_v44 = vpop.f32.mrf.mxu1 }
  0xff   :  { %v813_v2 = vadd.f32 %v662_v44, %v246_v34 }
 0x100   :  { %v9191_v43 = vpop.f32.mrf.mxu1 }
 0x101   :  { %v8341_v51 = vmul.f32 -1.442695, %v813_v2 }
 0x103   :  { %10261 = vpow2.f32 %v8341_v51 }
 0x106   :  { %v802_v13 = vpop.f32.mrf.mxu1 }
 0x107   :  { %v822_v61 = vadd.f32 %v802_v13, %v468_v58 }
 0x108   :  { %v9213_v52 = vpop.f32.mrf.mxu1 }
 0x109   :  { %v8342_v8 = vmul.f32 -1.442695, %v822_v61 }
 0x10b   :  { %10263 = vpow2.f32 %v8342_v8 }
 0x10c   :  { %10265 = vrcp.f32 %v810_v7 }
 0x10d   :  { %10267 = vtanh.f32 %v820_v45  ;;  %v12636_v45 = vmov 0.0  }
 0x110   :  { %v10262_v55 = vpop.eup %10261 }
 0x111   :  { %v817_v1 = vadd.f32 1.0, %v10262_v55 }
 0x113   :  { %10269 = vrcp.f32 %v817_v1 }
 0x118   :  { %v10264_v12 = vpop.eup %10263 }
 0x119   :  { %v10266_v34 = vpop.eup %10265  ;;  %v826_v37 = vadd.f32 1.0, %v10264_v12 }
 0x11a   :  { %v10268_v44 = vpop.eup %10267 }
 0x11b   :  { %v830_v2 = vmul.f32 %v10268_v44, %v10266_v34  ;;  %10271 = vrcp.f32 %v826_v37 }
 0x120   :  { %v10270_v9 = vpop.eup %10269 }
 0x121   :  { %v829_v13 = vmul.f32 0.0, %v10270_v9 }
 0x123   :  { %v10911_v43 = vadd.f32 %v830_v2, %v829_v13 }
 0x125   :  { %10273 = vtanh.f32 %v10911_v43 }
 0x128   :  { %v10272_v36 = vpop.eup %10271 }
 0x132   :  { %v10274_v42 = vpop.eup %10273 }
 0x133   :  { %v833_v61 = vmul.f32 %v10274_v42, %v10272_v36 }
 0x135   :  { %834 = vst.msk [vmem:[#allocation2] sm:$0xff] %vm522_vm2, %v833_v61  ;;  %9223 = vmatmul.mubr.msk.f32.vlgmr.msra.gmra.mxu0 %vm522_vm2, %v833_v61  ;;  %9234 = vmatmul.mubr.msk.f32.vlgmr.msra.gmra.mxu1 %vm522_vm2, %v833_v61 }
 0x136   :  { %9237 = vmatpush3.msra.mxu0 %v10726_v17  ;;  %9248 = vmatpush3.msra.mxu1 %v10797_v25 }
 0x137   :  { %9238 = vmatprep.subr.mxu0 %v12636_v45  ;;  %9249 = vmatprep.subr.mxu1 %v12636_v45 }
 0x138   :  { %9239 = vmatpush3.msra.mxu0 %v10732_v18  ;;  %9250 = vmatpush3.msra.mxu1 %v10800_v26 }
 0x139   :  { %9240 = vmatprep.subr.mxu0 %v12636_v45  ;;  %9251 = vmatprep.subr.mxu1 %v12636_v45 }
 0x13a   :  { %9241 = vmatpush3.msra.mxu0 %v10738_v19  ;;  %9252 = vmatpush3.msra.mxu1 %v10806_v27 }
 0x13b   :  { %9242 = vmatprep.subr.mxu0 %v12636_v45  ;;  %9253 = vmatprep.subr.mxu1 %v12636_v45 }
 0x13c   :  { %9243 = vmatpush3.msra.mxu0 %v10746_v20  ;;  %9244 = vmatprep.mubr.msk.f32.mxu0 %vm10598_vm1, %v12636_v45 }
 0x13d   :  { %9254 = vmatpush3.msra.mxu1 %v10810_v28  ;;  %9255 = vmatprep.mubr.msk.f32.mxu1 %vm10598_vm1, %v12636_v45 }
 0x13e   :  { %9245 = vmatmul.mubr.msk.f32.vlgmr.msra.gmra.mxu0 %vm522_vm2, %v833_v61  ;;  %9256 = vmatmul.mubr.msk.f32.vlgmr.msra.gmra.mxu1 %vm522_vm2, %v833_v61 }
 0x13f   :  { %9258 = vmatprep.subr.mxu0 %v12636_v45  ;;  %9269 = vmatprep.subr.mxu1 %v12636_v45 }
 0x140   :  { %9259 = vmatpush3.msra.mxu0 %v10676_v11  ;;  %9270 = vmatpush3.msra.mxu1 %v10752_v21 }
 0x141   :  { %9260 = vmatprep.subr.mxu0 %v12636_v45  ;;  %9271 = vmatprep.subr.mxu1 %v12636_v45 }
 0x142   :  { %9261 = vmatpush3.msra.mxu0 %v10693_v14  ;;  %9272 = vmatpush3.msra.mxu1 %v10758_v22 }
 0x143   :  { %9262 = vmatprep.subr.mxu0 %v12636_v45  ;;  %9273 = vmatprep.subr.mxu1 %v12636_v45 }
 0x144   :  { %9263 = vmatpush3.msra.mxu0 %v10705_v15  ;;  %9274 = vmatpush3.msra.mxu1 %v10764_v23 }
 0x145   :  { %9264 = vmatprep.subr.mxu0 %v12636_v45  ;;  %9275 = vmatprep.subr.mxu1 %v12636_v45 }
 0x146   :  { %9265 = vmatpush3.msra.mxu0 %v10713_v16  ;;  %9276 = vmatpush3.msra.mxu1 %v10772_v24 }
 0x147   :  { %9266 = vmatprep.mubr.msk.f32.mxu0 %vm10598_vm1, %v12636_v45  ;;  %9277 = vmatprep.mubr.msk.f32.mxu1 %vm10598_vm1, %v12636_v45 }
 0x148   :  { %9280 = vmatprep.subr.mxu0 %v12636_v45  ;;  %9291 = vmatprep.subr.mxu1 %v12636_v45 }
 0x1f5   :  { %v904_v7 = vpop.f32.mrf.mxu0  ;;  %v974_v30 = vpop.f32.mrf.mxu1 }
 0x1f6   :  { %v1118_v8 = vadd.f32 %v904_v7, %v10830_v32  ;;  %v1125_v51 = vadd.f32 %v974_v30, %v10863_v53 }
 0x1f7   :  { %v9224_v58 = vpop.f32.mrf.mxu0  ;;  %v9235_v52 = vpop.f32.mrf.mxu1 }
 0x1f8   :  { %v8347_v63 = vmul.f32 -1.442695, %v1118_v8  ;;  %v8348_v6 = vmul.f32 -1.442695, %v1125_v51 }
 0x1fa   :  { %10275 = vpow2.f32 %v8347_v63  ;;  %v256_v63 = vadd.f32 %v10857_v49, %v10877_v62 }
 0x1fb   :  { %10277 = vpow2.f32 %v8348_v6 }
 0x1fe   :  { %v1044_v55 = vpop.f32.mrf.mxu0  ;;  %v1114_v1 = vpop.f32.mrf.mxu1 }
 0x1ff   :  { %v1134_v12 = vadd.f32 %v1114_v1, %v10893_v31  ;;  %v1132_v37 = vadd.f32 %v1044_v55, %v10843_v40 }
 0x200   :  { %v9246_v34 = vpop.f32.mrf.mxu0  ;;  %v9257_v44 = vpop.f32.mrf.mxu1 }
 0x201   :  { %v8349_v9 = vmul.f32 -1.442695, %v1134_v12 }
 0x203   :  { %10279 = vpow2.f32 %v8349_v9 }
 0x204   :  { %10281 = vtanh.f32 %v1132_v37 }
 0x207   :  { %v10276_v13 = vpop.eup %10275 }
 0x208   :  { %v10278_v2 = vpop.eup %10277  ;;  %v1122_v32 = vadd.f32 1.0, %v10276_v13 }
 0x209   :  { %v1129_v53 = vadd.f32 1.0, %v10278_v2 }
 0x20a   :  { %10283 = vrcp.f32 %v1122_v32 }
 0x20b   :  { %10285 = vrcp.f32 %v1129_v53 }
 0x210   :  { %v10280_v36 = vpop.eup %10279 }
 0x211   :  { %v10282_v42 = vpop.eup %10281  ;;  %v1138_v8 = vadd.f32 1.0, %v10280_v36 }
 0x213   :  { %10287 = vrcp.f32 %v1138_v8 }
 0x217   :  { %v10284_v61 = vpop.eup %10283 }
 0x218   :  { %v10286_v7 = vpop.eup %10285  ;;  %v1142_v30 = vmul.f32 %v10284_v61, %v10282_v42 }
 0x219   :  { %v1141_v31 = vmul.f32 %v10286_v7, %v10911_v43  ;;  %v145_v43 = vadd.f32 %v10827_v29, %v10835_v35 }
 0x21b   :  { %v10964_v51 = vadd.f32 %v1142_v30, %v1141_v31 }
 0x21d   :  { %10289 = vtanh.f32 %v10964_v51 }
 0x220   :  { %v10288_v40 = vpop.eup %10287 }
 0x22a   :  { %v10290_v58 = vpop.eup %10289 }
 0x22b   :  { %v1145_v52 = vmul.f32 %v10290_v58, %v10288_v40 }
 0x22d   :  { %1146 = vst.msk [vmem:[#allocation2 + $0x8] sm:$0xff] %vm522_vm2, %v1145_v52  ;;  %9267 = vmatmul.mubr.msk.f32.vlgmr.msra.gmra.mxu0 %vm522_vm2, %v1145_v52  ;;  %9278 = vmatmul.mubr.msk.f32.vlgmr.msra.gmra.mxu1 %vm522_vm2, %v1145_v52 }
 0x22e   :  { %9281 = vmatpush3.msra.mxu0 %v10726_v17  ;;  %9292 = vmatpush3.msra.mxu1 %v10797_v25 }
 0x22f   :  { %9282 = vmatprep.subr.mxu0 %v12636_v45  ;;  %9293 = vmatprep.subr.mxu1 %v12636_v45 }
 0x230   :  { %9283 = vmatpush3.msra.mxu0 %v10732_v18  ;;  %9294 = vmatpush3.msra.mxu1 %v10800_v26 }
 0x231   :  { %9284 = vmatprep.subr.mxu0 %v12636_v45  ;;  %9295 = vmatprep.subr.mxu1 %v12636_v45 }
 0x232   :  { %9285 = vmatpush3.msra.mxu0 %v10738_v19  ;;  %9296 = vmatpush3.msra.mxu1 %v10806_v27 }
 0x233   :  { %9286 = vmatprep.subr.mxu0 %v12636_v45  ;;  %9297 = vmatprep.subr.mxu1 %v12636_v45 }
 0x234   :  { %9287 = vmatpush3.msra.mxu0 %v10746_v20  ;;  %9288 = vmatprep.mubr.msk.f32.mxu0 %vm10598_vm1, %v12636_v45 }
 0x235   :  { %9298 = vmatpush3.msra.mxu1 %v10810_v28  ;;  %9299 = vmatprep.mubr.msk.f32.mxu1 %vm10598_vm1, %v12636_v45 }
 0x236   :  { %9289 = vmatmul.mubr.msk.f32.vlgmr.msra.gmra.mxu0 %vm522_vm2, %v1145_v52  ;;  %9300 = vmatmul.mubr.msk.f32.vlgmr.msra.gmra.mxu1 %vm522_vm2, %v1145_v52 }
 0x237   :  { %9302 = vmatprep.subr.mxu0 %v12636_v45  ;;  %9313 = vmatprep.subr.mxu1 %v12636_v45 }
 0x238   :  { %9303 = vmatpush3.msra.mxu0 %v10676_v11  ;;  %9314 = vmatpush3.msra.mxu1 %v10752_v21 }
 0x239   :  { %9304 = vmatprep.subr.mxu0 %v12636_v45  ;;  %9315 = vmatprep.subr.mxu1 %v12636_v45 }
 0x23a   :  { %9305 = vmatpush3.msra.mxu0 %v10693_v14  ;;  %9316 = vmatpush3.msra.mxu1 %v10758_v22 }
 0x23b   :  { %9306 = vmatprep.subr.mxu0 %v12636_v45  ;;  %9317 = vmatprep.subr.mxu1 %v12636_v45 }
 0x23c   :  { %9307 = vmatpush3.msra.mxu0 %v10705_v15  ;;  %9318 = vmatpush3.msra.mxu1 %v10764_v23 }
 0x23d   :  { %9308 = vmatprep.subr.mxu0 %v12636_v45  ;;  %9319 = vmatprep.subr.mxu1 %v12636_v45 }
 0x23e   :  { %9309 = vmatpush3.msra.mxu0 %v10713_v16  ;;  %9320 = vmatpush3.msra.mxu1 %v10772_v24 }
 0x23f   :  { %9310 = vmatprep.mubr.msk.f32.mxu0 %vm10598_vm1, %v12636_v45  ;;  %9321 = vmatprep.mubr.msk.f32.mxu1 %vm10598_vm1, %v12636_v45 }
 0x240   :  { %9324 = vmatprep.subr.mxu0 %v12636_v45  ;;  %9335 = vmatprep.subr.mxu1 %v12636_v45 }
 0x2ed   :  { %v1216_v6 = vpop.f32.mrf.mxu0  ;;  %v1286_v55 = vpop.f32.mrf.mxu1 }
 0x2ee   :  { %v1430_v1 = vadd.f32 %v1216_v6, %v145_v43  ;;  %v1437_v12 = vadd.f32 %v1286_v55, %v256_v63 }
 0x2ef   :  { %v9268_v34 = vpop.f32.mrf.mxu0  ;;  %v9279_v44 = vpop.f32.mrf.mxu1 }
 0x2f0   :  { %v8354_v9 = vmul.f32 -1.442695, %v1430_v1  ;;  %v8355_v37 = vmul.f32 -1.442695, %v1437_v12 }
 0x2f2   :  { %10291 = vpow2.f32 %v8354_v9 }
 0x2f3   :  { %10293 = vpow2.f32 %v8355_v37 }
 0x2f6   :  { %v1356_v13 = vpop.f32.mrf.mxu0  ;;  %v1426_v2 = vpop.f32.mrf.mxu1 }
 0x2f7   :  { %v1446_v32 = vadd.f32 %v1426_v2, %v10898_v56  ;;  %v1444_v42 = vadd.f32 %v1356_v13, %v10860_v50 }
 0x2f8   :  { %v9290_v53 = vpop.f32.mrf.mxu0  ;;  %v9301_v36 = vpop.f32.mrf.mxu1 }
 0x2f9   :  { %v8356_v35 = vmul.f32 -1.442695, %v1446_v32 }
 0x2fb   :  { %10295 = vpow2.f32 %v8356_v35 }
 0x2fc   :  { %10297 = vtanh.f32 %v1444_v42 }
 0x2ff   :  { %v10292_v62 = vpop.eup %10291 }
 0x300   :  { %v10294_v61 = vpop.eup %10293  ;;  %v1434_v7 = vadd.f32 1.0, %v10292_v62 }
 0x301   :  { %v1441_v30 = vadd.f32 1.0, %v10294_v61 }
 0x302   :  { %10299 = vrcp.f32 %v1434_v7 }
 0x303   :  { %10301 = vrcp.f32 %v1441_v30 }
 0x308   :  { %v10296_v8 = vpop.eup %10295 }
 0x309   :  { %v10298_v31 = vpop.eup %10297  ;;  %v1450_v43 = vadd.f32 1.0, %v10296_v8 }
 0x30b   :  { %10303 = vrcp.f32 %v1450_v43 }
 0x30f   :  { %v10300_v40 = vpop.eup %10299 }
 0x310   :  { %v10302_v58 = vpop.eup %10301  ;;  %v1454_v52 = vmul.f32 %v10300_v40, %v10298_v31 }
 0x311   :  { %v1453_v56 = vmul.f32 %v10302_v58, %v10964_v51 }
 0x313   :  { %v11019_v63 = vadd.f32 %v1454_v52, %v1453_v56 }
 0x315   :  { %10305 = vtanh.f32 %v11019_v63 }
 0x318   :  { %v10304_v50 = vpop.eup %10303 }
 0x322   :  { %v10306_v6 = vpop.eup %10305 }
 0x323   :  { %v1457_v55 = vmul.f32 %v10306_v6, %v10304_v50 }
 0x325   :  { %1458 = vst.msk [vmem:[#allocation2 + $0x10] sm:$0xff] %vm522_vm2, %v1457_v55  ;;  %9311 = vmatmul.mubr.msk.f32.vlgmr.msra.gmra.mxu0 %vm522_vm2, %v1457_v55  ;;  %9322 = vmatmul.mubr.msk.f32.vlgmr.msra.gmra.mxu1 %vm522_vm2, %v1457_v55 }
 0x326   :  { %9325 = vmatpush3.msra.mxu0 %v10726_v17  ;;  %9336 = vmatpush3.msra.mxu1 %v10797_v25 }
 0x327   :  { %9326 = vmatprep.subr.mxu0 %v12636_v45  ;;  %9337 = vmatprep.subr.mxu1 %v12636_v45 }
 0x328   :  { %9327 = vmatpush3.msra.mxu0 %v10732_v18  ;;  %9338 = vmatpush3.msra.mxu1 %v10800_v26 }
 0x329   :  { %9328 = vmatprep.subr.mxu0 %v12636_v45  ;;  %9339 = vmatprep.subr.mxu1 %v12636_v45 }
 0x32a   :  { %9329 = vmatpush3.msra.mxu0 %v10738_v19  ;;  %9340 = vmatpush3.msra.mxu1 %v10806_v27 }
 0x32b   :  { %9330 = vmatprep.subr.mxu0 %v12636_v45  ;;  %9341 = vmatprep.subr.mxu1 %v12636_v45 }
 0x32c   :  { %9331 = vmatpush3.msra.mxu0 %v10746_v20  ;;  %9332 = vmatprep.mubr.msk.f32.mxu0 %vm10598_vm1, %v12636_v45 }
 0x32d   :  { %9342 = vmatpush3.msra.mxu1 %v10810_v28  ;;  %9343 = vmatprep.mubr.msk.f32.mxu1 %vm10598_vm1, %v12636_v45 }
 0x32e   :  { %9333 = vmatmul.mubr.msk.f32.vlgmr.msra.gmra.mxu0 %vm522_vm2, %v1457_v55  ;;  %9344 = vmatmul.mubr.msk.f32.vlgmr.msra.gmra.mxu1 %vm522_vm2, %v1457_v55 }
 0x32f   :  { %9346 = vmatprep.subr.mxu0 %v12636_v45  ;;  %9357 = vmatprep.subr.mxu1 %v12636_v45 }
 0x330   :  { %9347 = vmatpush3.msra.mxu0 %v10676_v11  ;;  %9358 = vmatpush3.msra.mxu1 %v10752_v21 }
 0x331   :  { %9348 = vmatprep.subr.mxu0 %v12636_v45  ;;  %9359 = vmatprep.subr.mxu1 %v12636_v45 }
 0x332   :  { %9349 = vmatpush3.msra.mxu0 %v10693_v14  ;;  %9360 = vmatpush3.msra.mxu1 %v10758_v22 }
 0x333   :  { %9350 = vmatprep.subr.mxu0 %v12636_v45  ;;  %9361 = vmatprep.subr.mxu1 %v12636_v45 }
 0x334   :  { %9351 = vmatpush3.msra.mxu0 %v10705_v15  ;;  %9362 = vmatpush3.msra.mxu1 %v10764_v23 }
 0x335   :  { %9352 = vmatprep.subr.mxu0 %v12636_v45  ;;  %9363 = vmatprep.subr.mxu1 %v12636_v45 }
 0x336   :  { %9353 = vmatpush3.msra.mxu0 %v10713_v16  ;;  %9364 = vmatpush3.msra.mxu1 %v10772_v24 }
 0x337   :  { %9354 = vmatprep.mubr.msk.f32.mxu0 %vm10598_vm1, %v12636_v45  ;;  %9365 = vmatprep.mubr.msk.f32.mxu1 %vm10598_vm1, %v12636_v45 }
 0x338   :  { %9368 = vmatprep.subr.mxu0 %v12636_v45  ;;  %9379 = vmatprep.subr.mxu1 %v12636_v45 }
 0x3e5   :  { %v1528_v51 = vpop.f32.mrf.mxu0  ;;  %v1598_v1 = vpop.f32.mrf.mxu1 }
 0x3e6   :  { %v1742_v12 = vadd.f32 %v1528_v51, %v10833_v33  ;;  %v1749_v34 = vadd.f32 %v1598_v1, %v10872_v60 }
 0x3e7   :  { %v9312_v44 = vpop.f32.mrf.mxu0  ;;  %v9323_v9 = vpop.f32.mrf.mxu1 }
 0x3e8   :  { %v8361_v37 = vmul.f32 -1.442695, %v1742_v12  ;;  %v8362_v13 = vmul.f32 -1.442695, %v1749_v34 }
 0x3ea   :  { %10307 = vpow2.f32 %v8361_v37 }
 0x3eb   :  { %10309 = vpow2.f32 %v8362_v13 }
 0x3ee   :  { %v1668_v2 = vpop.f32.mrf.mxu0  ;;  %v1738_v32 = vpop.f32.mrf.mxu1 }
 0x3ef   :  { %v1758_v53 = vadd.f32 %v1738_v32, %v10896_v48  ;;  %v1756_v62 = vadd.f32 %v1668_v2, %v10853_v46 }
 0x3f0   :  { %v9334_v36 = vpop.f32.mrf.mxu0  ;;  %v9345_v35 = vpop.f32.mrf.mxu1 }
 0x3f1   :  { %v8363_v42 = vmul.f32 -1.442695, %v1758_v53 }
 0x3f3   :  { %10311 = vpow2.f32 %v8363_v42 }
 0x3f4   :  { %10313 = vtanh.f32 %v1756_v62 }
 0x3f7   :  { %v10308_v61 = vpop.eup %10307 }
 0x3f8   :  { %v10310_v7 = vpop.eup %10309  ;;  %v1746_v33 = vadd.f32 1.0, %v10308_v61 }
 0x3f9   :  { %v1753_v60 = vadd.f32 1.0, %v10310_v7 }
 0x3fa   :  { %10315 = vrcp.f32 %v1746_v33 }
 0x3fb   :  { %10317 = vrcp.f32 %v1753_v60 }
 0x400   :  { %v10312_v30 = vpop.eup %10311 }
 0x401   :  { %v10314_v8 = vpop.eup %10313  ;;  %v1762_v52 = vadd.f32 1.0, %v10312_v30 }
 0x403   :  { %10319 = vrcp.f32 %v1762_v52 }
 0x407   :  { %v10316_v31 = vpop.eup %10315 }
 0x408   :  { %v10318_v40 = vpop.eup %10317  ;;  %v1766_v58 = vmul.f32 %v10316_v31, %v10314_v8 }
 0x409   :  { %v1765_v48 = vmul.f32 %v10318_v40, %v11019_v63 }
 0x40b   :  { %v11072_v43 = vadd.f32 %v1766_v58, %v1765_v48 }
 0x40d   :  { %10321 = vtanh.f32 %v11072_v43 }
 0x410   :  { %v10320_v46 = vpop.eup %10319 }
 0x41a   :  { %v10322_v56 = vpop.eup %10321 }
 0x41b   :  { %v1769_v50 = vmul.f32 %v10322_v56, %v10320_v46 }
 0x41d   :  { %1770 = vst.msk [vmem:[#allocation2 + $0x18] sm:$0xff] %vm522_vm2, %v1769_v50  ;;  %9355 = vmatmul.mubr.msk.f32.vlgmr.msra.gmra.mxu0 %vm522_vm2, %v1769_v50  ;;  %9366 = vmatmul.mubr.msk.f32.vlgmr.msra.gmra.mxu1 %vm522_vm2, %v1769_v50 }
 0x41e   :  { %9369 = vmatpush3.msra.mxu0 %v10726_v17  ;;  %9380 = vmatpush3.msra.mxu1 %v10797_v25 }
 0x41f   :  { %9370 = vmatprep.subr.mxu0 %v12636_v45  ;;  %9381 = vmatprep.subr.mxu1 %v12636_v45 }
 0x420   :  { %9371 = vmatpush3.msra.mxu0 %v10732_v18  ;;  %9382 = vmatpush3.msra.mxu1 %v10800_v26 }
 0x421   :  { %9372 = vmatprep.subr.mxu0 %v12636_v45  ;;  %9383 = vmatprep.subr.mxu1 %v12636_v45 }
 0x422   :  { %9373 = vmatpush3.msra.mxu0 %v10738_v19  ;;  %9384 = vmatpush3.msra.mxu1 %v10806_v27 }
 0x423   :  { %9374 = vmatprep.subr.mxu0 %v12636_v45  ;;  %9385 = vmatprep.subr.mxu1 %v12636_v45 }
 0x424   :  { %9375 = vmatpush3.msra.mxu0 %v10746_v20  ;;  %9376 = vmatprep.mubr.msk.f32.mxu0 %vm10598_vm1, %v12636_v45 }
 0x425   :  { %9386 = vmatpush3.msra.mxu1 %v10810_v28  ;;  %9387 = vmatprep.mubr.msk.f32.mxu1 %vm10598_vm1, %v12636_v45 }
 0x426   :  { %9377 = vmatmul.mubr.msk.f32.vlgmr.msra.gmra.mxu0 %vm522_vm2, %v1769_v50  ;;  %9388 = vmatmul.mubr.msk.f32.vlgmr.msra.gmra.mxu1 %vm522_vm2, %v1769_v50 }
 0x427   :  { %9390 = vmatprep.subr.mxu0 %v12636_v45  ;;  %9401 = vmatprep.subr.mxu1 %v12636_v45 }
 0x428   :  { %9391 = vmatpush3.msra.mxu0 %v10676_v11  ;;  %9402 = vmatpush3.msra.mxu1 %v10752_v21  ;;  %v155_v11 = vadd.f32 %v10827_v29, %v10845_v41 }
 0x429   :  { %9392 = vmatprep.subr.mxu0 %v12636_v45  ;;  %9403 = vmatprep.subr.mxu1 %v12636_v45 }
 0x42a   :  { %9393 = vmatpush3.msra.mxu0 %v10693_v14  ;;  %9404 = vmatpush3.msra.mxu1 %v10758_v22  ;;  %v266_v14 = vadd.f32 %v10857_v49, %v10885_v4 }
 0x42b   :  { %9394 = vmatprep.subr.mxu0 %v12636_v45  ;;  %9405 = vmatprep.subr.mxu1 %v12636_v45 }
 0x42c   :  { %9395 = vmatpush3.msra.mxu0 %v10705_v15  ;;  %9406 = vmatpush3.msra.mxu1 %v10764_v23 }
 0x42d   :  { %9396 = vmatprep.subr.mxu0 %v12636_v45  ;;  %9407 = vmatprep.subr.mxu1 %v12636_v45 }
 0x42e   :  { %9397 = vmatpush3.msra.mxu0 %v10713_v16  ;;  %9408 = vmatpush3.msra.mxu1 %v10772_v24 }
 0x42f   :  { %9398 = vmatprep.mubr.msk.f32.mxu0 %vm10598_vm1, %v12636_v45  ;;  %9409 = vmatprep.mubr.msk.f32.mxu1 %vm10598_vm1, %v12636_v45 }
 0x430   :  { %9412 = vmatprep.subr.mxu0 %v12636_v45  ;;  %9423 = vmatprep.subr.mxu1 %v12636_v45 }
 0x4dd   :  { %v1840_v15 = vpop.f32.mrf.mxu0  ;;  %v1910_v16 = vpop.f32.mrf.mxu1 }
 0x4de   :  { %v2054_v63 = vadd.f32 %v1840_v15, %v155_v11  ;;  %v2061_v6 = vadd.f32 %v1910_v16, %v266_v14 }
 0x4df   :  { %v9356_v55 = vpop.f32.mrf.mxu0  ;;  %v9367_v51 = vpop.f32.mrf.mxu1 }
 0x4e0   :  { %v8368_v1 = vmul.f32 -1.442695, %v2054_v63  ;;  %v8369_v12 = vmul.f32 -1.442695, %v2061_v6  ;;  %v11194_v51 = vld [vmem:[#allocation3 + $0x70] sm:$0xff] }
 0x4e2   :  { %10323 = vpow2.f32 %v8368_v1  ;;  %v11197_v1 = vld [vmem:[#allocation3 + $0x98] sm:$0xff] }
 0x4e3   :  { %10325 = vpow2.f32 %v8369_v12  ;;  %v11202_v12 = vld [vmem:[#allocation3 + $0x68] sm:$0xff] }
 0x4e6   :  { %v1980_v34 = vpop.f32.mrf.mxu0  ;;  %v2050_v44 = vpop.f32.mrf.mxu1 }
 0x4e7   :  { %v2070_v9 = vadd.f32 %v2050_v44, %v10902_v5  ;;  %v2068_v41 = vadd.f32 %v1980_v34, %v10869_v57  ;;  %v11205_v34 = vld [vmem:[#allocation3 + $0x90] sm:$0xff]  ;;  %v11210_v44 = vld [vmem:[#allocation3 + $0x60] sm:$0xff] }
 0x4e8   :  { %v9378_v37 = vpop.f32.mrf.mxu0  ;;  %v9389_v13 = vpop.f32.mrf.mxu1 }
 0x4e9   :  { %v8370_v29 = vmul.f32 -1.442695, %v2070_v9  ;;  %v11213_v9 = vld [vmem:[#allocation3 + $0x88] sm:$0xff]  ;;  %v11218_v37 = vld [vmem:[#allocation3 + $0x58] sm:$0xff]  ;;  %v11223_v13 = vld [vmem:[#allocation3 + $0x80] sm:$0xff] }
 0x4eb   :  { %10327 = vpow2.f32 %v8370_v29  ;;  %v10527_v29 = vld [vmem:[#allocation3 + $0x48] sm:$0xff] }
 0x4ec   :  { %10329 = vtanh.f32 %v2068_v41  ;;  %v10528_v41 = vld [vmem:[#allocation3 + $0x40] sm:$0xff] }
 0x4ef   :  { %v10324_v49 = vpop.eup %10323 }
 0x4f0   :  { %v10326_v4 = vpop.eup %10325  ;;  %v2058_v2 = vadd.f32 1.0, %v10324_v49  ;;  %v10529_v49 = vld [vmem:[#allocation3 + $0x38] sm:$0xff] }
 0x4f1   :  { %v2065_v32 = vadd.f32 1.0, %v10326_v4  ;;  %v10530_v4 = vld [vmem:[#allocation3 + $0x30] sm:$0xff] }
 0x4f2   :  { %10331 = vrcp.f32 %v2058_v2  ;;  %v10531_v2 = vld [vmem:[#allocation3 + $0xa0] ss:$0 sm:$0xff] }
 0x4f3   :  { %10333 = vrcp.f32 %v2065_v32  ;;  %v165_v32 = vadd.f32 %v10531_v2, %v10855_v47 }
 0x4f8   :  { %v10328_v53 = vpop.eup %10327 }
 0x4f9   :  { %v10330_v36 = vpop.eup %10329  ;;  %v2074_v61 = vadd.f32 1.0, %v10328_v53 }
 0x4fb   :  { %10335 = vrcp.f32 %v2074_v61 }
 0x4ff   :  { %v10332_v35 = vpop.eup %10331 }
 0x500   :  { %v10334_v42 = vpop.eup %10333  ;;  %v2078_v62 = vmul.f32 %v10332_v35, %v10330_v36 }
 0x501   :  { %v2077_v5 = vmul.f32 %v10334_v42, %v11072_v43 }
 0x503   :  { %v11127_v7 = vadd.f32 %v2078_v62, %v2077_v5 }
 0x505   :  { %10337 = vtanh.f32 %v11127_v7 }
 0x508   :  { %v10336_v57 = vpop.eup %10335 }
 0x512   :  { %v10338_v33 = vpop.eup %10337 }
 0x513   :  { %v2081_v60 = vmul.f32 %v10338_v33, %v10336_v57 }
 0x515   :  { %2082 = vst.msk [vmem:[#allocation2 + $0x20] sm:$0xff] %vm522_vm2, %v2081_v60  ;;  %9399 = vmatmul.mubr.msk.f32.vlgmr.msra.gmra.mxu0 %vm522_vm2, %v2081_v60  ;;  %9410 = vmatmul.mubr.msk.f32.vlgmr.msra.gmra.mxu1 %vm522_vm2, %v2081_v60 }
 0x516   :  { %9413 = vmatpush3.msra.mxu0 %v10726_v17  ;;  %9424 = vmatpush3.msra.mxu1 %v10797_v25  ;;  %v11155_v17 = vld [vmem:[#allocation3 + $0x20] sm:$0xff] }
 0x517   :  { %9414 = vmatprep.subr.mxu0 %v12636_v45  ;;  %9425 = vmatprep.subr.mxu1 %v12636_v45 }
 0x518   :  { %9415 = vmatpush3.msra.mxu0 %v10732_v18  ;;  %9426 = vmatpush3.msra.mxu1 %v10800_v26  ;;  %v11161_v18 = vld [vmem:[#allocation3 + $0x18] sm:$0xff] }
 0x519   :  { %9416 = vmatprep.subr.mxu0 %v12636_v45  ;;  %9427 = vmatprep.subr.mxu1 %v12636_v45 }
 0x51a   :  { %9417 = vmatpush3.msra.mxu0 %v10738_v19  ;;  %9428 = vmatpush3.msra.mxu1 %v10806_v27  ;;  %v11167_v19 = vld [vmem:[#allocation3 + $0x10] sm:$0xff] }
 0x51b   :  { %9418 = vmatprep.subr.mxu0 %v12636_v45  ;;  %9429 = vmatprep.subr.mxu1 %v12636_v45 }
 0x51c   :  { %9419 = vmatpush3.msra.mxu0 %v10746_v20  ;;  %9420 = vmatprep.mubr.msk.f32.mxu0 %vm10598_vm1, %v12636_v45  ;;  %v11173_v20 = vld [vmem:[#allocation3 + $0x8] sm:$0xff] }
 0x51d   :  { %9430 = vmatpush3.msra.mxu1 %v10810_v28  ;;  %9431 = vmatprep.mubr.msk.f32.mxu1 %vm10598_vm1, %v12636_v45 }
 0x51e   :  { %9421 = vmatmul.mubr.msk.f32.vlgmr.msra.gmra.mxu0 %vm522_vm2, %v2081_v60  ;;  %9432 = vmatmul.mubr.msk.f32.vlgmr.msra.gmra.mxu1 %vm522_vm2, %v2081_v60 }
 0x51f   :  { %9434 = vmatprep.subr.mxu0 %v12636_v45  ;;  %9445 = vmatprep.subr.mxu1 %v12636_v45 }
 0x520   :  { %9435 = vmatpush3.msra.mxu0 %v11155_v17  ;;  %9446 = vmatpush3.msra.mxu1 %v10752_v21 }
 0x521   :  { %9436 = vmatprep.subr.mxu0 %v12636_v45  ;;  %9447 = vmatprep.subr.mxu1 %v12636_v45 }
 0x522   :  { %9437 = vmatpush3.msra.mxu0 %v11161_v18  ;;  %9448 = vmatpush3.msra.mxu1 %v10758_v22 }
 0x523   :  { %9438 = vmatprep.subr.mxu0 %v12636_v45  ;;  %9449 = vmatprep.subr.mxu1 %v12636_v45 }
 0x524   :  { %9439 = vmatpush3.msra.mxu0 %v11167_v19  ;;  %9450 = vmatpush3.msra.mxu1 %v10764_v23 }
 0x525   :  { %9440 = vmatprep.subr.mxu0 %v12636_v45  ;;  %9451 = vmatprep.subr.mxu1 %v12636_v45 }
 0x526   :  { %9441 = vmatpush3.msra.mxu0 %v11173_v20  ;;  %9452 = vmatpush3.msra.mxu1 %v10772_v24 }
 0x527   :  { %9442 = vmatprep.mubr.msk.f32.mxu0 %vm10598_vm1, %v12636_v45  ;;  %9453 = vmatprep.mubr.msk.f32.mxu1 %vm10598_vm1, %v12636_v45 }
 0x528   :  { %9456 = vmatprep.subr.mxu0 %v12636_v45  ;;  %9467 = vmatprep.subr.mxu1 %v12636_v45 }
 0x5d5   :  { %v2152_v21 = vpop.f32.mrf.mxu0  ;;  %v2222_v22 = vpop.f32.mrf.mxu1 }
 0x5d6   :  { %v2366_v23 = vadd.f32 %v2152_v21, %v10840_v39  ;;  %v2373_v25 = vadd.f32 %v2222_v22, %v10883_v3 }
 0x5d7   :  { %v9400_v26 = vpop.f32.mrf.mxu0  ;;  %v9411_v27 = vpop.f32.mrf.mxu1 }
 0x5d8   :  { %v8375_v28 = vmul.f32 -1.442695, %v2366_v23  ;;  %v8376_v24 = vmul.f32 -1.442695, %v2373_v25 }
 0x5da   :  { %10339 = vpow2.f32 %v8375_v28 }
 0x5db   :  { %10341 = vpow2.f32 %v8376_v24 }
 0x5de   :  { %v2292_v30 = vpop.f32.mrf.mxu0  ;;  %v2362_v8 = vpop.f32.mrf.mxu1 }
 0x5df   :  { %v2382_v31 = vadd.f32 %v2362_v8, %v10900_v59  ;;  %v2380_v48 = vadd.f32 %v2292_v30, %v10866_v54 }
 0x5e0   :  { %v9422_v40 = vpop.f32.mrf.mxu0  ;;  %v9433_v58 = vpop.f32.mrf.mxu1 }
 0x5e1   :  { %v8377_v52 = vmul.f32 -1.442695, %v2382_v31  ;;  %v3030_v40 = vld [vmem:[#allocation3 + $0xc0] sm:$0xff] }
 0x5e2   :  { %v3168_v58 = vld [vmem:[#allocation3 + $0x100] sm:$0xff] }
 0x5e3   :  { %10343 = vpow2.f32 %v8377_v52  ;;  %v11279_v52 = vld [vmem:[#allocation2] sm:$0xff] }
 0x5e4   :  { %10345 = vtanh.f32 %v2380_v48  ;;  %v3029_v48 = vld [vmem:[#allocation3 + $0xb8] sm:$0xff] }
 0x5e7   :  { %v10340_v43 = vpop.eup %10339 }
 0x5e8   :  { %v10342_v46 = vpop.eup %10341  ;;  %v2370_v39 = vadd.f32 1.0, %v10340_v43  ;;  %v3167_v43 = vld [vmem:[#allocation3 + $0xf8] sm:$0xff] }
 0x5e9   :  { %v2377_v3 = vadd.f32 1.0, %v10342_v46  ;;  %v3028_v46 = vld [vmem:[#allocation3 + $0xb0] sm:$0xff] }
 0x5ea   :  { %10347 = vrcp.f32 %v2370_v39  ;;  %v3166_v39 = vld [vmem:[#allocation3 + $0xf0] sm:$0xff] }
 0x5eb   :  { %10349 = vrcp.f32 %v2377_v3  ;;  %v3027_v3 = vld [vmem:[#allocation3 + $0xa8] sm:$0xff] }
 0x5f0   :  { %v10344_v56 = vpop.eup %10343 }
 0x5f1   :  { %v10346_v50 = vpop.eup %10345  ;;  %v2386_v16 = vadd.f32 1.0, %v10344_v56  ;;  %v3165_v56 = vld [vmem:[#allocation3 + $0xe8] sm:$0xff] }
 0x5f3   :  { %10351 = vrcp.f32 %v2386_v16 }
 0x5f7   :  { %v10348_v11 = vpop.eup %10347 }
 0x5f8   :  { %v10350_v14 = vpop.eup %10349  ;;  %v2390_v15 = vmul.f32 %v10348_v11, %v10346_v50  ;;  %v11285_v50 = vld [vmem:[#allocation2 + $0x8] sm:$0xff]  ;;  %v11291_v11 = vld [vmem:[#allocation2 + $0x10] sm:$0xff] }
 0x5f9   :  { %v2389_v59 = vmul.f32 %v10350_v14, %v11127_v7  ;;  %v11297_v14 = vld [vmem:[#allocation2 + $0x18] sm:$0xff] }
 0x5fb   :  { %v11188_v63 = vadd.f32 %v2390_v15, %v2389_v59  ;;  %v11303_v15 = vld [vmem:[#allocation2 + $0x20] sm:$0xff] }
 0x5fd   :  { %10353 = vtanh.f32 %v11188_v63 }
 0x600   :  { %v10352_v54 = vpop.eup %10351 }
 0x60a   :  { %v10354_v6 = vpop.eup %10353 }
 0x60b   :  { %v2393_v55 = vmul.f32 %v10354_v6, %v10352_v54  ;;  %v3396_v54 = vld [vmem:[#allocation3 + $0x180] sm:$0xff]  ;;  %v3281_v6 = vld [vmem:[#allocation3 + $0x138] sm:$0xff] }
 0x60d   :  { %2394 = vst.msk [vmem:[#allocation2 + $0x28] sm:$0xff] %vm522_vm2, %v2393_v55  ;;  %9443 = vmatmul.mubr.msk.f32.vlgmr.msra.gmra.mxu0 %vm522_vm2, %v2393_v55  ;;  %9454 = vmatmul.mubr.msk.f32.vlgmr.msra.gmra.mxu1 %vm522_vm2, %v2393_v55 }
 0x60e   :  { %9457 = vmatpush3.msra.mxu0 %v11194_v51  ;;  %9468 = vmatpush3.msra.mxu1 %v11197_v1 }
 0x60f   :  { %9458 = vmatprep.subr.mxu0 %v12636_v45  ;;  %9469 = vmatprep.subr.mxu1 %v12636_v45 }
 0x610   :  { %9459 = vmatpush3.msra.mxu0 %v11202_v12  ;;  %9470 = vmatpush3.msra.mxu1 %v11205_v34 }
 0x611   :  { %9460 = vmatprep.subr.mxu0 %v12636_v45  ;;  %9471 = vmatprep.subr.mxu1 %v12636_v45 }
 0x612   :  { %9461 = vmatpush3.msra.mxu0 %v11210_v44  ;;  %9472 = vmatpush3.msra.mxu1 %v11213_v9 }
 0x613   :  { %9462 = vmatprep.subr.mxu0 %v12636_v45  ;;  %9473 = vmatprep.subr.mxu1 %v12636_v45 }
 0x614   :  { %9463 = vmatpush3.msra.mxu0 %v11218_v37  ;;  %9464 = vmatprep.mubr.msk.f32.mxu0 %vm10598_vm1, %v12636_v45  ;;  %v11309_v16 = vld [vmem:[#allocation2 + $0x28] sm:$0xff] }
 0x615   :  { %9474 = vmatpush3.msra.mxu1 %v11223_v13  ;;  %9475 = vmatprep.mubr.msk.f32.mxu1 %vm10598_vm1, %v12636_v45 }
 0x616   :  { %9465 = vmatmul.mubr.msk.f32.vlgmr.msra.gmra.mxu0 %vm522_vm2, %v2393_v55  ;;  %9476 = vmatmul.mubr.msk.f32.vlgmr.msra.gmra.mxu1 %vm522_vm2, %v2393_v55  ;;  %v3395_v55 = vld [vmem:[#allocation3 + $0x178] sm:$0xff] }
 0x617   :  { %9478 = vmatprep.subr.mxu0 %v12636_v45  ;;  %9489 = vmatprep.subr.mxu1 %v12636_v45 }
 0x618   :  { %9479 = vmatpush3.msra.mxu0 %v11155_v17  ;;  %9490 = vmatpush3.msra.mxu1 %v10527_v29  ;;  %v12638_v29 = vld [vmem:[#allocation11_spill] sm:$0xff] }
 0x619   :  { %9480 = vmatprep.subr.mxu0 %v12636_v45  ;;  %9491 = vmatprep.subr.mxu1 %v12636_v45 }
 0x61a   :  { %9481 = vmatpush3.msra.mxu0 %v11161_v18  ;;  %9492 = vmatpush3.msra.mxu1 %v10528_v41 }
 0x61b   :  { %9482 = vmatprep.subr.mxu0 %v12636_v45  ;;  %9493 = vmatprep.subr.mxu1 %v12636_v45 }
 0x61c   :  { %9483 = vmatpush3.msra.mxu0 %v11167_v19  ;;  %9494 = vmatpush3.msra.mxu1 %v10529_v49 }
 0x61d   :  { %9484 = vmatprep.subr.mxu0 %v12636_v45  ;;  %9495 = vmatprep.subr.mxu1 %v12636_v45 }
 0x61e   :  { %9485 = vmatpush3.msra.mxu0 %v11173_v20  ;;  %9496 = vmatpush3.msra.mxu1 %v10530_v4 }
 0x61f   :  { %9486 = vmatprep.mubr.msk.f32.mxu0 %vm10598_vm1, %v12636_v45  ;;  %9497 = vmatprep.mubr.msk.f32.mxu1 %vm10598_vm1, %v12636_v45 }
 0x620   :  { %9500 = vmatprep.subr.mxu0 %v12636_v45  ;;  %9511 = vmatprep.subr.mxu1 %v12636_v45 }
 0x6cd   :  { %v2464_v53 = vpop.f32.mrf.mxu0  ;;  %v2534_v36 = vpop.f32.mrf.mxu1 }
 0x6ce   :  { %v2678_v35 = vadd.f32 %v2464_v53, %v165_v32  ;;  %v2685_v42 = vadd.f32 %v2534_v36, %v10891_v10 }
 0x6cf   :  { %v9444_v62 = vpop.f32.mrf.mxu0  ;;  %v9455_v61 = vpop.f32.mrf.mxu1 }
 0x6d0   :  { %v8382_v5 = vmul.f32 -1.442695, %v2678_v35  ;;  %v8383_v7 = vmul.f32 -1.442695, %v2685_v42  ;;  %v12639_v35 = vld [vmem:[#allocation12_spill] sm:$0xff] }
 0x6d2   :  { %10355 = vpow2.f32 %v8382_v5 }
 0x6d3   :  { %10357 = vpow2.f32 %v8383_v7  ;;  %v12640_v7 = vld [vmem:[#allocation10_spill] sm:$0xff] }
 0x6d6   :  { %v2604_v57 = vpop.f32.mrf.mxu0  ;;  %v2674_v33 = vpop.f32.mrf.mxu1 }
 0x6d7   :  { %v2694_v60 = vadd.f32 %v2674_v33, %v10907_v38  ;;  %v2692_v47 = vadd.f32 %v2604_v57, %v10880_v0 }
 0x6d8   :  { %v9466_v17 = vpop.f32.mrf.mxu0  ;;  %v9477_v18 = vpop.f32.mrf.mxu1 }
 0x6d9   :  { %v8384_v19 = vmul.f32 -1.442695, %v2694_v60 }
 0x6db   :  { %10359 = vpow2.f32 %v8384_v19 }
 0x6dc   :  { %10361 = vtanh.f32 %v2692_v47 }
 0x6df   :  { %v10356_v20 = vpop.eup %10355 }
 0x6e0   :  { %v10358_v21 = vpop.eup %10357  ;;  %v2682_v22 = vadd.f32 1.0, %v10356_v20 }
 0x6e1   :  { %v2689_v10 = vadd.f32 1.0, %v10358_v21 }
 0x6e2   :  { %10363 = vrcp.f32 %v2682_v22 }
 0x6e3   :  { %10365 = vrcp.f32 %v2689_v10 }
 0x6e8   :  { %v10360_v23 = vpop.eup %10359 }
 0x6e9   :  { %v10362_v25 = vpop.eup %10361  ;;  %v2698_v24 = vadd.f32 1.0, %v10360_v23 }
 0x6eb   :  { %10367 = vrcp.f32 %v2698_v24 }
 0x6ef   :  { %v10364_v26 = vpop.eup %10363 }
 0x6f0   :  { %v10366_v27 = vpop.eup %10365  ;;  %v2702_v28 = vmul.f32 %v10364_v26, %v10362_v25 }
 0x6f1   :  { %v2701_v38 = vmul.f32 %v10366_v27, %v11188_v63  ;;  %v3282_v63 = vld [vmem:[#allocation3 + $0x140] sm:$0xff] }
 0x6f3   :  { %v11253_v30 = vadd.f32 %v2702_v28, %v2701_v38  ;;  %v11335_v38 = vld [vmem:[#allocation3 + $0xe0] sm:$0xff] }
 0x6f5   :  { %10369 = vtanh.f32 %v11253_v30 }
 0x6f8   :  { %v10368_v0 = vpop.eup %10367 }
 0x702   :  { %v10370_v8 = vpop.eup %10369 }
 0x703   :  { %v2705_v31 = vmul.f32 %v10370_v8, %v10368_v0  ;;  %v11351_v0 = vld [vmem:[#allocation3 + $0xd8] sm:$0xff] }
 0x704   :  { %v11353_v8 = vld [vmem:[#allocation3 + $0x118] sm:$0xff] }
 0x705   :  { %2706 = vst.msk [vmem:[#allocation2 + $0x30] sm:$0xff] %vm522_vm2, %v2705_v31  ;;  %9487 = vmatmul.mubr.msk.f32.vlgmr.msra.gmra.mxu0 %vm522_vm2, %v2705_v31  ;;  %9498 = vmatmul.mubr.msk.f32.vlgmr.msra.gmra.mxu1 %vm522_vm2, %v2705_v31 }
 0x706   :  { %9501 = vmatpush3.msra.mxu0 %v11194_v51  ;;  %9512 = vmatpush3.msra.mxu1 %v11197_v1  ;;  %v3280_v51 = vld [vmem:[#allocation3 + $0x130] sm:$0xff] }
 0x707   :  { %9502 = vmatprep.subr.mxu0 %v12636_v45  ;;  %9513 = vmatprep.subr.mxu1 %v12636_v45  ;;  %v3394_v1 = vld [vmem:[#allocation3 + $0x170] sm:$0xff] }
 0x708   :  { %9503 = vmatpush3.msra.mxu0 %v11202_v12  ;;  %9514 = vmatpush3.msra.mxu1 %v11205_v34  ;;  %v3279_v12 = vld [vmem:[#allocation3 + $0x128] sm:$0xff] }
 0x709   :  { %9504 = vmatprep.subr.mxu0 %v12636_v45  ;;  %9515 = vmatprep.subr.mxu1 %v12636_v45  ;;  %v3393_v34 = vld [vmem:[#allocation3 + $0x168] sm:$0xff] }
 0x70a   :  { %9505 = vmatpush3.msra.mxu0 %v11210_v44  ;;  %9516 = vmatpush3.msra.mxu1 %v11213_v9 }
 0x70b   :  { %9506 = vmatprep.subr.mxu0 %v12636_v45  ;;  %9517 = vmatprep.subr.mxu1 %v12636_v45 }
 0x70c   :  { %9507 = vmatpush3.msra.mxu0 %v11218_v37  ;;  %9508 = vmatprep.mubr.msk.f32.mxu0 %vm10598_vm1, %v12636_v45  ;;  %v11315_v59 = vld [vmem:[#allocation2 + $0x30] sm:$0xff] }
 0x70d   :  { %9518 = vmatpush3.msra.mxu1 %v11223_v13  ;;  %9519 = vmatprep.mubr.msk.f32.mxu1 %vm10598_vm1, %v12636_v45  ;;  %v12637_v37 = vld [vmem:[#allocation9_spill] sm:$0xff] }
 0x70e   :  { %9509 = vmatmul.mubr.msk.f32.vlgmr.msra.gmra.mxu0 %vm522_vm2, %v2705_v31  ;;  %9520 = vmatmul.mubr.msk.f32.vlgmr.msra.gmra.mxu1 %vm522_vm2, %v2705_v31  ;;  %v11367_v31 = vld [vmem:[#allocation3 + $0xd0] sm:$0xff] }
 0x70f   :  { %9522 = vmatprep.subr.mxu0 %v3030_v40  ;;  %9542 = vmatprep.subr.mxu1 %v3168_v58 }
 0x710   :  { %9523 = vmatpush3.msra.mxu0 %v3030_v40  ;;  %9530 = vmatprep.mubr.msk.f32.mxu0 %vm522_vm2, %v11279_v52  ;;  %v11369_v40 = vld [vmem:[#allocation3 + $0x110] sm:$0xff] }
 0x711   :  { %9543 = vmatpush3.msra.mxu1 %v3168_v58  ;;  %9550 = vmatprep.mubr.msk.f32.mxu1 %vm522_vm2, %v11279_v52  ;;  %v11381_v58 = vld [vmem:[#allocation3 + $0xc8] sm:$0xff] }
 0x712   :  { %9524 = vmatprep.subr.mxu0 %v3029_v48  ;;  %9544 = vmatprep.subr.mxu1 %v3167_v43 }
 0x713   :  { %9525 = vmatpush3.msra.mxu0 %v3029_v48  ;;  %9545 = vmatpush3.msra.mxu1 %v3167_v43  ;;  %v11395_v48 = vld [vmem:[#allocation3 + $0x160] sm:$0xff] }
 0x714   :  { %9526 = vmatprep.subr.mxu0 %v3028_v46  ;;  %9546 = vmatprep.subr.mxu1 %v3166_v39  ;;  %v11397_v43 = vld [vmem:[#allocation3 + $0x1a0] sm:$0xff] }
 0x715   :  { %9527 = vmatpush3.msra.mxu0 %v3028_v46  ;;  %9547 = vmatpush3.msra.mxu1 %v3166_v39  ;;  %v11403_v46 = vld [vmem:[#allocation3 + $0x158] sm:$0xff] }
 0x716   :  { %9528 = vmatprep.subr.mxu0 %v3027_v3  ;;  %9548 = vmatprep.subr.mxu1 %v3165_v56  ;;  %v11405_v39 = vld [vmem:[#allocation3 + $0x198] sm:$0xff] }
 0x717   :  { %9529 = vmatpush3.msra.mxu0 %v3027_v3  ;;  %9549 = vmatpush3.msra.mxu1 %v3165_v56  ;;  %v11411_v3 = vld [vmem:[#allocation3 + $0x150] sm:$0xff] }
 0x718   :  { %9531 = vmatmul.mubr.msk.f32.vlgmr.msra.gmra.mxu0 %vm522_vm2, %v11285_v50  ;;  %9551 = vmatmul.mubr.msk.f32.vlgmr.msra.gmra.mxu1 %vm522_vm2, %v11285_v50  ;;  %v11413_v56 = vld [vmem:[#allocation3 + $0x190] sm:$0xff] }
 0x719   :  { %9533 = vmatprep.mubr.msk.f32.mxu0 %vm522_vm2, %v11291_v11  ;;  %9553 = vmatprep.mubr.msk.f32.mxu1 %vm522_vm2, %v11291_v11 }
 0x71a   :  { %9562 = vmatprep.subr.mxu0 %v3282_v63  ;;  %9582 = vmatprep.subr.mxu1 %v3396_v54 }
 0x71b   :  { %9563 = vmatpush3.msra.mxu0 %v3282_v63  ;;  %9583 = vmatpush3.msra.mxu1 %v3396_v54 }
 0x71c   :  { %9534 = vmatmul.mubr.msk.f32.gmra.mxu0 %vm522_vm2, %v11297_v14  ;;  %9554 = vmatmul.mubr.msk.f32.gmra.mxu1 %vm522_vm2, %v11297_v14 }
 0x71d   :  { %9536 = vmatprep.mubr.msk.f32.mxu0 %vm522_vm2, %v11303_v15  ;;  %9556 = vmatprep.mubr.msk.f32.mxu1 %vm522_vm2, %v11303_v15 }
 0x71e   :  { %9564 = vmatprep.subr.mxu0 %v3281_v6  ;;  %9584 = vmatprep.subr.mxu1 %v3395_v55 }
 0x71f   :  { %9565 = vmatpush3.msra.mxu0 %v3281_v6  ;;  %9585 = vmatpush3.msra.mxu1 %v3395_v55 }
 0x720   :  { %9537 = vmatmul.mubr.msk.f32.gmra.mxu0 %vm522_vm2, %v11309_v16  ;;  %9557 = vmatmul.mubr.msk.f32.gmra.mxu1 %vm522_vm2, %v11309_v16 }
 0x721   :  { %9539 = vmatprep.mubr.msk.f32.mxu0 %vm522_vm2, %v11315_v59  ;;  %9559 = vmatprep.mubr.msk.f32.mxu1 %vm522_vm2, %v11315_v59 }
 0x722   :  { %9566 = vmatprep.subr.mxu0 %v3280_v51  ;;  %9586 = vmatprep.subr.mxu1 %v3394_v1 }
 0x723   :  { %9567 = vmatpush3.msra.mxu0 %v3280_v51  ;;  %9587 = vmatpush3.msra.mxu1 %v3394_v1 }
 0x724   :  { %9568 = vmatprep.subr.mxu0 %v3279_v12  ;;  %9588 = vmatprep.subr.mxu1 %v3393_v34 }
 0x725   :  { %9569 = vmatpush3.msra.mxu0 %v3279_v12  ;;  %9589 = vmatpush3.msra.mxu1 %v3393_v34 }
 0x726   :  { %9602 = vmatprep.subr.mxu0 %v12636_v45  ;;  %9613 = vmatprep.subr.mxu1 %v12636_v45 }
 0x7c5   :  { %v2776_v44 = vpop.f32.mrf.mxu0  ;;  %v2846_v9 = vpop.f32.mrf.mxu1 }
 0x7c6   :  { %v2990_v13 = vadd.f32 %v2776_v44, %v12637_v37  ;;  %v2997_v41 = vadd.f32 %v2846_v9, %v12638_v29  ;;  %v8410_v29 = vld [vmem:[#allocation3 + $0x1aa] ss:$0 sm:$0xff] }
 0x7c7   :  { %v9488_v49 = vpop.f32.mrf.mxu0  ;;  %v9499_v4 = vpop.f32.mrf.mxu1 }
 0x7c8   :  { %v8389_v2 = vmul.f32 -1.442695, %v2990_v13  ;;  %v8390_v32 = vmul.f32 -1.442695, %v2997_v41  ;;  %v8419_v41 = vld [vmem:[#allocation3 + $0x1ab] ss:$0 sm:$0xff] }
 0x7ca   :  { %10371 = vpow2.f32 %v8389_v2 }
 0x7cb   :  { %10373 = vpow2.f32 %v8390_v32 }
 0x7ce   :  { %v2916_v53 = vpop.f32.mrf.mxu0  ;;  %v2986_v36 = vpop.f32.mrf.mxu1 }
 0x7cf   :  { %v3006_v42 = vadd.f32 %v2986_v36, %v12639_v35  ;;  %v3004_v57 = vadd.f32 %v2916_v53, %v12640_v7 }
 0x7d0   :  { %v9510_v62 = vpop.f32.mrf.mxu0  ;;  %v9521_v61 = vpop.f32.mrf.mxu1 }
 0x7d1   :  { %v8391_v5 = vmul.f32 -1.442695, %v3006_v42 }
 0x7d3   :  { %10375 = vpow2.f32 %v8391_v5 }
 0x7d4   :  { %10377 = vtanh.f32 %v3004_v57 }
 0x7d7   :  { %v10372_v33 = vpop.eup %10371 }
 0x7d8   :  { %v10374_v60 = vpop.eup %10373  ;;  %v2994_v17 = vadd.f32 1.0, %v10372_v33 }
 0x7d9   :  { %v3001_v18 = vadd.f32 1.0, %v10374_v60 }
 0x7da   :  { %10379 = vrcp.f32 %v2994_v17 }
 0x7db   :  { %10381 = vrcp.f32 %v3001_v18 }
 0x7e0   :  { %v10376_v19 = vpop.eup %10375 }
 0x7e1   :  { %v10378_v47 = vpop.eup %10377  ;;  %v3010_v10 = vadd.f32 1.0, %v10376_v19 }
 0x7e3   :  { %10383 = vrcp.f32 %v3010_v10 }
 0x7e7   :  { %v10380_v20 = vpop.eup %10379 }
 0x7e8   :  { %v10382_v21 = vpop.eup %10381  ;;  %v3014_v22 = vmul.f32 %v10380_v20, %v10378_v47 }
 0x7e9   :  { %v3013_v23 = vmul.f32 %v10382_v21, %v11253_v30  ;;  %v11337_v30 = vld [vmem:[#allocation3 + $0x120] sm:$0xff] }
 0x7eb   :  { %v3015_v25 = vadd.f32 %v3014_v22, %v3013_v23 }
 0x7ed   :  { %10385 = vtanh.f32 %v3015_v25 }
 0x7f0   :  { %v10384_v26 = vpop.eup %10383 }
 0x7fa   :  { %v10386_v27 = vpop.eup %10385 }
 0x7fb   :  { %v3017_v28 = vmul.f32 %v10386_v27, %v10384_v26  ;;  %v11509_v27 = vld [vmem:[#allocation3 + $0x1a8] ss:$0 sm:$0xff] }
 0x7fd   :  { %3018 = vst.msk [vmem:[#allocation2 + $0x38] sm:$0xff] %vm522_vm2, %v3017_v28  ;;  %v11511_v28 = vld [vmem:[#allocation3 + $0x1a9] ss:$0 sm:$0xff] }
 0x804   :  { %v3026_v24 = vld [vmem:[#allocation2 + $0x38] sm:$0xff] }
 0x805   :  { %9540 = vmatmul.mubr.msk.f32.gmra.mxu0 %vm522_vm2, %v3026_v24  ;;  %9560 = vmatmul.mubr.msk.f32.gmra.mxu1 %vm522_vm2, %v3026_v24 }
 0x806   :  { %9570 = vmatprep.mubr.msk.f32.mxu0 %vm522_vm2, %v11279_v52  ;;  %9590 = vmatprep.mubr.msk.f32.mxu1 %vm522_vm2, %v11279_v52  ;;  %v11383_v52 = vld [vmem:[#allocation3 + $0x108] sm:$0xff] }
 0x809   :  { %9571 = vmatmul.mubr.msk.f32.vlgmr.msra.gmra.mxu0 %vm522_vm2, %v11285_v50  ;;  %9591 = vmatmul.mubr.msk.f32.vlgmr.msra.gmra.mxu1 %vm522_vm2, %v11285_v50  ;;  %v11419_v50 = vld [vmem:[#allocation3 + $0x148] sm:$0xff] }
 0x80a   :  { %9573 = vmatprep.mubr.msk.f32.mxu0 %vm522_vm2, %v11291_v11  ;;  %9593 = vmatprep.mubr.msk.f32.mxu1 %vm522_vm2, %v11291_v11  ;;  %v11423_v11 = vld [vmem:[#allocation3 + $0x188] sm:$0xff] }
 0x80b   :  { %9603 = vmatpush3.msra.mxu0 %v11335_v38  ;;  %9614 = vmatpush3.msra.mxu1 %v11337_v30 }
 0x80c   :  { %9604 = vmatprep.subr.mxu0 %v12636_v45  ;;  %9615 = vmatprep.subr.mxu1 %v12636_v45 }
 0x80d   :  { %9574 = vmatmul.mubr.msk.f32.gmra.mxu0 %vm522_vm2, %v11297_v14  ;;  %9594 = vmatmul.mubr.msk.f32.gmra.mxu1 %vm522_vm2, %v11297_v14  ;;  %v11457_v14 = vpop.f32.mrf.mxu0 }
 0x80e   :  { %9576 = vmatprep.mubr.msk.f32.mxu0 %vm522_vm2, %v11303_v15  ;;  %9596 = vmatprep.mubr.msk.f32.mxu1 %vm522_vm2, %v11303_v15  ;;  %v11459_v15 = vpop.f32.mrf.mxu1 }
 0x80f   :  { %9605 = vmatpush3.msra.mxu0 %v11351_v0  ;;  %9616 = vmatpush3.msra.mxu1 %v11353_v8 }
 0x810   :  { %9606 = vmatprep.subr.mxu0 %v12636_v45  ;;  %9617 = vmatprep.subr.mxu1 %v12636_v45 }
 0x811   :  { %9577 = vmatmul.mubr.msk.f32.gmra.mxu0 %vm522_vm2, %v11309_v16  ;;  %9597 = vmatmul.mubr.msk.f32.gmra.mxu1 %vm522_vm2, %v11309_v16  ;;  %v3126_v16 = vpop.f32.mrf.mxu0 }
 0x812   :  { %9579 = vmatprep.mubr.msk.f32.mxu0 %vm522_vm2, %v11315_v59  ;;  %9599 = vmatprep.mubr.msk.f32.mxu1 %vm522_vm2, %v11315_v59  ;;  %v3240_v59 = vpop.f32.mrf.mxu1 }
 0x813   :  { %9607 = vmatpush3.msra.mxu0 %v11367_v31  ;;  %9618 = vmatpush3.msra.mxu1 %v11369_v40  ;;  %v11461_v63 = vpop.f32.mrf.mxu0 }
 0x814   :  { %9608 = vmatprep.subr.mxu0 %v12636_v45  ;;  %9619 = vmatprep.subr.mxu1 %v12636_v45  ;;  %v11463_v54 = vpop.f32.mrf.mxu1 }
 0x815   :  { %9580 = vmatmul.mubr.msk.f32.gmra.mxu0 %vm522_vm2, %v3026_v24  ;;  %9600 = vmatmul.mubr.msk.f32.gmra.mxu1 %vm522_vm2, %v3026_v24  ;;  %v11465_v6 = vpop.f32.mrf.mxu0 }
 0x816   :  { %9609 = vmatpush3.msra.mxu0 %v11381_v58  ;;  %9620 = vmatpush3.msra.mxu1 %v11383_v52  ;;  %v11467_v55 = vpop.f32.mrf.mxu1 }
 0x817   :  { %9610 = vmatprep.mubr.msk.f32.mxu0 %vm10598_vm1, %v12636_v45  ;;  %9621 = vmatprep.mubr.msk.f32.mxu1 %vm10598_vm1, %v12636_v45  ;;  %v11469_v51 = vpop.f32.mrf.mxu0 }
 0x818   :  { %9624 = vmatprep.subr.mxu0 %v12636_v45  ;;  %9635 = vmatprep.subr.mxu1 %v12636_v45  ;;  %v11471_v1 = vpop.f32.mrf.mxu1 }
 0x819   :  { %9611 = vmatmul.mubr.f32.vlgmr.msra.gmra.mxu0 %v12636_v45  ;;  %9622 = vmatmul.mubr.f32.vlgmr.msra.gmra.mxu1 %v12636_v45  ;;  %v11473_v12 = vpop.f32.mrf.mxu0 }
 0x81a   :  { %9625 = vmatpush3.msra.mxu0 %v11395_v48  ;;  %9636 = vmatpush3.msra.mxu1 %v11397_v43  ;;  %v11475_v34 = vpop.f32.mrf.mxu1 }
 0x81b   :  { %9626 = vmatprep.subr.mxu0 %v12636_v45  ;;  %9637 = vmatprep.subr.mxu1 %v12636_v45 }
 0x81c   :  { %9627 = vmatpush3.msra.mxu0 %v11403_v46  ;;  %9638 = vmatpush3.msra.mxu1 %v11405_v39 }
 0x81d   :  { %9628 = vmatprep.subr.mxu0 %v12636_v45  ;;  %9639 = vmatprep.subr.mxu1 %v12636_v45 }
 0x81e   :  { %9629 = vmatpush3.msra.mxu0 %v11411_v3  ;;  %9640 = vmatpush3.msra.mxu1 %v11413_v56 }
 0x81f   :  { %9630 = vmatprep.subr.mxu0 %v12636_v45  ;;  %9641 = vmatprep.subr.mxu1 %v12636_v45 }
 0x820   :  { %9631 = vmatpush3.msra.mxu0 %v11419_v50  ;;  %9632 = vmatprep.mubr.msk.f32.mxu0 %vm10598_vm1, %v12636_v45 }
 0x821   :  { %9642 = vmatpush3.msra.mxu1 %v11423_v11  ;;  %9643 = vmatprep.mubr.msk.f32.mxu1 %vm10598_vm1, %v12636_v45 }
 0x822   :  { %9633 = vmatmul.mubr.f32.vlgmr.msra.gmra.mxu0 %v12636_v45  ;;  %9644 = vmatmul.mubr.f32.vlgmr.msra.gmra.mxu1 %v12636_v45 }
 0x823   :  { %9646 = vmatprep.subr.mxu0 %v12636_v45  ;;  %9657 = vmatprep.subr.mxu1 %v12636_v45 }
 0x824   :  { %9647 = vmatpush3.msra.mxu0 %v11335_v38  ;;  %9658 = vmatpush3.msra.mxu1 %v11337_v30 }
 0x825   :  { %9648 = vmatprep.subr.mxu0 %v12636_v45  ;;  %9659 = vmatprep.subr.mxu1 %v12636_v45 }
 0x826   :  { %9649 = vmatpush3.msra.mxu0 %v11351_v0  ;;  %9660 = vmatpush3.msra.mxu1 %v11353_v8 }
 0x827   :  { %9650 = vmatprep.subr.mxu0 %v12636_v45  ;;  %9661 = vmatprep.subr.mxu1 %v12636_v45 }
 0x828   :  { %9651 = vmatpush3.msra.mxu0 %v11367_v31  ;;  %9662 = vmatpush3.msra.mxu1 %v11369_v40 }
 0x829   :  { %9652 = vmatprep.subr.mxu0 %v12636_v45  ;;  %9663 = vmatprep.subr.mxu1 %v12636_v45 }
 0x82a   :  { %9653 = vmatpush3.msra.mxu0 %v11381_v58  ;;  %9664 = vmatpush3.msra.mxu1 %v11383_v52 }
 0x82b   :  { %9654 = vmatprep.mubr.msk.f32.mxu0 %vm10598_vm1, %v12636_v45  ;;  %9665 = vmatprep.mubr.msk.f32.mxu1 %vm10598_vm1, %v12636_v45 }
 0x82c   :  { %9668 = vmatprep.subr.mxu0 %v12636_v45  ;;  %9679 = vmatprep.subr.mxu1 %v12636_v45 }
 0x8c5   :  { %v11477_v44 = vpop.f32.mrf.mxu0  ;;  %v11479_v9 = vpop.f32.mrf.mxu1 }
 0x8c6   :  { %12641 = vst [vmem:[#allocation9_spill] sm:$0xff] %v11477_v44  ;;  %12642 = vst [vmem:[#allocation11_spill] sm:$0xff] %v11479_v9 }
 0x8c7   :  { %v11481_v37 = vpop.f32.mrf.mxu0  ;;  %v11483_v13 = vpop.f32.mrf.mxu1 }
 0x8c8   :  { %12643 = vst [vmem:[#allocation12_spill] sm:$0xff] %v11481_v37  ;;  %12644 = vst [vmem:[#allocation10_spill] sm:$0xff] %v11483_v13 }
 0x8c9   :  { %v9572_v49 = vpop.f32.mrf.mxu0  ;;  %v9592_v4 = vpop.f32.mrf.mxu1 }
 0x8ca   :  { %v11485_v2 = vadd.f32 %v9572_v49, %v8410_v29  ;;  %v11487_v32 = vadd.f32 %v9592_v4, %v8419_v41  ;;  %v3127_v4 = vadd.f32 %v11509_v27, %v3126_v16 }
 0x8cb   :  { %v3354_v53 = vpop.f32.mrf.mxu0  ;;  %v3468_v36 = vpop.f32.mrf.mxu1 }
 0x8cd   :  { %v9575_v35 = vpop.f32.mrf.mxu0  ;;  %v9595_v42 = vpop.f32.mrf.mxu1 }
 0x8ce   :  { %v11489_v62 = vadd.f32 %v9575_v35, %v8410_v29  ;;  %v11491_v61 = vadd.f32 %v9595_v42, %v8419_v41  ;;  %v3241_v35 = vadd.f32 %v11511_v28, %v3240_v59 }
 0x8cf   :  { %v3364_v5 = vpop.f32.mrf.mxu0  ;;  %v3478_v7 = vpop.f32.mrf.mxu1 }
 0x8d0   :  { %v11493_v57 = vadd.f32 %v8410_v29, %v3364_v5  ;;  %v11495_v33 = vadd.f32 %v8419_v41, %v3478_v7 }
 0x8d1   :  { %v9578_v60 = vpop.f32.mrf.mxu0  ;;  %v9598_v17 = vpop.f32.mrf.mxu1 }
 0x8d2   :  { %v11497_v18 = vadd.f32 %v9578_v60, %v8410_v29  ;;  %v11499_v19 = vadd.f32 %v9598_v17, %v8419_v41 }
 0x8d3   :  { %v3374_v47 = vpop.f32.mrf.mxu0  ;;  %v3488_v20 = vpop.f32.mrf.mxu1 }
 0x8d4   :  { %12645 = vst [vmem:[#allocation13_spill] sm:$0xff] %v11497_v18  ;;  %v11501_v21 = vadd.f32 %v8410_v29, %v3374_v47  ;;  %v11503_v22 = vadd.f32 %v8419_v41, %v3488_v20 }
 0x8d5   :  { %v9581_v10 = vpop.f32.mrf.mxu0  ;;  %v9601_v23 = vpop.f32.mrf.mxu1 }
 0x8d6   :  { %v11505_v25 = vadd.f32 %v9581_v10, %v8410_v29  ;;  %v11507_v26 = vadd.f32 %v9601_v23, %v8419_v41 }
 0x8d7   :  { %v3384_v24 = vpop.f32.mrf.mxu0  ;;  %v3498_v49 = vpop.f32.mrf.mxu1 }
 0x8d8   :  { %12646 = vst [vmem:[#allocation14_spill] sm:$0xff] %v11505_v25  ;;  %12647 = vst [vmem:[#allocation15_spill] sm:$0xff] %v11507_v26  ;;  %v11515_v42 = vadd.f32 %v8410_v29, %v3384_v24  ;;  %v11517_v5 = vadd.f32 %v8419_v41, %v3498_v49  ;;  %v3469_v25 = vadd.f32 %v8419_v41, %v3468_v36 }
 0x8d9   :  { %v3589_v7 = vpop.f32.mrf.mxu0  ;;  %v3659_v60 = vpop.f32.mrf.mxu1  ;;  %v3355_v24 = vadd.f32 %v8410_v29, %v3354_v53 }
 0x8da   :  { %12648 = vst [vmem:[#allocation16_spill] sm:$0xff] %v11515_v42  ;;  %12649 = vst [vmem:[#allocation17_spill] sm:$0xff] %v11517_v5  ;;  %v3803_v17 = vadd.f32 %v3589_v7, %v3127_v4  ;;  %v3810_v47 = vadd.f32 %v3659_v60, %v3241_v35 }
 0x8db   :  { %v9612_v20 = vpop.f32.mrf.mxu0  ;;  %v9623_v10 = vpop.f32.mrf.mxu1 }
 0x8dc   :  { %v8428_v23 = vmul.f32 -1.442695, %v3803_v17  ;;  %v8429_v26 = vmul.f32 -1.442695, %v3810_v47 }
 0x8de   :  { %10387 = vpow2.f32 %v8428_v23 }
 0x8df   :  { %10389 = vpow2.f32 %v8429_v26 }
 0x8e2   :  { %v3729_v9 = vpop.f32.mrf.mxu0  ;;  %v3799_v44 = vpop.f32.mrf.mxu1 }
 0x8e3   :  { %v3819_v16 = vadd.f32 %v3799_v44, %v3469_v25  ;;  %v3817_v49 = vadd.f32 %v3729_v9, %v3355_v24 }
 0x8e4   :  { %v9634_v13 = vpop.f32.mrf.mxu0  ;;  %v9645_v59 = vpop.f32.mrf.mxu1 }
 0x8e5   :  { %v8430_v42 = vmul.f32 -1.442695, %v3819_v16 }
 0x8e7   :  { %10391 = vpow2.f32 %v8430_v42 }
 0x8e8   :  { %10393 = vtanh.f32 %v3817_v49 }
 0x8eb   :  { %v10388_v5 = vpop.eup %10387 }
 0x8ec   :  { %v10390_v37 = vpop.eup %10389  ;;  %v3807_v18 = vadd.f32 1.0, %v10388_v5 }
 0x8ed   :  { %v3814_v4 = vadd.f32 1.0, %v10390_v37  ;;  %v3132_v37 = vadd.f32 %v11457_v14, %v11509_v27 }
 0x8ee   :  { %10395 = vrcp.f32 %v3807_v18  ;;  %v3246_v18 = vadd.f32 %v11459_v15, %v11511_v28 }
 0x8ef   :  { %10397 = vrcp.f32 %v3814_v4 }
 0x8f4   :  { %v10392_v35 = vpop.eup %10391 }
 0x8f5   :  { %v10394_v7 = vpop.eup %10393  ;;  %v3823_v60 = vadd.f32 1.0, %v10392_v35 }
 0x8f7   :  { %10399 = vrcp.f32 %v3823_v60 }
 0x8fb   :  { %v10396_v26 = vpop.eup %10395 }
 0x8fc   :  { %v10398_v41 = vpop.eup %10397  ;;  %v3827_v36 = vmul.f32 %v10396_v26, %v10394_v7 }
 0x8fd   :  { %v3826_v44 = vmul.f32 0.0, %v10398_v41 }
 0x8ff   :  { %v11519_v13 = vadd.f32 %v3827_v36, %v3826_v44 }
 0x901   :  { %10401 = vtanh.f32 %v11519_v13 }
 0x904   :  { %v10400_v9 = vpop.eup %10399 }
 0x90e   :  { %v10402_v29 = vpop.eup %10401 }
 0x90f   :  { %v3830_v53 = vmul.f32 %v10402_v29, %v10400_v9 }
 0x911   :  { %9655 = vmatmul.mubr.msk.f32.vlgmr.msra.gmra.mxu0 %vm522_vm2, %v3830_v53  ;;  %9666 = vmatmul.mubr.msk.f32.vlgmr.msra.gmra.mxu1 %vm522_vm2, %v3830_v53 }
 0x912   :  { %9669 = vmatpush3.msra.mxu0 %v11395_v48  ;;  %9680 = vmatpush3.msra.mxu1 %v11397_v43 }
 0x913   :  { %9670 = vmatprep.subr.mxu0 %v12636_v45  ;;  %9681 = vmatprep.subr.mxu1 %v12636_v45 }
 0x914   :  { %9671 = vmatpush3.msra.mxu0 %v11403_v46  ;;  %9682 = vmatpush3.msra.mxu1 %v11405_v39 }
 0x915   :  { %9672 = vmatprep.subr.mxu0 %v12636_v45  ;;  %9683 = vmatprep.subr.mxu1 %v12636_v45 }
 0x916   :  { %9673 = vmatpush3.msra.mxu0 %v11411_v3  ;;  %9684 = vmatpush3.msra.mxu1 %v11413_v56 }
 0x917   :  { %9674 = vmatprep.subr.mxu0 %v12636_v45  ;;  %9685 = vmatprep.subr.mxu1 %v12636_v45 }
 0x918   :  { %9675 = vmatpush3.msra.mxu0 %v11419_v50  ;;  %9676 = vmatprep.mubr.msk.f32.mxu0 %vm10598_vm1, %v12636_v45 }
 0x919   :  { %9686 = vmatpush3.msra.mxu1 %v11423_v11  ;;  %9687 = vmatprep.mubr.msk.f32.mxu1 %vm10598_vm1, %v12636_v45 }
 0x91a   :  { %9677 = vmatmul.mubr.msk.f32.vlgmr.msra.gmra.mxu0 %vm522_vm2, %v3830_v53  ;;  %9688 = vmatmul.mubr.msk.f32.vlgmr.msra.gmra.mxu1 %vm522_vm2, %v3830_v53 }
 0x91b   :  { %9690 = vmatprep.subr.mxu0 %v12636_v45  ;;  %9701 = vmatprep.subr.mxu1 %v12636_v45 }
 0x91c   :  { %9691 = vmatpush3.msra.mxu0 %v11335_v38  ;;  %9702 = vmatpush3.msra.mxu1 %v11337_v30 }
 0x91d   :  { %9692 = vmatprep.subr.mxu0 %v12636_v45  ;;  %9703 = vmatprep.subr.mxu1 %v12636_v45 }
 0x91e   :  { %9693 = vmatpush3.msra.mxu0 %v11351_v0  ;;  %9704 = vmatpush3.msra.mxu1 %v11353_v8 }
 0x91f   :  { %9694 = vmatprep.subr.mxu0 %v12636_v45  ;;  %9705 = vmatprep.subr.mxu1 %v12636_v45 }
 0x920   :  { %9695 = vmatpush3.msra.mxu0 %v11367_v31  ;;  %9706 = vmatpush3.msra.mxu1 %v11369_v40 }
 0x921   :  { %9696 = vmatprep.subr.mxu0 %v12636_v45  ;;  %9707 = vmatprep.subr.mxu1 %v12636_v45 }
 0x922   :  { %9697 = vmatpush3.msra.mxu0 %v11381_v58  ;;  %9708 = vmatpush3.msra.mxu1 %v11383_v52 }
 0x923   :  { %9698 = vmatprep.mubr.msk.f32.mxu0 %vm10598_vm1, %v12636_v45  ;;  %9709 = vmatprep.mubr.msk.f32.mxu1 %vm10598_vm1, %v12636_v45 }
 0x924   :  { %9712 = vmatprep.subr.mxu0 %v12636_v45  ;;  %9723 = vmatprep.subr.mxu1 %v12636_v45 }
 0x9d1   :  { %v3900_v25 = vpop.f32.mrf.mxu0  ;;  %v3970_v42 = vpop.f32.mrf.mxu1 }
 0x9d2   :  { %v4114_v5 = vadd.f32 %v3900_v25, %v3132_v37  ;;  %v4121_v17 = vadd.f32 %v3970_v42, %v3246_v18  ;;  %v3251_v42 = vadd.f32 %v11511_v28, %v11467_v55 }
 0x9d3   :  { %v9656_v47 = vpop.f32.mrf.mxu0  ;;  %v9667_v20 = vpop.f32.mrf.mxu1 }
 0x9d4   :  { %v8435_v10 = vmul.f32 -1.442695, %v4114_v5  ;;  %v8436_v23 = vmul.f32 -1.442695, %v4121_v17 }
 0x9d6   :  { %10403 = vpow2.f32 %v8435_v10 }
 0x9d7   :  { %10405 = vpow2.f32 %v8436_v23 }
 0x9da   :  { %v4040_v16 = vpop.f32.mrf.mxu0  ;;  %v4110_v59 = vpop.f32.mrf.mxu1 }
 0x9db   :  { %v4130_v24 = vadd.f32 %v4110_v59, %v11487_v32  ;;  %v4128_v35 = vadd.f32 %v4040_v16, %v11485_v2 }
 0x9dc   :  { %v9678_v49 = vpop.f32.mrf.mxu0  ;;  %v9689_v4 = vpop.f32.mrf.mxu1 }
 0x9dd   :  { %v8437_v14 = vmul.f32 -1.442695, %v4130_v24 }
 0x9df   :  { %10407 = vpow2.f32 %v8437_v14 }
 0x9e0   :  { %10409 = vtanh.f32 %v4128_v35 }
 0x9e3   :  { %v10404_v15 = vpop.eup %10403 }
 0x9e4   :  { %v10406_v7 = vpop.eup %10405  ;;  %v4118_v26 = vadd.f32 1.0, %v10404_v15 }
 0x9e5   :  { %v4125_v41 = vadd.f32 1.0, %v10406_v7 }
 0x9e6   :  { %10411 = vrcp.f32 %v4118_v26 }
 0x9e7   :  { %10413 = vrcp.f32 %v4125_v41 }
 0x9ec   :  { %v10408_v36 = vpop.eup %10407 }
 0x9ed   :  { %v10410_v60 = vpop.eup %10409  ;;  %v4134_v53 = vadd.f32 1.0, %v10408_v36 }
 0x9ef   :  { %10415 = vrcp.f32 %v4134_v53 }
 0x9f3   :  { %v10412_v44 = vpop.eup %10411 }
 0x9f4   :  { %v10414_v9 = vpop.eup %10413  ;;  %v4138_v29 = vmul.f32 %v10412_v44, %v10410_v60 }
 0x9f5   :  { %v4137_v32 = vmul.f32 %v10414_v9, %v11519_v13  ;;  %v3137_v13 = vadd.f32 %v11509_v27, %v11465_v6 }
 0x9f7   :  { %v11573_v37 = vadd.f32 %v4138_v29, %v4137_v32 }
 0x9f9   :  { %10417 = vtanh.f32 %v11573_v37 }
 0x9fc   :  { %v10416_v2 = vpop.eup %10415 }
 0xa06   :  { %v10418_v18 = vpop.eup %10417 }
 0xa07   :  { %v4141_v25 = vmul.f32 %v10418_v18, %v10416_v2 }
 0xa09   :  { %9699 = vmatmul.mubr.msk.f32.vlgmr.msra.gmra.mxu0 %vm522_vm2, %v4141_v25  ;;  %9710 = vmatmul.mubr.msk.f32.vlgmr.msra.gmra.mxu1 %vm522_vm2, %v4141_v25 }
 0xa0a   :  { %9713 = vmatpush3.msra.mxu0 %v11395_v48  ;;  %9724 = vmatpush3.msra.mxu1 %v11397_v43 }
 0xa0b   :  { %9714 = vmatprep.subr.mxu0 %v12636_v45  ;;  %9725 = vmatprep.subr.mxu1 %v12636_v45 }
 0xa0c   :  { %9715 = vmatpush3.msra.mxu0 %v11403_v46  ;;  %9726 = vmatpush3.msra.mxu1 %v11405_v39 }
 0xa0d   :  { %9716 = vmatprep.subr.mxu0 %v12636_v45  ;;  %9727 = vmatprep.subr.mxu1 %v12636_v45 }
 0xa0e   :  { %9717 = vmatpush3.msra.mxu0 %v11411_v3  ;;  %9728 = vmatpush3.msra.mxu1 %v11413_v56 }
 0xa0f   :  { %9718 = vmatprep.subr.mxu0 %v12636_v45  ;;  %9729 = vmatprep.subr.mxu1 %v12636_v45 }
 0xa10   :  { %9719 = vmatpush3.msra.mxu0 %v11419_v50  ;;  %9720 = vmatprep.mubr.msk.f32.mxu0 %vm10598_vm1, %v12636_v45 }
 0xa11   :  { %9730 = vmatpush3.msra.mxu1 %v11423_v11  ;;  %9731 = vmatprep.mubr.msk.f32.mxu1 %vm10598_vm1, %v12636_v45 }
 0xa12   :  { %9721 = vmatmul.mubr.msk.f32.vlgmr.msra.gmra.mxu0 %vm522_vm2, %v4141_v25  ;;  %9732 = vmatmul.mubr.msk.f32.vlgmr.msra.gmra.mxu1 %vm522_vm2, %v4141_v25  ;;  %v3256_v25 = vadd.f32 %v11463_v54, %v11511_v28 }
 0xa13   :  { %9734 = vmatprep.subr.mxu0 %v12636_v45  ;;  %9745 = vmatprep.subr.mxu1 %v12636_v45 }
 0xa14   :  { %9735 = vmatpush3.msra.mxu0 %v11335_v38  ;;  %9746 = vmatpush3.msra.mxu1 %v11337_v30 }
 0xa15   :  { %9736 = vmatprep.subr.mxu0 %v12636_v45  ;;  %9747 = vmatprep.subr.mxu1 %v12636_v45 }
 0xa16   :  { %9737 = vmatpush3.msra.mxu0 %v11351_v0  ;;  %9748 = vmatpush3.msra.mxu1 %v11353_v8 }
 0xa17   :  { %9738 = vmatprep.subr.mxu0 %v12636_v45  ;;  %9749 = vmatprep.subr.mxu1 %v12636_v45 }
 0xa18   :  { %9739 = vmatpush3.msra.mxu0 %v11367_v31  ;;  %9750 = vmatpush3.msra.mxu1 %v11369_v40 }
 0xa19   :  { %9740 = vmatprep.subr.mxu0 %v12636_v45  ;;  %9751 = vmatprep.subr.mxu1 %v12636_v45 }
 0xa1a   :  { %9741 = vmatpush3.msra.mxu0 %v11381_v58  ;;  %9752 = vmatpush3.msra.mxu1 %v11383_v52 }
 0xa1b   :  { %9742 = vmatprep.mubr.msk.f32.mxu0 %vm10598_vm1, %v12636_v45  ;;  %9753 = vmatprep.mubr.msk.f32.mxu1 %vm10598_vm1, %v12636_v45 }
 0xa1c   :  { %9756 = vmatprep.subr.mxu0 %v12636_v45  ;;  %9767 = vmatprep.subr.mxu1 %v12636_v45 }
 0xac9   :  { %v4211_v5 = vpop.f32.mrf.mxu0  ;;  %v4281_v17 = vpop.f32.mrf.mxu1 }
 0xaca   :  { %v4425_v47 = vadd.f32 %v4211_v5, %v3137_v13  ;;  %v4432_v20 = vadd.f32 %v4281_v17, %v3251_v42 }
 0xacb   :  { %v9700_v10 = vpop.f32.mrf.mxu0  ;;  %v9711_v23 = vpop.f32.mrf.mxu1 }
 0xacc   :  { %v8442_v16 = vmul.f32 -1.442695, %v4425_v47  ;;  %v8443_v59 = vmul.f32 -1.442695, %v4432_v20 }
 0xace   :  { %10419 = vpow2.f32 %v8442_v16 }
 0xacf   :  { %10421 = vpow2.f32 %v8443_v59 }
 0xad2   :  { %v4351_v24 = vpop.f32.mrf.mxu0  ;;  %v4421_v49 = vpop.f32.mrf.mxu1 }
 0xad3   :  { %v4441_v4 = vadd.f32 %v4421_v49, %v11495_v33  ;;  %v4439_v15 = vadd.f32 %v4351_v24, %v11493_v57 }
 0xad4   :  { %v9722_v14 = vpop.f32.mrf.mxu0  ;;  %v9733_v35 = vpop.f32.mrf.mxu1 }
 0xad5   :  { %v8444_v6 = vmul.f32 -1.442695, %v4441_v4 }
 0xad7   :  { %10423 = vpow2.f32 %v8444_v6 }
 0xad8   :  { %10425 = vtanh.f32 %v4439_v15 }
 0xadb   :  { %v10420_v55 = vpop.eup %10419 }
 0xadc   :  { %v10422_v7 = vpop.eup %10421  ;;  %v4429_v26 = vadd.f32 1.0, %v10420_v55 }
 0xadd   :  { %v4436_v41 = vadd.f32 1.0, %v10422_v7 }
 0xade   :  { %10427 = vrcp.f32 %v4429_v26 }
 0xadf   :  { %10429 = vrcp.f32 %v4436_v41 }
 0xae4   :  { %v10424_v36 = vpop.eup %10423 }
 0xae5   :  { %v10426_v60 = vpop.eup %10425  ;;  %v4445_v53 = vadd.f32 1.0, %v10424_v36 }
 0xae7   :  { %10431 = vrcp.f32 %v4445_v53 }
 0xaeb   :  { %v10428_v44 = vpop.eup %10427 }
 0xaec   :  { %v10430_v9 = vpop.eup %10429  ;;  %v4449_v29 = vmul.f32 %v10428_v44, %v10426_v60 }
 0xaed   :  { %v4448_v33 = vmul.f32 %v10430_v9, %v11573_v37  ;;  %v3142_v37 = vadd.f32 %v11461_v63, %v11509_v27 }
 0xaef   :  { %v11627_v32 = vadd.f32 %v4449_v29, %v4448_v33 }
 0xaf1   :  { %10433 = vtanh.f32 %v11627_v32 }
 0xaf4   :  { %v10432_v57 = vpop.eup %10431 }
 0xafe   :  { %v10434_v2 = vpop.eup %10433 }
 0xaff   :  { %v4452_v18 = vmul.f32 %v10434_v2, %v10432_v57 }
 0xb01   :  { %9743 = vmatmul.mubr.msk.f32.vlgmr.msra.gmra.mxu0 %vm522_vm2, %v4452_v18  ;;  %9754 = vmatmul.mubr.msk.f32.vlgmr.msra.gmra.mxu1 %vm522_vm2, %v4452_v18 }
 0xb02   :  { %9757 = vmatpush3.msra.mxu0 %v11395_v48  ;;  %9768 = vmatpush3.msra.mxu1 %v11397_v43 }
 0xb03   :  { %9758 = vmatprep.subr.mxu0 %v12636_v45  ;;  %9769 = vmatprep.subr.mxu1 %v12636_v45 }
 0xb04   :  { %9759 = vmatpush3.msra.mxu0 %v11403_v46  ;;  %9770 = vmatpush3.msra.mxu1 %v11405_v39 }
 0xb05   :  { %9760 = vmatprep.subr.mxu0 %v12636_v45  ;;  %9771 = vmatprep.subr.mxu1 %v12636_v45 }
 0xb06   :  { %9761 = vmatpush3.msra.mxu0 %v11411_v3  ;;  %9772 = vmatpush3.msra.mxu1 %v11413_v56 }
 0xb07   :  { %9762 = vmatprep.subr.mxu0 %v12636_v45  ;;  %9773 = vmatprep.subr.mxu1 %v12636_v45 }
 0xb08   :  { %9763 = vmatpush3.msra.mxu0 %v11419_v50  ;;  %9764 = vmatprep.mubr.msk.f32.mxu0 %vm10598_vm1, %v12636_v45 }
 0xb09   :  { %9774 = vmatpush3.msra.mxu1 %v11423_v11  ;;  %9775 = vmatprep.mubr.msk.f32.mxu1 %vm10598_vm1, %v12636_v45 }
 0xb0a   :  { %9765 = vmatmul.mubr.msk.f32.vlgmr.msra.gmra.mxu0 %vm522_vm2, %v4452_v18  ;;  %9776 = vmatmul.mubr.msk.f32.vlgmr.msra.gmra.mxu1 %vm522_vm2, %v4452_v18 }
 0xb0b   :  { %9778 = vmatprep.subr.mxu0 %v12636_v45  ;;  %9789 = vmatprep.subr.mxu1 %v12636_v45 }
 0xb0c   :  { %9779 = vmatpush3.msra.mxu0 %v11335_v38  ;;  %9790 = vmatpush3.msra.mxu1 %v11337_v30 }
 0xb0d   :  { %9780 = vmatprep.subr.mxu0 %v12636_v45  ;;  %9791 = vmatprep.subr.mxu1 %v12636_v45 }
 0xb0e   :  { %9781 = vmatpush3.msra.mxu0 %v11351_v0  ;;  %9792 = vmatpush3.msra.mxu1 %v11353_v8 }
 0xb0f   :  { %9782 = vmatprep.subr.mxu0 %v12636_v45  ;;  %9793 = vmatprep.subr.mxu1 %v12636_v45 }
 0xb10   :  { %9783 = vmatpush3.msra.mxu0 %v11367_v31  ;;  %9794 = vmatpush3.msra.mxu1 %v11369_v40 }
 0xb11   :  { %9784 = vmatprep.subr.mxu0 %v12636_v45  ;;  %9795 = vmatprep.subr.mxu1 %v12636_v45 }
 0xb12   :  { %9785 = vmatpush3.msra.mxu0 %v11381_v58  ;;  %9796 = vmatpush3.msra.mxu1 %v11383_v52 }
 0xb13   :  { %9786 = vmatprep.mubr.msk.f32.mxu0 %vm10598_vm1, %v12636_v45  ;;  %9797 = vmatprep.mubr.msk.f32.mxu1 %vm10598_vm1, %v12636_v45 }
 0xb14   :  { %9800 = vmatprep.subr.mxu0 %v12636_v45  ;;  %9811 = vmatprep.subr.mxu1 %v12636_v45 }
 0xbc1   :  { %v4522_v13 = vpop.f32.mrf.mxu0  ;;  %v4592_v42 = vpop.f32.mrf.mxu1 }
 0xbc2   :  { %v4736_v5 = vadd.f32 %v4522_v13, %v3142_v37  ;;  %v4743_v17 = vadd.f32 %v4592_v42, %v3256_v25 }
 0xbc3   :  { %v9744_v47 = vpop.f32.mrf.mxu0  ;;  %v9755_v20 = vpop.f32.mrf.mxu1 }
 0xbc4   :  { %v8449_v10 = vmul.f32 -1.442695, %v4736_v5  ;;  %v8450_v23 = vmul.f32 -1.442695, %v4743_v17 }
 0xbc6   :  { %10435 = vpow2.f32 %v8449_v10 }
 0xbc7   :  { %10437 = vpow2.f32 %v8450_v23 }
 0xbca   :  { %v4662_v16 = vpop.f32.mrf.mxu0  ;;  %v4732_v59 = vpop.f32.mrf.mxu1 }
 0xbcb   :  { %v4752_v24 = vadd.f32 %v4732_v59, %v11491_v61  ;;  %v4750_v14 = vadd.f32 %v4662_v16, %v11489_v62 }
 0xbcc   :  { %v9766_v49 = vpop.f32.mrf.mxu0  ;;  %v9777_v4 = vpop.f32.mrf.mxu1 }
 0xbcd   :  { %v8451_v63 = vmul.f32 -1.442695, %v4752_v24 }
 0xbcf   :  { %10439 = vpow2.f32 %v8451_v63 }
 0xbd0   :  { %10441 = vtanh.f32 %v4750_v14 }
 0xbd3   :  { %v10436_v54 = vpop.eup %10435 }
 0xbd4   :  { %v10438_v35 = vpop.eup %10437  ;;  %v4740_v6 = vadd.f32 1.0, %v10436_v54 }
 0xbd5   :  { %v4747_v15 = vadd.f32 1.0, %v10438_v35 }
 0xbd6   :  { %10443 = vrcp.f32 %v4740_v6 }
 0xbd7   :  { %10445 = vrcp.f32 %v4747_v15 }
 0xbdc   :  { %v10440_v55 = vpop.eup %10439 }
 0xbdd   :  { %v10442_v7 = vpop.eup %10441  ;;  %v4756_v60 = vadd.f32 1.0, %v10440_v55 }
 0xbdf   :  { %10447 = vrcp.f32 %v4756_v60 }
 0xbe3   :  { %v10444_v26 = vpop.eup %10443 }
 0xbe4   :  { %v10446_v41 = vpop.eup %10445  ;;  %v4760_v36 = vmul.f32 %v10444_v26, %v10442_v7 }
 0xbe5   :  { %v4759_v61 = vmul.f32 %v10446_v41, %v11627_v32 }
 0xbe7   :  { %v11681_v44 = vadd.f32 %v4760_v36, %v4759_v61  ;;  %v12650_v36 = vld [vmem:[#allocation13_spill] sm:$0xff] }
 0xbe9   :  { %10449 = vtanh.f32 %v11681_v44 }
 0xbec   :  { %v10448_v62 = vpop.eup %10447 }
 0xbf6   :  { %v10450_v9 = vpop.eup %10449 }
 0xbf7   :  { %v4763_v29 = vmul.f32 %v10450_v9, %v10448_v62 }
 0xbf9   :  { %9787 = vmatmul.mubr.msk.f32.vlgmr.msra.gmra.mxu0 %vm522_vm2, %v4763_v29  ;;  %9798 = vmatmul.mubr.msk.f32.vlgmr.msra.gmra.mxu1 %vm522_vm2, %v4763_v29 }
 0xbfa   :  { %9801 = vmatpush3.msra.mxu0 %v11395_v48  ;;  %9812 = vmatpush3.msra.mxu1 %v11397_v43 }
 0xbfb   :  { %9802 = vmatprep.subr.mxu0 %v12636_v45  ;;  %9813 = vmatprep.subr.mxu1 %v12636_v45 }
 0xbfc   :  { %9803 = vmatpush3.msra.mxu0 %v11403_v46  ;;  %9814 = vmatpush3.msra.mxu1 %v11405_v39 }
 0xbfd   :  { %9804 = vmatprep.subr.mxu0 %v12636_v45  ;;  %9815 = vmatprep.subr.mxu1 %v12636_v45 }
 0xbfe   :  { %9805 = vmatpush3.msra.mxu0 %v11411_v3  ;;  %9816 = vmatpush3.msra.mxu1 %v11413_v56 }
 0xbff   :  { %9806 = vmatprep.subr.mxu0 %v12636_v45  ;;  %9817 = vmatprep.subr.mxu1 %v12636_v45 }
 0xc00   :  { %9807 = vmatpush3.msra.mxu0 %v11419_v50  ;;  %9808 = vmatprep.mubr.msk.f32.mxu0 %vm10598_vm1, %v12636_v45 }
 0xc01   :  { %9818 = vmatpush3.msra.mxu1 %v11423_v11  ;;  %9819 = vmatprep.mubr.msk.f32.mxu1 %vm10598_vm1, %v12636_v45 }
 0xc02   :  { %9809 = vmatmul.mubr.msk.f32.vlgmr.msra.gmra.mxu0 %vm522_vm2, %v4763_v29  ;;  %9820 = vmatmul.mubr.msk.f32.vlgmr.msra.gmra.mxu1 %vm522_vm2, %v4763_v29 }
 0xc03   :  { %9822 = vmatprep.subr.mxu0 %v12636_v45  ;;  %9833 = vmatprep.subr.mxu1 %v12636_v45 }
 0xc04   :  { %9823 = vmatpush3.msra.mxu0 %v11335_v38  ;;  %9834 = vmatpush3.msra.mxu1 %v11337_v30  ;;  %v3147_v38 = vadd.f32 %v11509_v27, %v11473_v12  ;;  %v3261_v30 = vadd.f32 %v11511_v28, %v11475_v34 }
 0xc05   :  { %9824 = vmatprep.subr.mxu0 %v12636_v45  ;;  %9835 = vmatprep.subr.mxu1 %v12636_v45 }
 0xc06   :  { %9825 = vmatpush3.msra.mxu0 %v11351_v0  ;;  %9836 = vmatpush3.msra.mxu1 %v11353_v8 }
 0xc07   :  { %9826 = vmatprep.subr.mxu0 %v12636_v45  ;;  %9837 = vmatprep.subr.mxu1 %v12636_v45 }
 0xc08   :  { %9827 = vmatpush3.msra.mxu0 %v11367_v31  ;;  %9838 = vmatpush3.msra.mxu1 %v11369_v40 }
 0xc09   :  { %9828 = vmatprep.subr.mxu0 %v12636_v45  ;;  %9839 = vmatprep.subr.mxu1 %v12636_v45 }
 0xc0a   :  { %9829 = vmatpush3.msra.mxu0 %v11381_v58  ;;  %9840 = vmatpush3.msra.mxu1 %v11383_v52 }
 0xc0b   :  { %9830 = vmatprep.mubr.msk.f32.mxu0 %vm10598_vm1, %v12636_v45  ;;  %9841 = vmatprep.mubr.msk.f32.mxu1 %vm10598_vm1, %v12636_v45 }
 0xc0c   :  { %9844 = vmatprep.subr.mxu0 %v12636_v45  ;;  %9855 = vmatprep.subr.mxu1 %v12636_v45 }
 0xcb9   :  { %v4833_v0 = vpop.f32.mrf.mxu0  ;;  %v4903_v8 = vpop.f32.mrf.mxu1 }
 0xcba   :  { %v5047_v53 = vadd.f32 %v4833_v0, %v3147_v38  ;;  %v5054_v33 = vadd.f32 %v4903_v8, %v3261_v30 }
 0xcbb   :  { %v9788_v32 = vpop.f32.mrf.mxu0  ;;  %v9799_v57 = vpop.f32.mrf.mxu1 }
 0xcbc   :  { %v8456_v2 = vmul.f32 -1.442695, %v5047_v53  ;;  %v8457_v18 = vmul.f32 -1.442695, %v5054_v33 }
 0xcbe   :  { %10451 = vpow2.f32 %v8456_v2  ;;  %v11802_v2 = vld [vmem:[#allocation3 + $0x160] sm:$0xff] }
 0xcbf   :  { %10453 = vpow2.f32 %v8457_v18  ;;  %v11805_v18 = vld [vmem:[#allocation3 + $0x1a0] sm:$0xff] }
 0xcc2   :  { %v4973_v37 = vpop.f32.mrf.mxu0  ;;  %v5043_v25 = vpop.f32.mrf.mxu1 }
 0xcc3   :  { %v5063_v13 = vadd.f32 %v5043_v25, %v11503_v22  ;;  %v5061_v17 = vadd.f32 %v4973_v37, %v11501_v21  ;;  %v11810_v37 = vld [vmem:[#allocation3 + $0x158] sm:$0xff] }
 0xcc4   :  { %v9810_v42 = vpop.f32.mrf.mxu0  ;;  %v9821_v5 = vpop.f32.mrf.mxu1  ;;  %v11813_v25 = vld [vmem:[#allocation3 + $0x198] sm:$0xff] }
 0xcc5   :  { %v8458_v12 = vmul.f32 -1.442695, %v5063_v13  ;;  %v11818_v13 = vld [vmem:[#allocation3 + $0x150] sm:$0xff]  ;;  %v11826_v5 = vld [vmem:[#allocation3 + $0x148] sm:$0xff] }
 0xcc6   :  { %v11821_v42 = vld [vmem:[#allocation3 + $0x190] sm:$0xff] }
 0xcc7   :  { %10455 = vpow2.f32 %v8458_v12  ;;  %v11831_v12 = vld [vmem:[#allocation3 + $0x188] sm:$0xff] }
 0xcc8   :  { %10457 = vtanh.f32 %v5061_v17  ;;  %v10544_v17 = vld [vmem:[#allocation3 + $0xd0] sm:$0xff] }
 0xccb   :  { %v10452_v34 = vpop.eup %10451 }
 0xccc   :  { %v10454_v47 = vpop.eup %10453  ;;  %v5051_v20 = vadd.f32 1.0, %v10452_v34  ;;  %v10545_v34 = vld [vmem:[#allocation3 + $0x110] sm:$0xff] }
 0xccd   :  { %v5058_v10 = vadd.f32 1.0, %v10454_v47  ;;  %v10546_v47 = vld [vmem:[#allocation3 + $0xc8] sm:$0xff] }
 0xcce   :  { %10459 = vrcp.f32 %v5051_v20  ;;  %v10547_v20 = vld [vmem:[#allocation3 + $0x108] sm:$0xff] }
 0xccf   :  { %10461 = vrcp.f32 %v5058_v10  ;;  %v12651_v10 = vld [vmem:[#allocation12_spill] sm:$0xff] }
 0xcd4   :  { %v10456_v23 = vpop.eup %10455 }
 0xcd5   :  { %v10458_v16 = vpop.eup %10457  ;;  %v5067_v4 = vadd.f32 1.0, %v10456_v23  ;;  %v3157_v23 = vadd.f32 %v11509_v27, %v12651_v10  ;;  %v6219_v10 = vld [vmem:[#allocation3 + $0x1b0] sm:$0xff] }
 0xcd7   :  { %10463 = vrcp.f32 %v5067_v4 }
 0xcdb   :  { %v10460_v59 = vpop.eup %10459 }
 0xcdc   :  { %v10462_v24 = vpop.eup %10461  ;;  %v5071_v49 = vmul.f32 %v10460_v59, %v10458_v16  ;;  %v12652_v16 = vld [vmem:[#allocation10_spill] sm:$0xff] }
 0xcdd   :  { %v5070_v22 = vmul.f32 %v10462_v24, %v11681_v44  ;;  %v3271_v59 = vadd.f32 %v11511_v28, %v12652_v16 }
 0xcdf   :  { %v11735_v63 = vadd.f32 %v5071_v49, %v5070_v22 }
 0xce1   :  { %10465 = vtanh.f32 %v11735_v63 }
 0xce4   :  { %v10464_v21 = vpop.eup %10463 }
 0xcee   :  { %v10466_v14 = vpop.eup %10465 }
 0xcef   :  { %v5074_v54 = vmul.f32 %v10466_v14, %v10464_v21 }
 0xcf1   :  { %9831 = vmatmul.mubr.msk.f32.vlgmr.msra.gmra.mxu0 %vm522_vm2, %v5074_v54  ;;  %9842 = vmatmul.mubr.msk.f32.vlgmr.msra.gmra.mxu1 %vm522_vm2, %v5074_v54 }
 0xcf2   :  { %9845 = vmatpush3.msra.mxu0 %v11395_v48  ;;  %9856 = vmatpush3.msra.mxu1 %v11397_v43  ;;  %v11762_v48 = vld [vmem:[#allocation3 + $0xe0] sm:$0xff] }
 0xcf3   :  { %9846 = vmatprep.subr.mxu0 %v12636_v45  ;;  %9857 = vmatprep.subr.mxu1 %v12636_v45  ;;  %v11765_v43 = vld [vmem:[#allocation3 + $0x120] sm:$0xff] }
 0xcf4   :  { %9847 = vmatpush3.msra.mxu0 %v11403_v46  ;;  %9858 = vmatpush3.msra.mxu1 %v11405_v39  ;;  %v11770_v46 = vld [vmem:[#allocation3 + $0xd8] sm:$0xff] }
 0xcf5   :  { %9848 = vmatprep.subr.mxu0 %v12636_v45  ;;  %9859 = vmatprep.subr.mxu1 %v12636_v45  ;;  %v11773_v39 = vld [vmem:[#allocation3 + $0x118] sm:$0xff] }
 0xcf6   :  { %9849 = vmatpush3.msra.mxu0 %v11411_v3  ;;  %9860 = vmatpush3.msra.mxu1 %v11413_v56 }
 0xcf7   :  { %9850 = vmatprep.subr.mxu0 %v12636_v45  ;;  %9861 = vmatprep.subr.mxu1 %v12636_v45 }
 0xcf8   :  { %9851 = vmatpush3.msra.mxu0 %v11419_v50  ;;  %9852 = vmatprep.mubr.msk.f32.mxu0 %vm10598_vm1, %v12636_v45 }
 0xcf9   :  { %9862 = vmatpush3.msra.mxu1 %v11423_v11  ;;  %9863 = vmatprep.mubr.msk.f32.mxu1 %vm10598_vm1, %v12636_v45 }
 0xcfa   :  { %9853 = vmatmul.mubr.msk.f32.vlgmr.msra.gmra.mxu0 %vm522_vm2, %v5074_v54  ;;  %9864 = vmatmul.mubr.msk.f32.vlgmr.msra.gmra.mxu1 %vm522_vm2, %v5074_v54 }
 0xcfb   :  { %9866 = vmatprep.subr.mxu0 %v12636_v45  ;;  %9877 = vmatprep.subr.mxu1 %v12636_v45 }
 0xcfc   :  { %9867 = vmatpush3.msra.mxu0 %v11762_v48  ;;  %9878 = vmatpush3.msra.mxu1 %v11765_v43 }
 0xcfd   :  { %9868 = vmatprep.subr.mxu0 %v12636_v45  ;;  %9879 = vmatprep.subr.mxu1 %v12636_v45 }
 0xcfe   :  { %9869 = vmatpush3.msra.mxu0 %v11770_v46  ;;  %9880 = vmatpush3.msra.mxu1 %v11773_v39 }
 0xcff   :  { %9870 = vmatprep.subr.mxu0 %v12636_v45  ;;  %9881 = vmatprep.subr.mxu1 %v12636_v45 }
 0xd00   :  { %9871 = vmatpush3.msra.mxu0 %v11367_v31  ;;  %9882 = vmatpush3.msra.mxu1 %v11369_v40  ;;  %v3152_v31 = vadd.f32 %v11469_v51, %v11509_v27  ;;  %v3266_v40 = vadd.f32 %v11471_v1, %v11511_v28 }
 0xd01   :  { %9872 = vmatprep.subr.mxu0 %v12636_v45  ;;  %9883 = vmatprep.subr.mxu1 %v12636_v45 }
 0xd02   :  { %9873 = vmatpush3.msra.mxu0 %v11381_v58  ;;  %9884 = vmatpush3.msra.mxu1 %v11383_v52 }
 0xd03   :  { %9874 = vmatprep.mubr.msk.f32.mxu0 %vm10598_vm1, %v12636_v45  ;;  %9885 = vmatprep.mubr.msk.f32.mxu1 %vm10598_vm1, %v12636_v45 }
 0xd04   :  { %9888 = vmatprep.subr.mxu0 %v12636_v45  ;;  %9899 = vmatprep.subr.mxu1 %v12636_v45 }
 0xdb1   :  { %v5144_v3 = vpop.f32.mrf.mxu0  ;;  %v5214_v58 = vpop.f32.mrf.mxu1 }
 0xdb2   :  { %v5358_v56 = vadd.f32 %v5144_v3, %v3152_v31  ;;  %v5365_v52 = vadd.f32 %v5214_v58, %v3266_v40  ;;  %v12654_v3 = vld [vmem:[#allocation16_spill] sm:$0xff] }
 0xdb3   :  { %v9832_v50 = vpop.f32.mrf.mxu0  ;;  %v9843_v11 = vpop.f32.mrf.mxu1 }
 0xdb4   :  { %v8463_v35 = vmul.f32 -1.442695, %v5358_v56  ;;  %v8464_v6 = vmul.f32 -1.442695, %v5365_v52 }
 0xdb6   :  { %10467 = vpow2.f32 %v8463_v35 }
 0xdb7   :  { %10469 = vpow2.f32 %v8464_v6 }
 0xdba   :  { %v5284_v15 = vpop.f32.mrf.mxu0  ;;  %v5354_v55 = vpop.f32.mrf.mxu1 }
 0xdbb   :  { %v5374_v7 = vadd.f32 %v5354_v55, %v11499_v19  ;;  %v5372_v60 = vadd.f32 %v5284_v15, %v12650_v36 }
 0xdbc   :  { %v9854_v26 = vpop.f32.mrf.mxu0  ;;  %v9865_v41 = vpop.f32.mrf.mxu1 }
 0xdbd   :  { %v8465_v51 = vmul.f32 -1.442695, %v5374_v7 }
 0xdbf   :  { %10471 = vpow2.f32 %v8465_v51  ;;  %v6016_v51 = vlaneseq }
 0xdc0   :  { %10473 = vtanh.f32 %v5372_v60 }
 0xdc1   :  { %v11866_v36 = vshrl.u32 %v6016_v51, 7 }
 0xdc3   :  { %v10468_v1 = vpop.eup %10467  ;;  %vm6137_vm3 = vcmp.lt.s32.totalorder %v11866_v36, 1  ;;  %vm6186_vm11 = vcmp.lt.s32.totalorder %v11866_v36, 7 }
 0xdc4   :  { %v10470_v61 = vpop.eup %10469  ;;  %v5362_v44 = vadd.f32 1.0, %v10468_v1 }
 0xdc5   :  { %v5369_v62 = vadd.f32 1.0, %v10470_v61 }
 0xdc6   :  { %10475 = vrcp.f32 %v5362_v44  ;;  %v11869_v44 = vadd.s32 8, %v11866_v36 }
 0xdc7   :  { %10477 = vrcp.f32 %v5369_v62  ;;  %v11874_v62 = vld [vmem:[%s12627_s1] sm:$0xff] }
 0xdcc   :  { %v10472_v9 = vpop.eup %10471 }
 0xdcd   :  { %v10474_v29 = vpop.eup %10473  ;;  %v5378_v8 = vadd.f32 1.0, %v10472_v9  ;;  %v11879_v9 = vld [vmem:[%s12627_s1 + $0x38] sm:$0xff] }
 0xdcf   :  { %10479 = vrcp.f32 %v5378_v8  ;;  %v6129_v8 = vrot.slane %v11874_v62, 7 }
 0xdd3   :  { %v10476_v38 = vpop.eup %10475 }
 0xdd4   :  { %v10478_v30 = vpop.eup %10477  ;;  %v5382_v0 = vmul.f32 %v10476_v38, %v10474_v29  ;;  %v11884_v29 = vld [vmem:[%s12627_s1 + $0x8] sm:$0xff]  ;;  %v11887_v38 = vadd.s32 16, %v11866_v36 }
 0xdd5   :  { %v5381_v19 = vmul.f32 %v10478_v30, %v11735_v63  ;;  %v11894_v30 = vld [vmem:[%s12627_s1 + $0x10] sm:$0xff] }
 0xdd7   :  { %v11797_v53 = vadd.f32 %v5382_v0, %v5381_v19  ;;  %v6029_v0 = vand.u32 7, %v11866_v36  ;;  %v6136_v19 = vrot.slane %v11879_v9, 7 }
 0xdd9   :  { %10481 = vtanh.f32 %v11797_v53  ;;  %vm11927_vm4 = vcmp.gt.s32.totalorder %v6029_v0, 0  ;;  %vm12068_vm13 = vcmp.lt.s32.totalorder %v6029_v0, 7 }
 0xddc   :  { %v10480_v33 = vpop.eup %10479 }
 0xde6   :  { %v10482_v32 = vpop.eup %10481 }
 0xde7   :  { %v5385_v57 = vmul.f32 %v10482_v32, %v10480_v33  ;;  %v6036_v33 = vand.u32 7, %v11869_v44  ;;  %v6131_v32 = vrot.slane %v11894_v30, 7 }
 0xde9   :  { %9875 = vmatmul.mubr.msk.f32.vlgmr.msra.gmra.mxu0 %vm522_vm2, %v5385_v57  ;;  %9886 = vmatmul.mubr.msk.f32.vlgmr.msra.gmra.mxu1 %vm522_vm2, %v5385_v57  ;;  %vm11944_vm5 = vcmp.gt.s32.totalorder %v6036_v33, 0  ;;  %vm12087_vm14 = vcmp.lt.s32.totalorder %v6036_v33, 7 }
 0xdea   :  { %9889 = vmatpush3.msra.mxu0 %v11802_v2  ;;  %9900 = vmatpush3.msra.mxu1 %v11805_v18 }
 0xdeb   :  { %9890 = vmatprep.subr.mxu0 %v12636_v45  ;;  %9901 = vmatprep.subr.mxu1 %v12636_v45 }
 0xdec   :  { %9891 = vmatpush3.msra.mxu0 %v11810_v37  ;;  %9902 = vmatpush3.msra.mxu1 %v11813_v25 }
 0xded   :  { %9892 = vmatprep.subr.mxu0 %v12636_v45  ;;  %9903 = vmatprep.subr.mxu1 %v12636_v45 }
 0xdee   :  { %9893 = vmatpush3.msra.mxu0 %v11818_v13  ;;  %9904 = vmatpush3.msra.mxu1 %v11821_v42 }
 0xdef   :  { %9894 = vmatprep.subr.mxu0 %v12636_v45  ;;  %9905 = vmatprep.subr.mxu1 %v12636_v45 }
 0xdf0   :  { %9895 = vmatpush3.msra.mxu0 %v11826_v5  ;;  %9896 = vmatprep.mubr.msk.f32.mxu0 %vm10598_vm1, %v12636_v45 }
 0xdf1   :  { %9906 = vmatpush3.msra.mxu1 %v11831_v12  ;;  %9907 = vmatprep.mubr.msk.f32.mxu1 %vm10598_vm1, %v12636_v45 }
 0xdf2   :  { %9897 = vmatmul.mubr.msk.f32.vlgmr.msra.gmra.mxu0 %vm522_vm2, %v5385_v57  ;;  %9908 = vmatmul.mubr.msk.f32.vlgmr.msra.gmra.mxu1 %vm522_vm2, %v5385_v57  ;;  %v6043_v57 = vand.u32 7, %v11887_v38 }
 0xdf3   :  { %9910 = vmatprep.subr.mxu0 %v12636_v45  ;;  %9921 = vmatprep.subr.mxu1 %v12636_v45 }
 0xdf4   :  { %9911 = vmatpush3.msra.mxu0 %v11762_v48  ;;  %9922 = vmatpush3.msra.mxu1 %v11765_v43  ;;  %vm11956_vm6 = vcmp.gt.s32.totalorder %v6043_v57, 0  ;;  %vm6172_vm15 = vcmp.lt.s32.totalorder %v6043_v57, 7 }
 0xdf5   :  { %9912 = vmatprep.subr.mxu0 %v12636_v45  ;;  %9923 = vmatprep.subr.mxu1 %v12636_v45 }
 0xdf6   :  { %9913 = vmatpush3.msra.mxu0 %v11770_v46  ;;  %9924 = vmatpush3.msra.mxu1 %v11773_v39  ;;  %v12653_v46 = vld [vmem:[#allocation17_spill] sm:$0xff] }
 0xdf7   :  { %9914 = vmatprep.subr.mxu0 %v12636_v45  ;;  %9925 = vmatprep.subr.mxu1 %v12636_v45 }
 0xdf8   :  { %9915 = vmatpush3.msra.mxu0 %v10544_v17  ;;  %9926 = vmatpush3.msra.mxu1 %v10545_v34  ;;  %v11934_v17 = vld [vmem:[%s12627_s1 + $0x20] sm:$0xff] }
 0xdf9   :  { %9916 = vmatprep.subr.mxu0 %v12636_v45  ;;  %9927 = vmatprep.subr.mxu1 %v12636_v45  ;;  %v6182_v0 = vrot.slane %v11934_v17, 1 }
 0xdfa   :  { %9917 = vmatpush3.msra.mxu0 %v10546_v47  ;;  %9928 = vmatpush3.msra.mxu1 %v10547_v20  ;;  %v6220_v20 = vld [vmem:[#allocation3 + $0x1b8] sm:$0xff] }
 0xdfb   :  { %9918 = vmatprep.mubr.msk.f32.mxu0 %vm10598_vm1, %v12636_v45  ;;  %9929 = vmatprep.mubr.msk.f32.mxu1 %vm10598_vm1, %v12636_v45 }
 0xdfc   :  { %9932 = vmatprep.subr.mxu0 %v12636_v45  ;;  %9943 = vmatprep.subr.mxu1 %v12636_v45 }
 0xea9   :  { %v5455_v24 = vpop.f32.mrf.mxu0  ;;  %v5525_v49 = vpop.f32.mrf.mxu1 }
 0xeaa   :  { %v5669_v4 = vadd.f32 %v5455_v24, %v3157_v23  ;;  %v5676_v22 = vadd.f32 %v5525_v49, %v3271_v59  ;;  %v11964_v24 = vadd.s32 40, %v11866_v36 }
 0xeab   :  { %v9876_v63 = vpop.f32.mrf.mxu0  ;;  %v9887_v21 = vpop.f32.mrf.mxu1 }
 0xeac   :  { %v8470_v14 = vmul.f32 -1.442695, %v5669_v4  ;;  %v8471_v54 = vmul.f32 -1.442695, %v5676_v22  ;;  %v11974_v4 = vld [vmem:[%s12627_s1 + $0x28] sm:$0xff]  ;;  %v11977_v22 = vadd.s32 48, %v11866_v36 }
 0xead   :  { %v11986_v63 = vld [vmem:[%s12627_s1 + $0x30] sm:$0xff] }
 0xeae   :  { %10483 = vpow2.f32 %v8470_v14 }
 0xeaf   :  { %10485 = vpow2.f32 %v8471_v54 }
 0xeb2   :  { %v5595_v48 = vpop.f32.mrf.mxu0  ;;  %v5665_v43 = vpop.f32.mrf.mxu1 }
 0xeb3   :  { %v5685_v39 = vadd.f32 %v5665_v43, %v12653_v46  ;;  %v5683_v58 = vadd.f32 %v5595_v48, %v12654_v3  ;;  %v6479_v48 = vld [vmem:[#allocation3 + $0x1c0] sm:$0xff]  ;;  %v6134_v46 = vrot.slane %v11974_v4, 7  ;;  %v6135_v3 = vrot.slane %v11986_v63, 7  ;;  %v7241_v43 = vld [vmem:[#allocation3 + $0x1f0] sm:$0xff] }
 0xeb4   :  { %v9898_v31 = vpop.f32.mrf.mxu0  ;;  %v9909_v40 = vpop.f32.mrf.mxu1 }
 0xeb5   :  { %v8472_v27 = vmul.f32 -1.442695, %v5685_v39  ;;  %v6064_v39 = vand.u32 7, %v11964_v24  ;;  %v12005_v31 = vadd.s32 56, %v11866_v36  ;;  %v7251_v24 = vld [vmem:[#allocation3 + $0x240] sm:$0xff]  ;;  %v7237_v40 = vld [vmem:[#allocation3 + $0x1d0] sm:$0xff] }
 0xeb7   :  { %10487 = vpow2.f32 %v8472_v27  ;;  %vm12030_vm9 = vcmp.gt.s32.totalorder %v6064_v39, 0 }
 0xeb8   :  { %10489 = vtanh.f32 %v5683_v58  ;;  %v6071_v58 = vand.u32 7, %v11977_v22  ;;  %v7247_v22 = vld [vmem:[#allocation3 + $0x220] sm:$0xff] }
 0xeba   :  { %vm12039_vm10 = vcmp.gt.s32.totalorder %v6071_v58, 0 }
 0xebb   :  { %v10484_v28 = vpop.eup %10483 }
 0xebc   :  { %v10486_v56 = vpop.eup %10485  ;;  %v5673_v52 = vadd.f32 1.0, %v10484_v28 }
 0xebd   :  { %v5680_v50 = vadd.f32 1.0, %v10486_v56 }
 0xebe   :  { %10491 = vrcp.f32 %v5673_v52 }
 0xebf   :  { %10493 = vrcp.f32 %v5680_v50 }
 0xec4   :  { %v10488_v11 = vpop.eup %10487 }
 0xec5   :  { %v10490_v35 = vpop.eup %10489  ;;  %v5689_v7 = vadd.f32 1.0, %v10488_v11  ;;  %v6078_v11 = vand.u32 7, %v12005_v31  ;;  %v7238_v31 = vld [vmem:[#allocation3 + $0x1d8] sm:$0xff] }
 0xec7   :  { %10495 = vrcp.f32 %v5689_v7  ;;  %vm12057_vm12 = vcmp.gt.s32.totalorder %v6078_v11, 0 }
 0xecb   :  { %v10492_v6 = vpop.eup %10491 }
 0xecc   :  { %v10494_v15 = vpop.eup %10493  ;;  %v5693_v55 = vmul.f32 %v10492_v6, %v10490_v35  ;;  %v6178_v35 = vrot.slane %v11874_v62, 1  ;;  %v6179_v6 = vrot.slane %v11884_v29, 1 }
 0xecd   :  { %v5692_v26 = vmul.f32 %v10494_v15, %v11797_v53  ;;  %v6130_v53 = vrot.slane %v11884_v29, 7 }
 0xecf   :  { %v11863_v41 = vadd.f32 %v5693_v55, %v5692_v26  ;;  %v6144_v34 = vsel %vm6137_vm3, %v6129_v8, %v6130_v53  ;;  %v6143_v16 = vsel %vm6137_vm3, %v6130_v53, %v6131_v32  ;;  %v6139_v55 = vsel %vm6137_vm3, %v6134_v46, %v6135_v3 }
 0xed0   :  { %v6163_v21 = vsel %vm11944_vm5, %v6144_v34, 0.0  ;;  %v6164_v14 = vsel %vm11956_vm6, %v6143_v16, 0.0  ;;  %v6180_v26 = vrot.slane %v11894_v30, 1  ;;  %v6168_v51 = vsel %vm12039_vm10, %v6139_v55, 0.0 }
 0xed1   :  { %10497 = vtanh.f32 %v11863_v41  ;;  %vm6175_vm6 = vcmp.lt.s32.totalorder %v6064_v39, 7  ;;  %v7239_v39 = vld [vmem:[#allocation3 + $0x1e0] sm:$0xff]  ;;  %vm7158_vm10 = vcmask 1043459  }
 0xed2   :  { %v6192_v53 = vsel %vm6186_vm11, %v6179_v6, %v6180_v26 }
 0xed3   :  { %v6212_v33 = vsel %vm12087_vm14, %v6192_v53, 0.0  ;;  %vm7164_vm14 = vcmask 1046534  }
 0xed4   :  { %v10496_v60 = vpop.eup %10495 }
 0xede   :  { %v10498_v1 = vpop.eup %10497 }
 0xedf   :  { %v5696_v61 = vmul.f32 %v10498_v1, %v10496_v60  ;;  %v6138_v1 = vsel %vm6137_vm3, %v6135_v3, %v6136_v19  ;;  %v12675_v3 = vld [vmem:[#allocation9_spill] sm:$0xff] }
 0xee1   :  { %9919 = vmatmul.mubr.msk.f32.vlgmr.msra.gmra.mxu0 %vm522_vm2, %v5696_v61  ;;  %9930 = vmatmul.mubr.msk.f32.vlgmr.msra.gmra.mxu1 %vm522_vm2, %v5696_v61 }
 0xee2   :  { %9933 = vmatpush3.msra.mxu0 %v11802_v2  ;;  %9944 = vmatpush3.msra.mxu1 %v11805_v18  ;;  %v11913_v2 = vld [vmem:[%s12627_s1 + $0x18] sm:$0xff]  ;;  %v11916_v18 = vadd.s32 24, %v11866_v36  ;;  %s10601_s1 = smov [#allocation6]  }
 0xee3   :  { %9934 = vmatprep.subr.mxu0 %v12636_v45  ;;  %9945 = vmatprep.subr.mxu1 %v12636_v45  ;;  %v6132_v47 = vrot.slane %v11913_v2, 7  ;;  %s8295_s22 = sshll.u32 %s10601_s1, 4  ;;  %s8296_s22 = int_to_ptr.vmem [resolvable:$true] %s8295_s22 }
 0xee4   :  { %9935 = vmatpush3.msra.mxu0 %v11810_v37  ;;  %9946 = vmatpush3.msra.mxu1 %v11813_v25  ;;  %v11921_v37 = vadd.s32 32, %v11866_v36  ;;  %v6050_v59 = vand.u32 7, %v11916_v18  ;;  %v6184_v25 = vrot.slane %v11986_v63, 1  ;;  %s10570_s23 = scalar_lea.vmem %s8296_s22, 128  ;;  %p10575_p6 = scmp.lt.s32.totalorder %s8296_s22, %s8296_s22 }
 0xee5   :  { %9936 = vmatprep.subr.mxu0 %v12636_v45  ;;  %9947 = vmatprep.subr.mxu1 %v12636_v45  ;;  %v6142_v54 = vsel %vm6137_vm3, %v6131_v32, %v6132_v47  ;;  %v6183_v32 = vrot.slane %v11974_v4, 1  ;;  %p10571_p5 = scmp.ne.s32.totalorder %s8296_s22, %s10570_s23  ;;  %p10576_p7 = scmp.lt.s32.totalorder %s10570_s23, %s10570_s23 }
 0xee6   :  { %9937 = vmatpush3.msra.mxu0 %v11818_v13  ;;  %9948 = vmatpush3.msra.mxu1 %v11821_v42  ;;  %v6145_v13 = vsel %vm6137_vm3, %v6136_v19, %v6129_v8  ;;  %v6057_v49 = vand.u32 7, %v11921_v37  ;;  %vm11998_vm7 = vcmp.gt.s32.totalorder %v6050_v59, 0  ;;  %v6185_v42 = vrot.slane %v11879_v9, 1 }
 0xee7   :  { %9938 = vmatprep.subr.mxu0 %v12636_v45  ;;  %9949 = vmatprep.subr.mxu1 %v12636_v45  ;;  %v6165_v28 = vsel %vm11998_vm7, %v6142_v54, 0.0  ;;  %vm6176_vm7 = vcmp.lt.s32.totalorder %v6071_v58, 7  ;;  %v12129_v54 = vld [vmem:[#allocation3 + $0x288] sm:$0xff]  ;;  %p10577_p8 = por %p10576_p7, %p10575_p6 }
 0xee8   :  { %9939 = vmatpush3.msra.mxu0 %v11826_v5  ;;  %9940 = vmatprep.mubr.msk.f32.mxu0 %vm10598_vm1, %v12636_v45  ;;  %v6133_v5 = vrot.slane %v11934_v17, 7  ;;  %vm12010_vm8 = vcmp.gt.s32.totalorder %v6057_v49, 0  ;;  %vm6174_vm5 = vcmp.lt.s32.totalorder %v6057_v49, 7  ;;  %v6187_v37 = vsel %vm6186_vm11, %v6184_v25, %v6185_v42  ;;  %v7249_v49 = vld [vmem:[#allocation3 + $0x230] sm:$0xff] }
 0xee9   :  { %9950 = vmatpush3.msra.mxu1 %v11831_v12  ;;  %9951 = vmatprep.mubr.msk.f32.mxu1 %vm10598_vm1, %v12636_v45  ;;  %v6162_v12 = vsel %vm11927_vm4, %v6145_v13, 0.0  ;;  %vm6173_vm4 = vcmp.lt.s32.totalorder %v6050_v59, 7  ;;  %v6189_v13 = vsel %vm6186_vm11, %v6182_v0, %v6183_v32  ;;  %v6194_v23 = vsel %vm6186_vm11, %v6185_v42, %v6178_v35  ;;  %v7252_v59 = vld [vmem:[#allocation3 + $0x248] sm:$0xff]  ;;  %p10578_p9 = pnand %p10577_p8, %p10571_p5 }
 0xeea   :  { %9941 = vmatmul.mubr.msk.f32.vlgmr.msra.gmra.mxu0 %vm522_vm2, %v5696_v61  ;;  %9952 = vmatmul.mubr.msk.f32.vlgmr.msra.gmra.mxu1 %vm522_vm2, %v5696_v61  ;;  %v6141_v27 = vsel %vm6137_vm3, %v6132_v47, %v6133_v5  ;;  %v6140_v50 = vsel %vm6137_vm3, %v6133_v5, %v6134_v46  ;;  %v6181_v61 = vrot.slane %v11913_v2, 1  ;;  %v6215_v47 = vsel %vm6174_vm5, %v6189_v13, 0.0  ;;  %v7250_v5 = vld [vmem:[#allocation3 + $0x238] sm:$0xff]  ;;  %v7240_v46 = vld [vmem:[#allocation3 + $0x1e8] sm:$0xff] }
 0xeeb   :  { %9954 = vmatprep.subr.mxu0 %v6220_v20  ;;  %9968 = vmatprep.subr.mxu1 %v6219_v10  ;;  %v6166_v56 = vsel %vm12010_vm8, %v6141_v27, 0.0  ;;  %v6167_v7 = vsel %vm12030_vm9, %v6140_v50, 0.0  ;;  %vm6177_vm8 = vcmp.lt.s32.totalorder %v6078_v11, 7  ;;  %v10548_v27 = vld [vmem:[#allocation3 + $0x1a8] ss:$0 sm:$0xff]  ;;  %vm7156_vm9 = vcmask 1042434  }
 0xeec   :  { %9955 = vmatpush3.msra.mxu0 %v6220_v20  ;;  %9956 = vmatprep.mubr.msk.f32.mxu0 %vm43_vm0, %v11874_v62  ;;  %v6190_v57 = vsel %vm6186_vm11, %v6181_v61, %v6182_v0  ;;  %v6188_v20 = vsel %vm6186_vm11, %v6183_v32, %v6184_v25  ;;  %v6218_v16 = vsel %vm6177_vm8, %v6194_v23, 0.0  ;;  %v3162_v58 = vadd.f32 %v10548_v27, %v12675_v3  ;;  %v12678_v62 = vld [vmem:[#allocation15_spill] sm:$0xff] }
 0xeed   :  { %9969 = vmatpush3.msra.mxu1 %v6219_v10  ;;  %9970 = vmatprep.mubr.msk.f32.mxu1 %vm43_vm0, %v6162_v12  ;;  %v6214_v34 = vsel %vm6173_vm4, %v6190_v57, 0.0  ;;  %v6217_v10 = vsel %vm6176_vm7, %v6187_v37, 0.0  ;;  %v7246_v12 = vld [vmem:[#allocation3 + $0x218] sm:$0xff]  ;;  %vm7253_vm4 = vcmask 523264  }
 0xeee   :  { %9957 = vmatmul.mubr.msk.f32.vlgmr.msra.gmra.mxu0 %vm43_vm0, %v11884_v29  ;;  %9971 = vmatmul.mubr.msk.f32.vlgmr.msra.gmra.mxu1 %vm43_vm0, %v6163_v21  ;;  %v6193_v29 = vsel %vm6186_vm11, %v6178_v35, %v6179_v6  ;;  %v7244_v21 = vld [vmem:[#allocation3 + $0x208] sm:$0xff] }
 0xeef   :  { %9982 = vmatprep.subr.mxu0 %v6479_v48  ;;  %9959 = vmatprep.mubr.msk.f32.mxu0 %vm43_vm0, %v11894_v30  ;;  %v6169_v30 = vsel %vm12057_vm12, %v6138_v1, 0.0  ;;  %v6211_v8 = vsel %vm12068_vm13, %v6193_v29, 0.0  ;;  %v12677_v1 = vld [vmem:[#allocation14_spill] sm:$0xff]  ;;  %vm7160_vm12 = vcmask 1044484   ;;  %vm7162_vm13 = vcmask 1045509  }
 0xef0   :  { %9983 = vmatpush3.msra.mxu0 %v6479_v48  ;;  %9973 = vmatprep.mubr.msk.f32.mxu1 %vm43_vm0, %v6164_v14  ;;  %v7243_v14 = vld [vmem:[#allocation3 + $0x200] sm:$0xff]  ;;  %v7242_v48 = vld [vmem:[#allocation3 + $0x1f8] sm:$0xff] }
 0xef1   :  { %9996 = vmatprep.subr.mxu1 %v7252_v59  ;;  %10018 = vmatprep.subr.mxu0 %v7244_v21 }
 0xef2   :  { %9960 = vmatmul.mubr.msk.f32.gmra.mxu0 %vm43_vm0, %v11913_v2  ;;  %9974 = vmatmul.mubr.msk.f32.gmra.mxu1 %vm43_vm0, %v6165_v28  ;;  %v6191_v2 = vsel %vm6186_vm11, %v6180_v26, %v6181_v61  ;;  %v10549_v28 = vld [vmem:[#allocation3 + $0x1a9] ss:$0 sm:$0xff] }
 0xef3   :  { %9962 = vmatprep.mubr.msk.f32.mxu0 %vm43_vm0, %v11934_v17  ;;  %9976 = vmatprep.mubr.msk.f32.mxu1 %vm43_vm0, %v6166_v56  ;;  %v6213_v17 = vsel %vm6172_vm15, %v6191_v2, 0.0  ;;  %v12676_v56 = vld [vmem:[#allocation11_spill] sm:$0xff]  ;;  %vm7166_vm15 = vcmask 1047559  }
 0xef4   :  { %9997 = vmatpush3.msra.mxu1 %v7252_v59  ;;  %v3276_v52 = vadd.f32 %v10549_v28, %v12676_v56 }
 0xef5   :  { %9998 = vmatprep.subr.mxu1 %v7251_v24 }
 0xef6   :  { %9963 = vmatmul.mubr.msk.f32.gmra.mxu0 %vm43_vm0, %v11974_v4  ;;  %9977 = vmatmul.mubr.msk.f32.gmra.mxu1 %vm43_vm0, %v6167_v7  ;;  %v7248_v4 = vld [vmem:[#allocation3 + $0x228] sm:$0xff] }
 0xef7   :  { %9965 = vmatprep.mubr.msk.f32.mxu0 %vm43_vm0, %v11986_v63  ;;  %9979 = vmatprep.mubr.msk.f32.mxu1 %vm43_vm0, %v6168_v51  ;;  %v7245_v63 = vld [vmem:[#allocation3 + $0x210] sm:$0xff] }
 0xef8   :  { %9999 = vmatpush3.msra.mxu1 %v7251_v24 }
 0xef9   :  { %10000 = vmatprep.subr.mxu1 %v7250_v5 }
 0xefa   :  { %9966 = vmatmul.mubr.msk.f32.gmra.mxu0 %vm43_vm0, %v11879_v9  ;;  %9980 = vmatmul.mubr.msk.f32.gmra.mxu1 %vm43_vm0, %v6169_v30  ;;  %v6216_v9 = vsel %vm6175_vm6, %v6188_v20, 0.0 }
 0xefb   :  { %9984 = vmatprep.mubr.msk.f32.mxu0 %vm43_vm0, %v6211_v8  ;;  %10001 = vmatpush3.msra.mxu1 %v7250_v5 }
 0xefc   :  { %10002 = vmatprep.subr.mxu1 %v7249_v49 }
 0xefd   :  { %10003 = vmatpush3.msra.mxu1 %v7249_v49 }
 0xefe   :  { %9985 = vmatmul.mubr.msk.f32.vlgmr.msra.gmra.mxu0 %vm43_vm0, %v6212_v33  ;;  %10004 = vmatprep.subr.mxu1 %v7248_v4 }
 0xeff   :  { %9987 = vmatprep.mubr.msk.f32.mxu0 %vm43_vm0, %v6213_v17  ;;  %10005 = vmatpush3.msra.mxu1 %v7248_v4 }
 0xf00   :  { %10006 = vmatprep.subr.mxu1 %v7247_v22  ;;  %10019 = vmatpush3.msra.mxu0 %v7244_v21 }
 0xf01   :  { %10007 = vmatpush3.msra.mxu1 %v7247_v22  ;;  %10020 = vmatprep.subr.mxu0 %v7243_v14  ;;  %v12137_v22 = vld [vmem:[#allocation3 + $0x1c8] ss:$0 sm:$0xff] }
 0xf02   :  { %9988 = vmatmul.mubr.msk.f32.gmra.mxu0 %vm43_vm0, %v6214_v34  ;;  %10008 = vmatprep.subr.mxu1 %v7246_v12 }
 0xf03   :  { %9990 = vmatprep.mubr.msk.f32.mxu0 %vm43_vm0, %v6215_v47  ;;  %10009 = vmatpush3.msra.mxu1 %v7246_v12 }
 0xf04   :  { %10010 = vmatprep.subr.mxu1 %v7245_v63  ;;  %10021 = vmatpush3.msra.mxu0 %v7243_v14 }
 0xf05   :  { %10011 = vmatpush3.msra.mxu1 %v7245_v63  ;;  %10022 = vmatprep.subr.mxu0 %v7242_v48 }
 0xf06   :  { %9991 = vmatmul.mubr.msk.f32.gmra.mxu0 %vm43_vm0, %v6216_v9  ;;  %10040 = vmatprep.subr.mxu1 %v12129_v54  ;;  %v10599_v9 = vmov 1983009808  }
 0xf07   :  { %9993 = vmatprep.mubr.msk.f32.mxu0 %vm43_vm0, %v6217_v10  ;;  %10023 = vmatpush3.msra.mxu0 %v7242_v48  ;;  %v6648_v10 = vunpack.c.l.s4 %v10599_v9 }
 0xf08   :  { %10024 = vmatprep.subr.mxu0 %v7241_v43 }
 0xf09   :  { %10025 = vmatpush3.msra.mxu0 %v7241_v43  ;;  %v6649_v5 = vunpack.c.0.s8 %v6648_v10 }
 0xf0a   :  { %9994 = vmatmul.mubr.msk.f32.gmra.mxu0 %vm43_vm0, %v6218_v16  ;;  %10026 = vmatprep.subr.mxu0 %v7240_v46  ;;  %vm7154_vm0 = vcmask 1041409  }
 0xf0b   :  { %10027 = vmatpush3.msra.mxu0 %v7240_v46  ;;  %v12141_v46 = vsub.s32 %v6649_v5, %v11866_v36 }
 0xf0c   :  { %10028 = vmatprep.subr.mxu0 %v7239_v39 }
 0xf0d   :  { %10029 = vmatpush3.msra.mxu0 %v7239_v39 }
 0xf0e   :  { %10030 = vmatprep.subr.mxu0 %v7238_v31 }
 0xf0f   :  { %10031 = vmatpush3.msra.mxu0 %v7238_v31 }
 0xf10   :  { %10032 = vmatprep.subr.mxu0 %v7237_v40 }
 0xf11   :  { %10033 = vmatpush3.msra.mxu0 %v7237_v40  ;;  %v12144_v40 = vsub.s32 0, %v11866_v36 }
 0xf12   :  { %10062 = vmatprep.subr.mxu0 %v12636_v45 }
 0xfa1   :  { %v5766_v50 = vpop.f32.mrf.mxu0  ;;  %v5836_v11 = vpop.f32.mrf.mxu1 }
 0xfa2   :  { %v5980_v35 = vadd.f32 %v5766_v50, %v3162_v58  ;;  %v5987_v6 = vadd.f32 %v5836_v11, %v3276_v52 }
 0xfa3   :  { %v9920_v15 = vpop.f32.mrf.mxu0  ;;  %v9931_v55 = vpop.f32.mrf.mxu1 }
 0xfa4   :  { %v8477_v7 = vmul.f32 -1.442695, %v5980_v35  ;;  %v8478_v26 = vmul.f32 -1.442695, %v5987_v6  ;;  %v6946_v55 = vand.u32 3, %v11866_v36 }
 0xfa6   :  { %10499 = vpow2.f32 %v8477_v7  ;;  %v6953_v7 = vand.u32 3, %v11869_v44  ;;  %vm12289_vm5 = vcmp.lt.s32.totalorder %v6946_v55, 3  ;;  %vm12363_vm6 = vcmp.gt.s32.totalorder %v6946_v55, 0 }
 0xfa7   :  { %10501 = vpow2.f32 %v8478_v26 }
 0xfa8   :  { %vm12370_vm7 = vcmp.gt.s32.totalorder %v6953_v7, 0 }
 0xfaa   :  { %v5906_v51 = vpop.f32.mrf.mxu0  ;;  %v5976_v60 = vpop.f32.mrf.mxu1 }
 0xfab   :  { %v5994_v61 = vadd.f32 %v5906_v51, %v12677_v1  ;;  %v5996_v29 = vadd.f32 %v5976_v60, %v12678_v62 }
 0xfac   :  { %v9942_v30 = vpop.f32.mrf.mxu0  ;;  %v9953_v0 = vpop.f32.mrf.mxu1 }
 0xfad   :  { %v8479_v53 = vmul.f32 -1.442695, %v5996_v29 }
 0xfae   :  { %v9958_v8 = vpop.f32.mrf.mxu0  ;;  %v9972_v19 = vpop.f32.mrf.mxu1 }
 0xfaf   :  { %10503 = vpow2.f32 %v8479_v53  ;;  %v6446_v24 = vadd.f32 %v9972_v19, %v9958_v8 }
 0xfb0   :  { %v6311_v32 = vpop.f32.mrf.mxu0  ;;  %v6440_v2 = vpop.f32.mrf.mxu1  ;;  %10505 = vtanh.f32 %v5994_v61 }
 0xfb1   :  { %v6441_v12 = vadd.f32 %v6440_v2, %v6311_v32 }
 0xfb2   :  { %v9961_v33 = vpop.f32.mrf.mxu0  ;;  %v9975_v25 = vpop.f32.mrf.mxu1 }
 0xfb3   :  { %v10500_v17 = vpop.eup %10499  ;;  %v6456_v48 = vadd.f32 %v9975_v25, %v9961_v33 }
 0xfb4   :  { %v10502_v57 = vpop.eup %10501  ;;  %v5984_v13 = vadd.f32 1.0, %v10500_v17  ;;  %v6321_v42 = vpop.f32.mrf.mxu0 }
 0xfb5   :  { %v5991_v34 = vadd.f32 1.0, %v10502_v57  ;;  %v6450_v47 = vpop.f32.mrf.mxu1 }
 0xfb6   :  { %10507 = vrcp.f32 %v5984_v13  ;;  %v9964_v20 = vpop.f32.mrf.mxu0  ;;  %v6451_v6 = vadd.f32 %v6450_v47, %v6321_v42 }
 0xfb7   :  { %10509 = vrcp.f32 %v5991_v34  ;;  %v9978_v23 = vpop.f32.mrf.mxu1 }
 0xfb8   :  { %v6331_v37 = vpop.f32.mrf.mxu0  ;;  %v12151_v61 = vadd.f32 %v9978_v23, %v9964_v20 }
 0xfb9   :  { %v6460_v49 = vpop.f32.mrf.mxu1 }
 0xfba   :  { %v9967_v16 = vpop.f32.mrf.mxu0  ;;  %v12153_v62 = vadd.f32 %v6460_v49, %v6331_v37 }
 0xfbb   :  { %v9981_v27 = vpop.f32.mrf.mxu1 }
 0xfbc   :  { %v6341_v59 = vpop.f32.mrf.mxu0  ;;  %v10504_v21 = vpop.eup %10503  ;;  %v6476_v17 = vadd.f32 %v9981_v27, %v9967_v16 }
 0xfbd   :  { %v10506_v31 = vpop.eup %10505  ;;  %v6000_v28 = vadd.f32 1.0, %v10504_v21  ;;  %v6470_v29 = vpop.f32.mrf.mxu1 }
 0xfbe   :  { %v9986_v4 = vpop.f32.mrf.mxu0  ;;  %v6471_v57 = vadd.f32 %v6470_v29, %v6341_v59 }
 0xfbf   :  { %v6610_v63 = vadd.f32 %v9986_v4, %v6446_v24  ;;  %10511 = vrcp.f32 %v6000_v28 }
 0xfc0   :  { %v6570_v14 = vpop.f32.mrf.mxu0 }
 0xfc1   :  { %v6623_v43 = vadd.f32 %v12137_v22, %v6610_v63  ;;  %v6609_v39 = vadd.f32 %v6570_v14, %v6441_v12 }
 0xfc2   :  { %v9989_v3 = vpop.f32.mrf.mxu0 }
 0xfc3   :  { %v10508_v58 = vpop.eup %10507  ;;  %v6631_v56 = vmax.f32 %v6623_v43, 0.0  ;;  %v6622_v52 = vadd.f32 %v12137_v22, %v6609_v39  ;;  %v6612_v50 = vadd.f32 %v9989_v3, %v6456_v48 }
 0xfc4   :  { %v10510_v11 = vpop.eup %10509  ;;  %v6004_v35 = vmul.f32 %v10508_v58, %v10506_v31  ;;  %v6580_v15 = vpop.f32.mrf.mxu0 }
 0xfc5   :  { %v6003_v26 = vmul.f32 %v10510_v11, %v11863_v41  ;;  %v6663_v51 = vcombine.high %v6631_v56, %v6631_v56  ;;  %v6670_v60 = vrot.slane %v6631_v56, %v12141_v46  ;;  %v6630_v1 = vmax.f32 %v6622_v52, 0.0 }
 0xfc6   :  { %v6625_v30 = vadd.f32 %v12137_v22, %v6612_v50  ;;  %v6611_v0 = vadd.f32 %v6580_v15, %v6451_v6  ;;  %v9992_v8 = vpop.f32.mrf.mxu0 }
 0xfc7   :  { %v6005_v19 = vadd.f32 %v6004_v35, %v6003_v26  ;;  %v6677_v53 = vrot.slane %v6663_v51, %v12141_v46  ;;  %v6678_v32 = vcombine.high %v6670_v60, %v6670_v60  ;;  %v8509_v2 = vrot.slane %v6670_v60, 9 }
 0xfc8   :  { %v6646_v41 = vcombine.high %v6630_v1, %v6630_v1  ;;  %v6653_v33 = vrot.slane %v6630_v1, %v12141_v46  ;;  %v6633_v25 = vmax.f32 %v6625_v30, 0.0  ;;  %v6624_v13 = vadd.f32 %v12137_v22, %v6611_v0  ;;  %v6590_v37 = vpop.f32.mrf.mxu0 }
 0xfc9   :  { %10513 = vtanh.f32 %v6005_v19  ;;  %v12159_v42 = vcombine.high %v6677_v53, %v6677_v53  ;;  %v8510_v9 = vrot.slane %v6678_v32, 9  ;;  %v8511_v10 = vrot.slane %v6677_v53, 9 }
 0xfca   :  { %v6660_v34 = vrot.slane %v6646_v41, %v12141_v46  ;;  %v6661_v47 = vcombine.high %v6653_v33, %v6653_v33  ;;  %v8505_v20 = vrot.slane %v6653_v33, 9  ;;  %v6697_v23 = vcombine.high %v6633_v25, %v6633_v25  ;;  %v9995_v31 = vpop.f32.mrf.mxu0 }
 0xfcb   :  { %v6704_v24 = vrot.slane %v6633_v25, %v12141_v46  ;;  %v12163_v5 = vmax.f32 %v6670_v60, %v8509_v2  ;;  %v6632_v39 = vmax.f32 %v6624_v13, 0.0  ;;  %v12168_v27 = vmax.f32 %v6678_v32, %v8510_v9 }
 0xfcc   :  { %v6662_v49 = vcombine.high %v6660_v34, %v6660_v34  ;;  %v8506_v4 = vrot.slane %v6661_v47, 9  ;;  %v8507_v16 = vrot.slane %v6660_v34, 9  ;;  %v6910_v59 = vmax.f32 %v6653_v33, %v8505_v20  ;;  %v6600_v30 = vpop.f32.mrf.mxu0  ;;  %v12195_v2 = vpop.eup %10511 }
 0xfcd   :  { %v6711_v12 = vrot.slane %v6697_v23, %v12141_v46  ;;  %v6712_v63 = vcombine.high %v6704_v24, %v6704_v24  ;;  %v8517_v21 = vrot.slane %v6704_v24, 9  ;;  %v12170_v56 = vmax.f32 %v6677_v53, %v8511_v10 }
 0xfce   :  { %v8508_v14 = vrot.slane %v6662_v49, 9  ;;  %v6911_v48 = vmax.f32 %v6661_v47, %v8506_v4  ;;  %v12166_v43 = vmax.f32 %v6660_v34, %v8507_v16  ;;  %v7045_v35 = vrot.slane %v12163_v5, %v12144_v40 }
 0xfcf   :  { %v6713_v3 = vcombine.high %v6711_v12, %v6711_v12  ;;  %v8518_v58 = vrot.slane %v6712_v63, 9  ;;  %v8519_v28 = vrot.slane %v6711_v12, 9  ;;  %v12175_v11 = vmax.f32 %v6704_v24, %v8517_v21 }
 0xfd0   :  { %v12172_v52 = vmax.f32 %v6662_v49, %v8508_v14  ;;  %v7033_v50 = vrot.slane %v6911_v48, %v12144_v40  ;;  %v7029_v6 = vrot.slane %v6910_v59, %v12144_v40  ;;  %v7037_v15 = vrot.slane %v12166_v43, %v12144_v40 }
 0xfd1   :  { %v6680_v26 = vcombine.high %v6632_v39, %v6632_v39  ;;  %v8520_v51 = vrot.slane %v6713_v3, 9  ;;  %v12182_v60 = vmax.f32 %v6712_v63, %v8518_v58  ;;  %v12184_v1 = vmax.f32 %v6711_v12, %v8519_v28 }
 0xfd2   :  { %v6687_v29 = vrot.slane %v6632_v39, %v12141_v46  ;;  %v7041_v0 = vrot.slane %v12172_v52, %v12144_v40  ;;  %v12190_v19 = vsel %vm7154_vm0, %v7033_v50, %v7029_v6  ;;  %v7077_v53 = vrot.slane %v12175_v11, %v12144_v40 }
 0xfd3   :  { %v6694_v32 = vrot.slane %v6680_v26, %v12141_v46  ;;  %v6614_v25 = vadd.f32 %v9992_v8, %v12151_v61  ;;  %v6613_v13 = vadd.f32 %v6590_v37, %v12153_v62  ;;  %v6616_v20 = vadd.f32 %v9995_v31, %v6476_v17 }
 0xfd4   :  { %v6695_v41 = vcombine.high %v6687_v29, %v6687_v29  ;;  %v8513_v33 = vrot.slane %v6687_v29, 9  ;;  %v6615_v9 = vadd.f32 %v6600_v30, %v6471_v57  ;;  %v12203_v16 = vmax.f32 %v6713_v3, %v8520_v51 }
 0xfd5   :  { %v6696_v34 = vcombine.high %v6694_v32, %v6694_v32  ;;  %v8515_v47 = vrot.slane %v6694_v32, 9  ;;  %v6627_v49 = vadd.f32 %v12137_v22, %v6614_v25  ;;  %v6626_v4 = vadd.f32 %v12137_v22, %v6613_v13 }
 0xfd6   :  { %v12199_v10 = vpop.eup %10513  ;;  %v8514_v23 = vrot.slane %v6695_v41, 9  ;;  %v6918_v24 = vmax.f32 %v6687_v29, %v8513_v33  ;;  %v6629_v61 = vadd.f32 %v12137_v22, %v6616_v20  ;;  %v6628_v17 = vadd.f32 %v12137_v22, %v6615_v9 }
 0xfd7   :  { %v8516_v59 = vrot.slane %v6696_v34, 9  ;;  %v6920_v12 = vmax.f32 %v6694_v32, %v8515_v47  ;;  %v6635_v8 = vmax.f32 %v6627_v49, 0.0  ;;  %v6634_v37 = vmax.f32 %v6626_v4, 0.0 }
 0xfd8   :  { %v6919_v62 = vmax.f32 %v6695_v41, %v8514_v23  ;;  %v7061_v63 = vrot.slane %v6918_v24, %v12144_v40  ;;  %v6637_v14 = vmax.f32 %v6629_v61, 0.0  ;;  %v7081_v58 = vrot.slane %v12182_v60, %v12144_v40 }
 0xfd9   :  { %v12207_v57 = vmax.f32 %v6696_v34, %v8516_v59  ;;  %v7069_v21 = vrot.slane %v6920_v12, %v12144_v40  ;;  %v6731_v39 = vcombine.high %v6635_v8, %v6635_v8  ;;  %v6738_v31 = vrot.slane %v6635_v8, %v12141_v46 }
 0xfda   :  { %v7065_v48 = vrot.slane %v6919_v62, %v12144_v40  ;;  %v6714_v3 = vcombine.high %v6634_v37, %v6634_v37  ;;  %v7085_v28 = vrot.slane %v12184_v1, %v12144_v40  ;;  %v6721_v22 = vrot.slane %v6634_v37, %v12141_v46  ;;  %v7450_v1 = vld [vmem:[#allocation3 + $0x280] sm:$0xff] }
 0xfdb   :  { %v6765_v50 = vcombine.high %v6637_v14, %v6637_v14  ;;  %v6745_v26 = vrot.slane %v6731_v39, %v12141_v46  ;;  %v6746_v51 = vcombine.high %v6738_v31, %v6738_v31  ;;  %v8525_v29 = vrot.slane %v6738_v31, 9 }
 0xfdc   :  { %v7168_v6 = vsel %vm7154_vm0, %v7065_v48, %v7061_v63  ;;  %v6728_v30 = vrot.slane %v6714_v3, %v12141_v46  ;;  %v6729_v32 = vcombine.high %v6721_v22, %v6721_v22  ;;  %v8521_v41 = vrot.slane %v6721_v22, 9 }
 0xfdd   :  { %v6636_v33 = vmax.f32 %v6628_v17, 0.0  ;;  %v7073_v25 = vrot.slane %v12207_v57, %v12144_v40  ;;  %v7169_v13 = vsel %vm7156_vm9, %v7069_v21, %v7168_v6  ;;  %v8526_v34 = vrot.slane %v6746_v51, 9 }
 0xfde   :  { %v6772_v47 = vrot.slane %v6637_v14, %v12141_v46  ;;  %v8527_v20 = vrot.slane %v6745_v26, 9  ;;  %v6730_v9 = vcombine.high %v6728_v30, %v6728_v30  ;;  %v8522_v23 = vrot.slane %v6729_v32, 9 }
 0xfdf   :  { %v8523_v24 = vrot.slane %v6728_v30, 9  ;;  %v12225_v49 = vcombine.high %v6745_v26, %v6745_v26  ;;  %v12227_v4 = vmax.f32 %v6738_v31, %v8525_v29  ;;  %v6926_v59 = vmax.f32 %v6721_v22, %v8521_v41 }
 0xfe0   :  { %v6779_v12 = vrot.slane %v6765_v50, %v12141_v46  ;;  %v12230_v61 = vmax.f32 %v6746_v51, %v8526_v34  ;;  %v8524_v62 = vrot.slane %v6730_v9, 9  ;;  %v6927_v8 = vmax.f32 %v6729_v32, %v8522_v23 }
 0xfe1   :  { %v12232_v37 = vmax.f32 %v6728_v30, %v8523_v24  ;;  %v6780_v17 = vcombine.high %v6772_v47, %v6772_v47  ;;  %v8533_v63 = vrot.slane %v6772_v47, 9  ;;  %v12236_v14 = vmax.f32 %v6745_v26, %v8527_v20 }
 0xfe2   :  { %v12234_v57 = vcombine.high %v6779_v12, %v6779_v12  ;;  %v8535_v21 = vrot.slane %v6779_v12, 9  ;;  %v12238_v48 = vmax.f32 %v6730_v9, %v8524_v62  ;;  %v7097_v39 = vrot.slane %v6927_v8, %v12144_v40 }
 0xfe3   :  { %v6748_v31 = vcombine.high %v6636_v33, %v6636_v33  ;;  %v7109_v3 = vrot.slane %v12227_v4, %v12144_v40  ;;  %v7093_v22 = vrot.slane %v6926_v59, %v12144_v40  ;;  %v8534_v50 = vrot.slane %v6780_v17, 9  ;;  %v7448_v4 = vld [vmem:[#allocation3 + $0x270] sm:$0xff] }
 0xfe4   :  { %v12244_v6 = vmax.f32 %v6772_v47, %v8533_v63  ;;  %v7101_v51 = vrot.slane %v12232_v37, %v12144_v40  ;;  %v8536_v26 = vrot.slane %v12234_v57, 9  ;;  %v6755_v29 = vrot.slane %v6636_v33, %v12141_v46 }
 0xfe5   :  { %v6762_v30 = vrot.slane %v6748_v31, %v12141_v46  ;;  %v7105_v32 = vrot.slane %v12238_v48, %v12144_v40  ;;  %v7175_v41 = vsel %vm7154_vm0, %v7097_v39, %v7093_v22  ;;  %v12254_v34 = vmax.f32 %v6779_v12, %v8535_v21 }
 0xfe6   :  { %v8512_v47 = vrot.slane %v12159_v42, 9  ;;  %v6763_v20 = vcombine.high %v6755_v29, %v6755_v29  ;;  %v8529_v23 = vrot.slane %v6755_v29, 9  ;;  %v6939_v59 = vmax.f32 %v6780_v17, %v8534_v50 }
 0xfe7   :  { %v6764_v9 = vcombine.high %v6762_v30, %v6762_v30  ;;  %v8531_v24 = vrot.slane %v6762_v30, 9  ;;  %v7141_v33 = vrot.slane %v12244_v6, %v12144_v40  ;;  %v7157_v62 = vsel %vm7156_vm9, %v7037_v15, %v12190_v19 }
 0xfe8   :  { %v6917_v46 = vmax.f32 %v12159_v42, %v8512_v47  ;;  %v8530_v12 = vrot.slane %v6763_v20, 9  ;;  %v6934_v37 = vmax.f32 %v6755_v29, %v8529_v23  ;;  %v7049_v21 = vrot.slane %v12168_v27, %v12144_v40 }
 0xfe9   :  { %v8532_v8 = vrot.slane %v6764_v9, 9  ;;  %v6936_v63 = vmax.f32 %v6762_v30, %v8531_v24  ;;  %v7053_v17 = vrot.slane %v12170_v56, %v12144_v40  ;;  %v7159_v42 = vsel %vm7158_vm10, %v7041_v0, %v7157_v62 }
 0xfea   :  { %v7170_v48 = vsel %vm7158_vm10, %v7073_v25, %v7169_v13  ;;  %v6935_v43 = vmax.f32 %v6763_v20, %v8530_v12  ;;  %v7057_v15 = vrot.slane %v6917_v46, %v12144_v40  ;;  %v7089_v19 = vrot.slane %v12203_v16, %v12144_v40 }
 0xfeb   :  { %v6937_v39 = vmax.f32 %v6764_v9, %v8532_v8  ;;  %v7125_v31 = vrot.slane %v6934_v37, %v12144_v40  ;;  %v7161_v27 = vsel %vm7160_vm12, %v7045_v35, %v7159_v42  ;;  %v7171_v56 = vsel %vm7160_vm12, %v7077_v53, %v7170_v48  ;;  %v7449_v9 = vld [vmem:[#allocation3 + $0x278] sm:$0xff] }
 0xfec   :  { %v8528_v52 = vrot.slane %v12225_v49, 9  ;;  %v7129_v16 = vrot.slane %v6935_v43, %v12144_v40  ;;  %v7133_v25 = vrot.slane %v6936_v63, %v12144_v40  ;;  %v7163_v5 = vsel %vm7162_vm13, %v7049_v21, %v7161_v27  ;;  %v7447_v63 = vld [vmem:[#allocation3 + $0x268] sm:$0xff]  ;;  %v7445_v27 = vld [vmem:[#allocation3 + $0x258] sm:$0xff] }
 0xfed   :  { %v7172_v11 = vsel %vm7162_vm13, %v7081_v58, %v7171_v56  ;;  %v7137_v35 = vrot.slane %v6937_v39, %v12144_v40  ;;  %v7165_v53 = vsel %vm7164_vm14, %v7053_v17, %v7163_v5  ;;  %v7176_v58 = vsel %vm7156_vm9, %v7101_v51, %v7175_v41 }
 0xfee   :  { %v7173_v13 = vsel %vm7164_vm14, %v7085_v28, %v7172_v11  ;;  %v6933_v22 = vmax.f32 %v12225_v49, %v8528_v52  ;;  %v7182_v50 = vsel %vm7154_vm0, %v7129_v16, %v7125_v31  ;;  %v12309_v6 = vsel %vm7166_vm15, %v7057_v15, %v7165_v53  ;;  %v7444_v52 = vld [vmem:[#allocation3 + $0x250] sm:$0xff] }
 0xfef   :  { %v12312_v60 = vsel %vm7166_vm15, %v7089_v19, %v7173_v13  ;;  %v7145_v29 = vrot.slane %v6939_v59, %v12144_v40  ;;  %v7217_v30 = vrot.slane %v12309_v6, 1  ;;  %10012 = vmatprep.mubr.msk.f32.mxu1 %vm7253_vm4, %v12309_v6  ;;  %v7113_v28 = vrot.slane %v12230_v61, %v12144_v40  ;;  %v7593_v13 = vld [vmem:[#allocation3 + $0x330] sm:$0xff] }
 0xff0   :  { %v7117_v49 = vrot.slane %v12236_v14, %v12144_v40  ;;  %v7194_v47 = vrot.slane %v12312_v60, 7  ;;  %10013 = vmatmul.mubr.msk.f32.vlgmr.msra.gmra.mxu1 %vm7253_vm4, %v12312_v60  ;;  %v7177_v51 = vsel %vm7158_vm10, %v7105_v32, %v7176_v58  ;;  %v6941_v41 = vmax.f32 %v12234_v57, %v8536_v26  ;;  %v7733_v58 = vld [vmem:[#allocation3 + $0x420] sm:$0xff] }
 0xff1   :  { %v7183_v20 = vsel %vm7156_vm9, %v7133_v25, %v7182_v50  ;;  %10041 = vmatpush3.msra.mxu1 %v12129_v54  ;;  %v7121_v23 = vrot.slane %v6933_v22, %v12144_v40  ;;  %v7178_v61 = vsel %vm7160_vm12, %v7109_v3, %v7177_v51  ;;  %v7218_v24 = vrot.slane %v12312_v60, 1  ;;  %v7735_v22 = vld [vmem:[#allocation3 + $0x430] sm:$0xff]  ;;  %v7592_v50 = vld [vmem:[#allocation3 + $0x328] sm:$0xff]  ;;  %v7591_v60 = vld [vmem:[#allocation3 + $0x320] sm:$0xff] }
 0xff2   :  { %v7184_v14 = vsel %vm7158_vm10, %v7137_v35, %v7183_v20  ;;  %10042 = vmatprep.subr.mxu1 %v7450_v1  ;;  %v7179_v32 = vsel %vm7162_vm13, %v7113_v28, %v7178_v61  ;;  %v7149_v57 = vrot.slane %v12254_v34, %v12144_v40  ;;  %v7153_v54 = vrot.slane %v6941_v41, %v12144_v40  ;;  %v7731_v28 = vld [vmem:[#allocation3 + $0x410] sm:$0xff]  ;;  %v7587_v51 = vld [vmem:[#allocation3 + $0x300] sm:$0xff]  ;;  %v7586_v20 = vld [vmem:[#allocation3 + $0x2f8] sm:$0xff] }
 0xff3   :  { %v7185_v26 = vsel %vm7160_vm12, %v7141_v33, %v7184_v14  ;;  %10043 = vmatpush3.msra.mxu1 %v7450_v1  ;;  %v7180_v59 = vsel %vm7164_vm14, %v7117_v49, %v7179_v32  ;;  %v7223_v46 = vsel %vm6186_vm11, %v7217_v30, %v7218_v24  ;;  %v12350_v62 = vmul.f32 %v12199_v10, %v12195_v2  ;;  %v7446_v10 = vld [vmem:[#allocation3 + $0x260] sm:$0xff]  ;;  %v7589_v1 = vld [vmem:[#allocation3 + $0x310] sm:$0xff]  ;;  %v7588_v49 = vld [vmem:[#allocation3 + $0x308] sm:$0xff] }
 0xff4   :  { %v7186_v3 = vsel %vm7162_vm13, %v7145_v29, %v7185_v26  ;;  %10044 = vmatprep.subr.mxu1 %v7449_v9  ;;  %v7181_v34 = vsel %vm7166_vm15, %v7121_v23, %v7180_v59  ;;  %v6960_v12 = vand.u32 3, %v11887_v38  ;;  %v7193_v8 = vrot.slane %v12309_v6, 7  ;;  %v7734_v6 = vld [vmem:[#allocation3 + $0x428] sm:$0xff]  ;;  %v7590_v29 = vld [vmem:[#allocation3 + $0x318] sm:$0xff]  ;;  %v7729_v41 = vld [vmem:[#allocation3 + $0x400] sm:$0xff] }
 0xff5   :  { %v7187_v33 = vsel %vm7164_vm14, %v7149_v57, %v7186_v3  ;;  %v7195_v37 = vrot.slane %v7181_v34, 7  ;;  %10015 = vmatprep.mubr.msk.f32.mxu1 %vm7253_vm4, %v7181_v34  ;;  %10045 = vmatpush3.msra.mxu1 %v7449_v9  ;;  %v7233_v2 = vsel %vm12289_vm5, %v7223_v46, 0.0  ;;  %v6967_v43 = vand.u32 3, %v11916_v18  ;;  %v7728_v9 = vld [vmem:[#allocation3 + $0x3f8] sm:$0xff]  ;;  %v7585_v23 = vld [vmem:[#allocation3 + $0x2f0] sm:$0xff]  ;;  %v7584_v14 = vld [vmem:[#allocation3 + $0x2e8] sm:$0xff] }
 0xff6   :  { %v7188_v21 = vsel %vm7166_vm15, %v7153_v54, %v7187_v33  ;;  %10046 = vmatprep.subr.mxu1 %v7448_v4  ;;  %v7199_v48 = vsel %vm6137_vm3, %v7193_v8, %v7194_v47  ;;  %v7219_v39 = vrot.slane %v7181_v34, 1  ;;  %vm12379_vm8 = vcmp.gt.s32.totalorder %v6960_v12, 0  ;;  %v7727_v61 = vld [vmem:[#allocation3 + $0x3f0] sm:$0xff]  ;;  %v7583_v32 = vld [vmem:[#allocation3 + $0x2e0] sm:$0xff]  ;;  %v7582_v54 = vld [vmem:[#allocation3 + $0x2d8] sm:$0xff] }
 0xff7   :  { %v7196_v17 = vrot.slane %v7188_v21, 7  ;;  %10016 = vmatmul.mubr.msk.f32.gmra.mxu1 %vm7253_vm4, %v7188_v21  ;;  %v7198_v19 = vsel %vm6137_vm3, %v7194_v47, %v7195_v37  ;;  %v7220_v31 = vrot.slane %v7188_v21, 1  ;;  %v7210_v18 = vsel %vm12370_vm7, %v7199_v48, 0.0  ;;  %v7730_v47 = vld [vmem:[#allocation3 + $0x408] sm:$0xff]  ;;  %v7725_v57 = vld [vmem:[#allocation3 + $0x3e0] sm:$0xff]  ;;  %v7724_v26 = vld [vmem:[#allocation3 + $0x3d8] sm:$0xff] }
 0xff8   :  { %10047 = vmatpush3.msra.mxu1 %v7448_v4  ;;  %10056 = vmatprep.mubr.msk.f32.mxu1 %vm7253_vm4, %v7233_v2  ;;  %v7211_v0 = vsel %vm12379_vm8, %v7198_v19, 0.0  ;;  %vm6993_vm5 = vcmp.gt.s32.totalorder %v6967_v43, 0  ;;  %v7222_v25 = vsel %vm6186_vm11, %v7218_v24, %v7219_v39  ;;  %vm7215_vm7 = vcmp.lt.s32.totalorder %v6960_v12, 3  ;;  %v7726_v24 = vld [vmem:[#allocation3 + $0x3e8] sm:$0xff]  ;;  %v7581_v59 = vld [vmem:[#allocation3 + $0x2d0] sm:$0xff]  ;;  %v7579_v34 = vld [vmem:[#allocation3 + $0x2c0] sm:$0xff] }
 0xff9   :  { %10048 = vmatprep.subr.mxu1 %v7447_v63  ;;  %v7200_v55 = vsel %vm6137_vm3, %v7196_v17, %v7193_v8  ;;  %v7197_v16 = vsel %vm6137_vm3, %v7195_v37, %v7196_v17  ;;  %v7221_v5 = vsel %vm6186_vm11, %v7219_v39, %v7220_v31  ;;  %vm7216_vm3 = vcmp.lt.s32.totalorder %v6967_v43, 3  ;;  %v7723_v4 = vld [vmem:[#allocation3 + $0x3d0] sm:$0xff]  ;;  %v7580_v3 = vld [vmem:[#allocation3 + $0x2c8] sm:$0xff]  ;;  %v7721_v33 = vld [vmem:[#allocation3 + $0x3c0] sm:$0xff] }
 0xffa   :  { %10049 = vmatpush3.msra.mxu1 %v7447_v63  ;;  %v7209_v56 = vsel %vm12363_vm6, %v7200_v55, 0.0  ;;  %vm7214_vm6 = vcmp.lt.s32.totalorder %v6953_v7, 3  ;;  %v7212_v11 = vsel %vm6993_vm5, %v7197_v16, 0.0  ;;  %v7235_v53 = vsel %vm7215_vm7, %v7221_v5, 0.0  ;;  %v7722_v46 = vld [vmem:[#allocation3 + $0x3c8] sm:$0xff]  ;;  %v7578_v12 = vld [vmem:[#allocation3 + $0x2b8] sm:$0xff] }
 0xffb   :  { %10050 = vmatprep.subr.mxu1 %v7446_v10  ;;  %10034 = vmatprep.mubr.msk.f32.mxu0 %vm7253_vm4, %v7209_v56  ;;  %v7234_v35 = vsel %vm7214_vm6, %v7222_v25, 0.0  ;;  %v7224_v44 = vsel %vm6186_vm11, %v7220_v31, %v7217_v30  ;;  %v7732_v30 = vld [vmem:[#allocation3 + $0x418] sm:$0xff]  ;;  %v8549_v39 = vld [vmem:[#allocation3 + $0x290] ss:$0 sm:$0xff] }
 0xffc   :  { %10051 = vmatpush3.msra.mxu1 %v7446_v10  ;;  %10035 = vmatmul.mubr.msk.f32.vlgmr.msra.gmra.mxu0 %vm7253_vm4, %v7210_v18  ;;  %v7236_v7 = vsel %vm7216_vm3, %v7224_v44, 0.0  ;;  %v7720_v8 = vld [vmem:[#allocation3 + $0x3b8] sm:$0xff] }
 0xffd   :  { %10052 = vmatprep.subr.mxu1 %v7445_v27  ;;  %10037 = vmatprep.mubr.msk.f32.mxu0 %vm7253_vm4, %v7211_v0 }
 0xffe   :  { %10053 = vmatpush3.msra.mxu1 %v7445_v27  ;;  %10063 = vmatpush3.msra.mxu0 %v7593_v13 }
 0xfff   :  { %10054 = vmatprep.subr.mxu1 %v7444_v52  ;;  %10064 = vmatprep.subr.mxu0 %v12636_v45 }
0x1000   :  { %10055 = vmatpush3.msra.mxu1 %v7444_v52  ;;  %10038 = vmatmul.mubr.msk.f32.gmra.mxu0 %vm7253_vm4, %v7212_v11 }
0x1001   :  { %10057 = vmatmul.mubr.msk.f32.vlgmr.msra.gmra.mxu1 %vm7253_vm4, %v7234_v35  ;;  %10097 = vmatprep.subr.mxu1 %v12636_v45 }
0x1002   :  { %10059 = vmatprep.mubr.msk.f32.mxu1 %vm7253_vm4, %v7235_v53  ;;  %10094 = vmatprep.mubr.msk.f32.mxu0 %vm10598_vm1, %v12636_v45 }
0x1003   :  { %10098 = vmatpush3.msra.mxu1 %v7735_v22  ;;  %10065 = vmatpush3.msra.mxu0 %v7592_v50 }
0x1004   :  { %10099 = vmatprep.subr.mxu1 %v12636_v45  ;;  %10066 = vmatprep.subr.mxu0 %v12636_v45 }
0x1005   :  { %10060 = vmatmul.mubr.msk.f32.gmra.mxu1 %vm7253_vm4, %v7236_v7  ;;  %10067 = vmatpush3.msra.mxu0 %v7591_v60  ;;  %v7738_v7 = vsub.s32 2, %v11866_v36 }
0x1006   :  { %10129 = vmatprep.mubr.msk.f32.mxu1 %vm10598_vm1, %v12636_v45  ;;  %10100 = vmatpush3.msra.mxu1 %v7734_v6 }
0x1007   :  { %10101 = vmatprep.subr.mxu1 %v12636_v45  ;;  %10068 = vmatprep.subr.mxu0 %v12636_v45 }
0x1008   :  { %10102 = vmatpush3.msra.mxu1 %v7733_v58  ;;  %10069 = vmatpush3.msra.mxu0 %v7590_v29 }
0x1009   :  { %10103 = vmatprep.subr.mxu1 %v12636_v45  ;;  %10070 = vmatprep.subr.mxu0 %v12636_v45 }
0x100a   :  { %10104 = vmatpush3.msra.mxu1 %v7732_v30  ;;  %10071 = vmatpush3.msra.mxu0 %v7589_v1 }
0x100b   :  { %10105 = vmatprep.subr.mxu1 %v12636_v45  ;;  %10072 = vmatprep.subr.mxu0 %v12636_v45 }
0x100c   :  { %10106 = vmatpush3.msra.mxu1 %v7731_v28  ;;  %10073 = vmatpush3.msra.mxu0 %v7588_v49 }
0x100d   :  { %10107 = vmatprep.subr.mxu1 %v12636_v45  ;;  %10074 = vmatprep.subr.mxu0 %v12636_v45 }
0x100e   :  { %10108 = vmatpush3.msra.mxu1 %v7730_v47  ;;  %10075 = vmatpush3.msra.mxu0 %v7587_v51 }
0x100f   :  { %10109 = vmatprep.subr.mxu1 %v12636_v45  ;;  %10076 = vmatprep.subr.mxu0 %v12636_v45 }
0x1010   :  { %10110 = vmatpush3.msra.mxu1 %v7729_v41  ;;  %10077 = vmatpush3.msra.mxu0 %v7586_v20 }
0x1011   :  { %10111 = vmatprep.subr.mxu1 %v12636_v45  ;;  %10078 = vmatprep.subr.mxu0 %v12636_v45 }
0x1012   :  { %10112 = vmatpush3.msra.mxu1 %v7728_v9  ;;  %10079 = vmatpush3.msra.mxu0 %v7585_v23 }
0x1013   :  { %10113 = vmatprep.subr.mxu1 %v12636_v45  ;;  %10080 = vmatprep.subr.mxu0 %v12636_v45 }
0x1014   :  { %10114 = vmatpush3.msra.mxu1 %v7727_v61  ;;  %10081 = vmatpush3.msra.mxu0 %v7584_v14 }
0x1015   :  { %10115 = vmatprep.subr.mxu1 %v12636_v45  ;;  %10082 = vmatprep.subr.mxu0 %v12636_v45 }
0x1016   :  { %10116 = vmatpush3.msra.mxu1 %v7726_v24  ;;  %10083 = vmatpush3.msra.mxu0 %v7583_v32 }
0x1017   :  { %10117 = vmatprep.subr.mxu1 %v12636_v45  ;;  %10084 = vmatprep.subr.mxu0 %v12636_v45 }
0x1018   :  { %10118 = vmatpush3.msra.mxu1 %v7725_v57  ;;  %10085 = vmatpush3.msra.mxu0 %v7582_v54 }
0x1019   :  { %10119 = vmatprep.subr.mxu1 %v12636_v45  ;;  %10086 = vmatprep.subr.mxu0 %v12636_v45 }
0x101a   :  { %10120 = vmatpush3.msra.mxu1 %v7724_v26  ;;  %10087 = vmatpush3.msra.mxu0 %v7581_v59 }
0x101b   :  { %10121 = vmatprep.subr.mxu1 %v12636_v45  ;;  %10088 = vmatprep.subr.mxu0 %v12636_v45 }
0x101c   :  { %10122 = vmatpush3.msra.mxu1 %v7723_v4  ;;  %10089 = vmatpush3.msra.mxu0 %v7580_v3 }
0x101d   :  { %10123 = vmatprep.subr.mxu1 %v12636_v45  ;;  %10090 = vmatprep.subr.mxu0 %v12636_v45 }
0x101e   :  { %10124 = vmatpush3.msra.mxu1 %v7722_v46  ;;  %10091 = vmatpush3.msra.mxu0 %v7579_v34 }
0x101f   :  { %10125 = vmatprep.subr.mxu1 %v12636_v45  ;;  %10092 = vmatprep.subr.mxu0 %v12636_v45 }
0x1020   :  { %10126 = vmatpush3.msra.mxu1 %v7721_v33  ;;  %10093 = vmatpush3.msra.mxu0 %v7578_v12 }
0x1021   :  { %10127 = vmatprep.subr.mxu1 %v12636_v45  ;;  %10132 = vmatprep.subr.mxu0 %v12636_v45 }
0x1022   :  { %10128 = vmatpush3.msra.mxu1 %v7720_v8 }
0x1023   :  { %10167 = vmatprep.subr.mxu1 %v12636_v45 }
0x10b0   :  { %v10014_v37 = vpop.f32.mrf.mxu1 }
0x10b2   :  { %v7328_v63 = vpop.f32.mrf.mxu1 }
0x10b7   :  { %v10017_v21 = vpop.f32.mrf.mxu1 }
0x10b9   :  { %v7338_v10 = vpop.f32.mrf.mxu1 }
0x10bc   :  { %v10036_v17 = vpop.f32.mrf.mxu0 }
0x10bd   :  { %v7431_v2 = vadd.f32 %v10036_v17, %v10014_v37 }
0x10be   :  { %v7425_v38 = vpop.f32.mrf.mxu0 }
0x10bf   :  { %v7426_v42 = vadd.f32 %v7425_v38, %v7328_v63  ;;  %v7861_v63 = vld [vmem:[#allocation3 + $0x4b0] sm:$0xff]  ;;  %v7860_v38 = vld [vmem:[#allocation3 + $0x4a8] sm:$0xff] }
0x10c0   :  { %v10039_v48 = vpop.f32.mrf.mxu0 }
0x10c1   :  { %v10058_v43 = vpop.f32.mrf.mxu1  ;;  %v7441_v15 = vadd.f32 %v10039_v48, %v10017_v21  ;;  %v7575_v48 = vld [vmem:[#allocation3 + $0x2a0] sm:$0xff] }
0x10c2   :  { %v7550_v55 = vadd.f32 %v10058_v43, %v7431_v2  ;;  %v7435_v19 = vpop.f32.mrf.mxu0  ;;  %v7577_v2 = vld [vmem:[#allocation3 + $0x2b0] sm:$0xff]  ;;  %v7858_v43 = vld [vmem:[#allocation3 + $0x498] sm:$0xff] }
0x10c3   :  { %v7530_v31 = vpop.f32.mrf.mxu1  ;;  %v7436_v18 = vadd.f32 %v7435_v19, %v7338_v10  ;;  %v7576_v10 = vld [vmem:[#allocation3 + $0x2a8] sm:$0xff]  ;;  %v12519_v19 = vsub.s32 3, %v11866_v36 }
0x10c4   :  { %v7559_v27 = vadd.f32 %v8549_v39, %v7550_v55  ;;  %v7549_v56 = vadd.f32 %v7530_v31, %v7426_v42  ;;  %v7859_v42 = vld [vmem:[#allocation3 + $0x4a0] sm:$0xff]  ;;  %v7857_v55 = vld [vmem:[#allocation3 + $0x490] sm:$0xff]  ;;  %v7856_v31 = vld [vmem:[#allocation3 + $0x488] sm:$0xff] }
0x10c5   :  { %v10061_v52 = vpop.f32.mrf.mxu1 }
0x10c6   :  { %v7558_v0 = vadd.f32 %v8549_v39, %v7549_v56  ;;  %v7552_v16 = vadd.f32 %v10061_v52, %v7441_v15  ;;  %v12447_v25 = vmax.f32 %v7559_v27, 0.0  ;;  %v7719_v15 = vld [vmem:[#allocation3 + $0x3b0] sm:$0xff]  ;;  %v7718_v27 = vld [vmem:[#allocation3 + $0x3a8] sm:$0xff]  ;;  %v7717_v52 = vld [vmem:[#allocation3 + $0x3a0] sm:$0xff] }
0x10c7   :  { %v7540_v5 = vpop.f32.mrf.mxu1 }
0x10c8   :  { %v12449_v11 = vmax.f32 %v7558_v0, 0.0  ;;  %v7561_v35 = vadd.f32 %v8549_v39, %v7552_v16  ;;  %v7551_v53 = vadd.f32 %v7540_v5, %v7436_v18  ;;  %v12453_v44 = vcombine.high %v12447_v25, %v12447_v25  ;;  %v7855_v18 = vld [vmem:[#allocation3 + $0x480] sm:$0xff]  ;;  %v7716_v16 = vld [vmem:[#allocation3 + $0x398] sm:$0xff]  ;;  %v7853_v5 = vld [vmem:[#allocation3 + $0x470] sm:$0xff] }
0x10c9   :  { %v7605_v30 = vrot.slane %v12447_v25, %v12144_v40  ;;  %v7747_v28 = vrot.slane %v12447_v25, %v7738_v7 }
0x10ca   :  { %v12458_v13 = vcombine.high %v12449_v11, %v12449_v11  ;;  %v12460_v22 = vmax.f32 %v7561_v35, 0.0  ;;  %v7560_v50 = vadd.f32 %v8549_v39, %v7551_v53  ;;  %v7597_v6 = vrot.slane %v12449_v11, %v12144_v40  ;;  %v7574_v39 = vld [vmem:[#allocation3 + $0x298] sm:$0xff] }
0x10cb   :  { %v7739_v58 = vrot.slane %v12449_v11, %v7738_v7  ;;  %v7609_v47 = vrot.slane %v12453_v44, %v12144_v40  ;;  %v7751_v14 = vrot.slane %v12453_v44, %v7738_v7  ;;  %v7865_v0 = vrot.slane %v12449_v11, %v12519_v19 }
0x10cc   :  { %v7601_v60 = vrot.slane %v12458_v13, %v12144_v40  ;;  %v7743_v29 = vrot.slane %v12458_v13, %v7738_v7  ;;  %v12470_v1 = vmax.f32 %v7560_v50, 0.0  ;;  %v12479_v41 = vcombine.high %v12460_v22, %v12460_v22 }
0x10cd   :  { %v7621_v26 = vrot.slane %v12460_v22, %v12144_v40  ;;  %v7763_v34 = vrot.slane %v12460_v22, %v7738_v7  ;;  %v7869_v56 = vrot.slane %v12458_v13, %v12519_v19  ;;  %v7873_v53 = vrot.slane %v12447_v25, %v12519_v19 }
0x10ce   :  { %v7768_v49 = vsel %vm7154_vm0, %v7743_v29, %v7739_v58  ;;  %v7626_v51 = vsel %vm7154_vm0, %v7601_v60, %v7597_v6  ;;  %v12483_v20 = vcombine.high %v12470_v1, %v12470_v1  ;;  %v7613_v9 = vrot.slane %v12470_v1, %v12144_v40  ;;  %v7852_v6 = vld [vmem:[#allocation3 + $0x468] sm:$0xff] }
0x10cf   :  { %v7755_v23 = vrot.slane %v12470_v1, %v7738_v7  ;;  %v7627_v61 = vsel %vm7156_vm9, %v7605_v30, %v7626_v51  ;;  %v7769_v54 = vsel %vm7156_vm9, %v7747_v28, %v7768_v49  ;;  %v7625_v3 = vrot.slane %v12479_v41, %v12144_v40  ;;  %v7714_v60 = vld [vmem:[#allocation3 + $0x388] sm:$0xff]  ;;  %v7851_v30 = vld [vmem:[#allocation3 + $0x460] sm:$0xff] }
0x10d0   :  { %v7617_v24 = vrot.slane %v12483_v20, %v12144_v40  ;;  %v7628_v32 = vsel %vm7158_vm10, %v7609_v47, %v7627_v61  ;;  %v7759_v57 = vrot.slane %v12483_v20, %v7738_v7  ;;  %v7770_v4 = vsel %vm7158_vm10, %v7751_v14, %v7769_v54  ;;  %v7713_v49 = vld [vmem:[#allocation3 + $0x380] sm:$0xff]  ;;  %v7710_v54 = vld [vmem:[#allocation3 + $0x368] sm:$0xff] }
0x10d1   :  { %v7629_v59 = vsel %vm7160_vm12, %v7613_v9, %v7628_v32  ;;  %v7771_v33 = vsel %vm7160_vm12, %v7755_v23, %v7770_v4  ;;  %v7767_v8 = vrot.slane %v12479_v41, %v7738_v7  ;;  %v7894_v35 = vsel %vm7154_vm0, %v7869_v56, %v7865_v0  ;;  %v7715_v7 = vld [vmem:[#allocation3 + $0x390] sm:$0xff]  ;;  %v7712_v9 = vld [vmem:[#allocation3 + $0x378] sm:$0xff]  ;;  %v8183_v56 = vld [vmem:[#allocation3 + $0x508] sm:$0xff] }
0x10d2   :  { %v7630_v46 = vsel %vm7162_vm13, %v7617_v24, %v7629_v59  ;;  %v7772_v37 = vsel %vm7162_vm13, %v7759_v57, %v7771_v33  ;;  %v12539_v50 = vsub.s32 1, %v11866_v36  ;;  %v7895_v58 = vsel %vm7156_vm9, %v7873_v53, %v7894_v35  ;;  %v7849_v23 = vld [vmem:[#allocation3 + $0x450] sm:$0xff]  ;;  %v7848_v57 = vld [vmem:[#allocation3 + $0x448] sm:$0xff]  ;;  %v7846_v33 = vld [vmem:[#allocation3 + $0x438] sm:$0xff] }
0x10d3   :  { %v7631_v12 = vsel %vm7164_vm14, %v7621_v26, %v7630_v46  ;;  %v7773_v17 = vsel %vm7164_vm14, %v7763_v34, %v7772_v37  ;;  %v7877_v36 = vrot.slane %v12453_v44, %v12519_v19  ;;  %v7881_v28 = vrot.slane %v12470_v1, %v12519_v19  ;;  %v7711_v24 = vld [vmem:[#allocation3 + $0x370] sm:$0xff]  ;;  %v7709_v46 = vld [vmem:[#allocation3 + $0x360] sm:$0xff] }
0x10d4   :  { %v7632_v21 = vsel %vm7166_vm15, %v7625_v3, %v7631_v12  ;;  %v7774_v40 = vsel %vm7166_vm15, %v7767_v8, %v7773_v17  ;;  %v8052_v29 = vrot.slane %v12458_v13, %v12539_v50  ;;  %v8048_v47 = vrot.slane %v12449_v11, %v12539_v50  ;;  %v7850_v13 = vld [vmem:[#allocation3 + $0x458] sm:$0xff]  ;;  %v8180_v0 = vld [vmem:[#allocation3 + $0x4f0] sm:$0xff] }
0x10d5   :  { %10095 = vmatmul.mubr.f32.vlgmr.msra.gmra.mxu0 %v7632_v21  ;;  %10130 = vmatmul.mubr.f32.vlgmr.msra.gmra.mxu1 %v7774_v40  ;;  %v7896_v51 = vsel %vm7158_vm10, %v7877_v36, %v7895_v58  ;;  %v7885_v61 = vrot.slane %v12483_v20, %v12519_v19  ;;  %v8056_v11 = vrot.slane %v12447_v25, %v12539_v50  ;;  %v7847_v25 = vld [vmem:[#allocation3 + $0x440] sm:$0xff]  ;;  %v8176_v35 = vld [vmem:[#allocation3 + $0x4d0] sm:$0xff] }
0x10d6   :  { %10133 = vmatpush3.msra.mxu0 %v7861_v63  ;;  %10168 = vmatpush3.msra.mxu1 %v7577_v2  ;;  %v8077_v14 = vsel %vm7154_vm0, %v8052_v29, %v8048_v47  ;;  %v7897_v32 = vsel %vm7160_vm12, %v7881_v28, %v7896_v51  ;;  %v8060_v4 = vrot.slane %v12453_v44, %v12539_v50  ;;  %v7708_v44 = vld [vmem:[#allocation3 + $0x358] sm:$0xff]  ;;  %v7707_v63 = vld [vmem:[#allocation3 + $0x350] sm:$0xff]  ;;  %v7706_v2 = vld [vmem:[#allocation3 + $0x348] sm:$0xff] }
0x10d7   :  { %10134 = vmatprep.subr.mxu0 %v12636_v45  ;;  %10169 = vmatprep.subr.mxu1 %v12636_v45  ;;  %v8078_v26 = vsel %vm7156_vm9, %v8056_v11, %v8077_v14  ;;  %v7898_v59 = vsel %vm7162_vm13, %v7885_v61, %v7897_v32  ;;  %v8064_v3 = vrot.slane %v12470_v1, %v12539_v50  ;;  %v7705_v40 = vld [vmem:[#allocation3 + $0x340] sm:$0xff]  ;;  %v8551_v51 = vld [vmem:[#allocation3 + $0x4b8] ss:$0 sm:$0xff]  ;;  %v8554_v32 = vld [vmem:[#allocation3 + $0x550] ss:$0 sm:$0xff] }
0x10d8   :  { %10135 = vmatpush3.msra.mxu0 %v7860_v38  ;;  %10170 = vmatpush3.msra.mxu1 %v7576_v10  ;;  %v7889_v34 = vrot.slane %v12460_v22, %v12519_v19  ;;  %v8079_v12 = vsel %vm7158_vm10, %v8060_v4, %v8078_v26  ;;  %v7893_v1 = vrot.slane %v12479_v41, %v12519_v19  ;;  %v7704_v10 = vld [vmem:[#allocation3 + $0x338] sm:$0xff]  ;;  %v8186_v19 = vld [vmem:[#allocation3 + $0x520] sm:$0xff] }
0x10d9   :  { %10136 = vmatprep.subr.mxu0 %v12636_v45  ;;  %10171 = vmatprep.subr.mxu1 %v12636_v45  ;;  %v8068_v37 = vrot.slane %v12483_v20, %v12539_v50  ;;  %v8080_v21 = vsel %vm7160_vm12, %v8064_v3, %v8079_v12  ;;  %v8072_v38 = vrot.slane %v12460_v22, %v12539_v50  ;;  %v8552_v61 = vld [vmem:[#allocation3 + $0x4c0] ss:$0 sm:$0xff] }
0x10da   :  { %10137 = vmatpush3.msra.mxu0 %v7859_v42  ;;  %10172 = vmatpush3.msra.mxu1 %v7575_v48  ;;  %v7899_v8 = vsel %vm7164_vm14, %v7889_v34, %v7898_v59  ;;  %v8076_v48 = vrot.slane %v12479_v41, %v12539_v50  ;;  %v8187_v41 = vld [vmem:[#allocation3 + $0x528] sm:$0xff]  ;;  %v8556_v34 = vld [vmem:[#allocation3 + $0x560] ss:$0 sm:$0xff] }
0x10db   :  { %10138 = vmatprep.subr.mxu0 %v12636_v45  ;;  %10173 = vmatprep.subr.mxu1 %v12636_v45  ;;  %v7900_v17 = vsel %vm7166_vm15, %v7893_v1, %v7899_v8  ;;  %v8081_v20 = vsel %vm7162_vm13, %v8068_v37, %v8080_v21 }
0x10dc   :  { %10139 = vmatpush3.msra.mxu0 %v7858_v43  ;;  %10174 = vmatpush3.msra.mxu1 %v7574_v39  ;;  %v8082_v42 = vsel %vm7164_vm14, %v8072_v38, %v8081_v20  ;;  %v8191_v43 = vld [vmem:[#allocation3 + $0x548] sm:$0xff]  ;;  %v8190_v39 = vld [vmem:[#allocation3 + $0x540] sm:$0xff] }
0x10dd   :  { %10175 = vmatprep.mubr.msk.f32.mxu1 %vm10598_vm1, %v12636_v45  ;;  %10140 = vmatprep.subr.mxu0 %v12636_v45  ;;  %v8083_v22 = vsel %vm7166_vm15, %v8076_v48, %v8082_v42 }
0x10de   :  { %10176 = vmatmul.mubr.msk.f32.vlgmr.msra.gmra.mxu1 %vm522_vm2, %v12350_v62  ;;  %10178 = vmatprep.subr.mxu1 %v12636_v45  ;;  %v7854_v62 = vld [vmem:[#allocation3 + $0x478] sm:$0xff] }
0x10df   :  { %10141 = vmatpush3.msra.mxu0 %v7857_v55  ;;  %10179 = vmatpush3.msra.mxu1 %v7719_v15  ;;  %v8189_v55 = vld [vmem:[#allocation3 + $0x538] sm:$0xff]  ;;  %v8188_v15 = vld [vmem:[#allocation3 + $0x530] sm:$0xff] }
0x10e0   :  { %10142 = vmatprep.subr.mxu0 %v12636_v45  ;;  %10180 = vmatprep.subr.mxu1 %v12636_v45 }
0x10e1   :  { %10143 = vmatpush3.msra.mxu0 %v7856_v31  ;;  %10181 = vmatpush3.msra.mxu1 %v7718_v27  ;;  %v8185_v31 = vld [vmem:[#allocation3 + $0x518] sm:$0xff]  ;;  %v8184_v27 = vld [vmem:[#allocation3 + $0x510] sm:$0xff] }
0x10e2   :  { %10144 = vmatprep.subr.mxu0 %v12636_v45  ;;  %10182 = vmatprep.subr.mxu1 %v12636_v45 }
0x10e3   :  { %10145 = vmatpush3.msra.mxu0 %v7855_v18  ;;  %10183 = vmatpush3.msra.mxu1 %v7717_v52  ;;  %v8182_v18 = vld [vmem:[#allocation3 + $0x500] sm:$0xff]  ;;  %v8181_v52 = vld [vmem:[#allocation3 + $0x4f8] sm:$0xff] }
0x10e4   :  { %10146 = vmatprep.subr.mxu0 %v12636_v45  ;;  %10184 = vmatprep.subr.mxu1 %v12636_v45 }
0x10e5   :  { %10147 = vmatpush3.msra.mxu0 %v7854_v62  ;;  %10185 = vmatpush3.msra.mxu1 %v7716_v16  ;;  %v8179_v62 = vld [vmem:[#allocation3 + $0x4e8] sm:$0xff]  ;;  %v8178_v16 = vld [vmem:[#allocation3 + $0x4e0] sm:$0xff] }
0x10e6   :  { %10148 = vmatprep.subr.mxu0 %v12636_v45  ;;  %10186 = vmatprep.subr.mxu1 %v12636_v45 }
0x10e7   :  { %10149 = vmatpush3.msra.mxu0 %v7853_v5  ;;  %10187 = vmatpush3.msra.mxu1 %v7715_v7  ;;  %v8177_v5 = vld [vmem:[#allocation3 + $0x4d8] sm:$0xff] }
0x10e8   :  { %10150 = vmatprep.subr.mxu0 %v12636_v45  ;;  %10188 = vmatprep.subr.mxu1 %v12636_v45 }
0x10e9   :  { %10151 = vmatpush3.msra.mxu0 %v7852_v6  ;;  %10189 = vmatpush3.msra.mxu1 %v7714_v60 }
0x10ea   :  { %10152 = vmatprep.subr.mxu0 %v12636_v45  ;;  %10190 = vmatprep.subr.mxu1 %v12636_v45 }
0x10eb   :  { %10153 = vmatpush3.msra.mxu0 %v7851_v30  ;;  %10191 = vmatpush3.msra.mxu1 %v7713_v49 }
0x10ec   :  { %10154 = vmatprep.subr.mxu0 %v12636_v45  ;;  %10192 = vmatprep.subr.mxu1 %v12636_v45 }
0x10ed   :  { %10155 = vmatpush3.msra.mxu0 %v7850_v13  ;;  %10193 = vmatpush3.msra.mxu1 %v7712_v9 }
0x10ee   :  { %10156 = vmatprep.subr.mxu0 %v12636_v45  ;;  %10194 = vmatprep.subr.mxu1 %v12636_v45 }
0x10ef   :  { %10157 = vmatpush3.msra.mxu0 %v7849_v23  ;;  %10195 = vmatpush3.msra.mxu1 %v7711_v24 }
0x10f0   :  { %10158 = vmatprep.subr.mxu0 %v12636_v45  ;;  %10196 = vmatprep.subr.mxu1 %v12636_v45 }
0x10f1   :  { %10159 = vmatpush3.msra.mxu0 %v7848_v57  ;;  %10197 = vmatpush3.msra.mxu1 %v7710_v54 }
0x10f2   :  { %10160 = vmatprep.subr.mxu0 %v12636_v45  ;;  %10198 = vmatprep.subr.mxu1 %v12636_v45 }
0x10f3   :  { %10161 = vmatpush3.msra.mxu0 %v7847_v25  ;;  %10199 = vmatpush3.msra.mxu1 %v7709_v46  ;;  %v8555_v25 = vld [vmem:[#allocation3 + $0x558] ss:$0 sm:$0xff]  ;;  %v10600_v46 = vmov 0  }
0x10f4   :  { %10162 = vmatprep.subr.mxu0 %v12636_v45  ;;  %10200 = vmatprep.subr.mxu1 %v12636_v45 }
0x10f5   :  { %10163 = vmatpush3.msra.mxu0 %v7846_v33  ;;  %10164 = vmatprep.mubr.msk.f32.mxu0 %vm10598_vm1, %v12636_v45 }
0x10f6   :  { %10201 = vmatpush3.msra.mxu1 %v7708_v44  ;;  %10165 = vmatmul.mubr.f32.vlgmr.msra.gmra.mxu0 %v7900_v17 }
0x10f7   :  { %10202 = vmatprep.subr.mxu1 %v12636_v45  ;;  %10210 = vmatprep.mubr.msk.f32.mxu1 %vm10598_vm1, %v12636_v45 }
0x10f8   :  { %10203 = vmatpush3.msra.mxu1 %v7707_v63  ;;  %10213 = vmatprep.subr.mxu0 %v12636_v45 }
0x10f9   :  { %10204 = vmatprep.subr.mxu1 %v12636_v45  ;;  %10245 = vmatprep.mubr.msk.f32.mxu0 %vm10598_vm1, %v12636_v45 }
0x10fa   :  { %10205 = vmatpush3.msra.mxu1 %v7706_v2  ;;  %10214 = vmatpush3.msra.mxu0 %v8191_v43 }
0x10fb   :  { %10206 = vmatprep.subr.mxu1 %v12636_v45  ;;  %10215 = vmatprep.subr.mxu0 %v12636_v45 }
0x10fc   :  { %10207 = vmatpush3.msra.mxu1 %v7705_v40  ;;  %10216 = vmatpush3.msra.mxu0 %v8190_v39 }
0x10fd   :  { %10208 = vmatprep.subr.mxu1 %v12636_v45  ;;  %10217 = vmatprep.subr.mxu0 %v12636_v45 }
0x10fe   :  { %10209 = vmatpush3.msra.mxu1 %v7704_v10  ;;  %10218 = vmatpush3.msra.mxu0 %v8189_v55 }
0x10ff   :  { %10211 = vmatmul.mubr.f32.vlgmr.msra.gmra.mxu1 %v8083_v22  ;;  %10219 = vmatprep.subr.mxu0 %v12636_v45 }
0x1100   :  { %10220 = vmatpush3.msra.mxu0 %v8188_v15  ;;  %10258 = vset.pattern.permute.xlu0 %v10600_v46 }
0x1101   :  { %10221 = vmatprep.subr.mxu0 %v12636_v45 }
0x1102   :  { %10222 = vmatpush3.msra.mxu0 %v8187_v41 }
0x1103   :  { %10223 = vmatprep.subr.mxu0 %v12636_v45 }
0x1104   :  { %10224 = vmatpush3.msra.mxu0 %v8186_v19 }
0x1105   :  { %10225 = vmatprep.subr.mxu0 %v12636_v45 }
0x1106   :  { %10226 = vmatpush3.msra.mxu0 %v8185_v31 }
0x1107   :  { %10227 = vmatprep.subr.mxu0 %v12636_v45 }
0x1108   :  { %10228 = vmatpush3.msra.mxu0 %v8184_v27 }
0x1109   :  { %10229 = vmatprep.subr.mxu0 %v12636_v45 }
0x110a   :  { %10230 = vmatpush3.msra.mxu0 %v8183_v56 }
0x110b   :  { %10231 = vmatprep.subr.mxu0 %v12636_v45 }
0x110c   :  { %10232 = vmatpush3.msra.mxu0 %v8182_v18 }
0x110d   :  { %10233 = vmatprep.subr.mxu0 %v12636_v45 }
0x110e   :  { %10234 = vmatpush3.msra.mxu0 %v8181_v52 }
0x110f   :  { %10235 = vmatprep.subr.mxu0 %v12636_v45 }
0x1110   :  { %10236 = vmatpush3.msra.mxu0 %v8180_v0 }
0x1111   :  { %10237 = vmatprep.subr.mxu0 %v12636_v45 }
0x1112   :  { %10238 = vmatpush3.msra.mxu0 %v8179_v62 }
0x1113   :  { %10239 = vmatprep.subr.mxu0 %v12636_v45 }
0x1114   :  { %10240 = vmatpush3.msra.mxu0 %v8178_v16 }
0x1115   :  { %10241 = vmatprep.subr.mxu0 %v12636_v45 }
0x1116   :  { %10242 = vmatpush3.msra.mxu0 %v8177_v5 }
0x1117   :  { %10243 = vmatprep.subr.mxu0 %v12636_v45  ;;  %v8553_v45 = vld [vmem:[#allocation3 + $0x4c8] ss:$0 sm:$0xff] }
0x1118   :  { %10244 = vmatpush3.msra.mxu0 %v8176_v35 }
0x1195   :  { %v7700_v53 = vpop.f32.mrf.mxu0  ;;  %v7842_v7 = vpop.f32.mrf.mxu1 }
0x1197   :  { %v10096_v50 = vpop.f32.mrf.mxu0  ;;  %v10131_v6 = vpop.f32.mrf.mxu1 }
0x119e   :  { %v8041_v60 = vpop.f32.mrf.mxu1 }
0x119f   :  { %v8042_v28 = vadd.f32 %v8041_v60, %v7700_v53 }
0x11a0   :  { %v10177_v58 = vpop.f32.mrf.mxu1 }
0x11b6   :  { %v7968_v29 = vpop.f32.mrf.mxu0 }
0x11b8   :  { %v10166_v30 = vpop.f32.mrf.mxu0 }
0x11bf   :  { %v8151_v36 = vpop.f32.mrf.mxu1 }
0x11c0   :  { %v8152_v49 = vadd.f32 %v8151_v36, %v7842_v7 }
0x11c1   :  { %v10212_v47 = vpop.f32.mrf.mxu1 }
0x11c2   :  { %v8155_v13 = vadd.f32 %v8152_v49, %v8042_v28 }
0x11c4   :  { %v8156_v9 = vadd.f32 %v8155_v13, %v7968_v29 }
0x11c6   :  { %v8162_v23 = vadd.f32 %v8551_v51, %v8156_v9 }
0x11c8   :  { %v8163_v14 = vmax.f32 %v8162_v23, 0.0 }
0x11ca   :  { %v8169_v11 = vmul.f32 %v8552_v61, %v8163_v14 }
0x11cc   :  { %v8175_v24 = vadd.f32 %v8553_v45, %v8169_v11 }
0x11ce   :  { %10246 = vmatmul.mubr.f32.vlgmr.msra.gmra.mxu0 %v8175_v24 }
0x128e   :  { %v8263_v57 = vpop.f32.mrf.mxu0 }
0x128f   :  { %v8264_v54 = vadd.f32 %v8554_v32, %v8263_v57 }
0x1290   :  { %v10247_v26 = vpop.f32.mrf.mxu0 }
0x1291   :  { %v8267_v59 = vmax.f32 %v8264_v54, 0.0 }
0x1293   :  { %v8273_v4 = vmul.f32 %v8555_v25, %v8267_v59 }
0x1295   :  { %v8274_v3 = vsel %vm7253_vm4, %v8273_v4, 0.0 }
0x1296   :  { %8275 = vadd.xlane.f32.xlu0 %v8274_v3 }
0x131f   :  { %v8276_v33 = vpop.xlane.xlu0 %8275 }
0x1320   :  { %v8282_v12 = vadd.f32 %v8556_v34, %v8276_v33 }
0x1322   :  { %8285 = vperm.xlu0 %10258, %v8282_v12  }
0x139d   :  { %v8286_v44 = vpop.permute.xlu0 %8285 }
0x139e   :  { %8288 = vst [vmem:[#allocation6] sm:$0xff] %v8286_v44 }
0x139f   :  { %10581 = shalt.err (!%p10578_p9)
}
0x13a0   :  { %8298 = dma.vmem_to_hbm [thread:$0]  %s8296_s22, 128, %s12629_s3, [#allocation5]  }
0x13a1   :  { %10592 = dma.done.wait [#allocation5], 128  }
0x13a2   :  { %10593 = vsyncadd [#allocation5], 4294967168 }
0x13a3   :  { %8302 = vsyncpa [#allocation4], 1 }
0x13a4   :  { %8303 = vsyncpa [#allocation5], 1 }

</bundles_post_ra>
